<compile_context>
chip_gen: v7x
topology: tpu7x:2x2x1
jax: 0.10.0
libtpu: 0.0.40
codegen_flags: <defaults>
</compile_context>

<pallas_src>
import jax
import jax.numpy as jnp
from jax import lax
from jax.experimental import pallas as pl
from jax.experimental.pallas import tpu as pltpu

HIDDEN1 = 128              # self.hidden_size
HIDDEN2 = HIDDEN1 // 4     # 32 ; 4*HIDDEN2 == 128 -> packed gates fill one lane block
DROPOUT_P = 0.5
SUBLANE = 8
MAX_CHUNK_T = 128          # timesteps per grid step (T-chunked "arbitrary" axis)


def _build_kernel(T_total, Tc, Bp, need_guard, unroll):
    """Builds the kernel body; Python constants are captured by closure."""

    def kernel(x_ref,        # (Tc*Bp, F)      bf16  time-major chunk, batch padded
               mask_ref,     # (Tc*Bp, H1)     f32   dropout keep*scale mask chunk
               wih1_ref,     # (F, 4*H1)       bf16
               whh1_ref,     # (H1, 4*H1)      bf16
               b1_ref,       # (1, 4*H1)       f32   b_ih + b_hh
               wih2_ref,     # (H1, 4*H2)=(128,128) bf16  packed [i|f|g|o]
               whh2_ref,     # (H2, 4*H2)=(32,128)  bf16  packed
               b2_ref,       # (1, 4*H2)       f32   packed
               wd_ref,       # (H2, O)         bf16
               bd_ref,       # (1, O)          f32
               out_ref,      # (Bp, O)         f32
               xg1_ref,      # VMEM (Tc*Bp, 4*H1) f32  hoisted input proj, LSTM1
               xg2_ref,      # VMEM (Tc*Bp, 4*H2) f32  fused input proj, LSTM2
               h1_ref, c1_ref,   # VMEM (Bp, H1) f32   carried across chunks
               h2_ref, c2_ref):  # VMEM (Bp, H2) f32   carried across chunks
        f32, bf16 = jnp.float32, jnp.bfloat16
        H1 = h1_ref.shape[1]          # 128
        H2 = h2_ref.shape[1]          # 32
        chunk = pl.program_id(0)

        # ---- state init on the first chunk (accumulator pattern) -----------
        @pl.when(chunk == 0)
        def _():
            h1_ref[...] = jnp.zeros_like(h1_ref)
            c1_ref[...] = jnp.zeros_like(c1_ref)
            h2_ref[...] = jnp.zeros_like(h2_ref)
            c2_ref[...] = jnp.zeros_like(c2_ref)

        # ---- LSTM1 input projection for this chunk: one big MXU matmul -----
        xg1_ref[...] = (
            jnp.dot(x_ref[...], wih1_ref[...], preferred_element_type=f32)
            + b1_ref[...])

        def guarded(t, write_fn):
            # Padded timesteps (T rounded up to a multiple of the chunk) must
            # not advance the recurrent state; the guard is only emitted when
            # padding actually exists (Python-level decision).
            if need_guard:
                pl.when(chunk * Tc + t < T_total)(write_fn)
            else:
                write_fn()

        # ---- LSTM1 recurrence with dropout + LSTM2 projection fused in -----
        def step1(t, carry):
            row = pl.multiple_of(t * Bp, Bp)                 # 8-sublane aligned
            gates = xg1_ref[pl.ds(row, Bp), :] + jnp.dot(
                h1_ref[...].astype(bf16), whh1_ref[...],
                preferred_element_type=f32)
            # H1 == 128 -> every gate slice is a lane-aligned 128-wide block.
            i_g = jax.nn.sigmoid(gates[:, 0 * H1:1 * H1])
            f_g = jax.nn.sigmoid(gates[:, 1 * H1:2 * H1])
            g_g = jnp.tanh(gates[:, 2 * H1:3 * H1])
            o_g = jax.nn.sigmoid(gates[:, 3 * H1:4 * H1])
            c_new = f_g * c1_ref[...] + i_g * g_g
            h_new = o_g * jnp.tanh(c_new)
            # Fused: dropout(h1_t) and the LSTM2 input projection ride in the
            # otherwise-idle MXU slot of this recurrence step.
            h_drop = h_new * mask_ref[pl.ds(row, Bp), :]
            xg2_row = jnp.dot(h_drop.astype(bf16), wih2_ref[...],
                              preferred_element_type=f32) + b2_ref[...]

            def write():
                c1_ref[...] = c_new
                h1_ref[...] = h_new
                xg2_ref[pl.ds(row, Bp), :] = xg2_row

            guarded(t, write)
            return carry

        lax.fori_loop(0, Tc, step1, 0, unroll=unroll)

        # ---- LSTM2 recurrence on packed gates [i|f|g|o] (4*32 = 128 lanes) --
        # 2 transcendental passes (sigmoid + tanh over one 128-lane block) and
        # a lane select, instead of 4 passes over zero-padded gates.
        lane = lax.broadcasted_iota(jnp.int32, (Bp, 4 * H2), 1)
        g_lane = (lane >= 2 * H2) & (lane < 3 * H2)          # tanh (g) block

        def step2(t, carry):
            row = pl.multiple_of(t * Bp, Bp)
            gates = xg2_ref[pl.ds(row, Bp), :] + jnp.dot(
                h2_ref[...].astype(bf16), whh2_ref[...],
                preferred_element_type=f32)
            act = jnp.where(g_lane, jnp.tanh(gates), jax.nn.sigmoid(gates))
            i_g = act[:, 0 * H2:1 * H2]
            f_g = act[:, 1 * H2:2 * H2]
            g_g = act[:, 2 * H2:3 * H2]
            o_g = act[:, 3 * H2:4 * H2]
            c_new = f_g * c2_ref[...] + i_g * g_g
            h_new = o_g * jnp.tanh(c_new)

            def write():
                c2_ref[...] = c_new
                h2_ref[...] = h_new

            guarded(t, write)
            return carry

        lax.fori_loop(0, Tc, step2, 0, unroll=unroll)

        # ---- dense head on the FINAL hidden state of LSTM2 (single store) ---
        @pl.when(chunk == pl.num_programs(0) - 1)
        def _():
            out_ref[...] = (
                jnp.dot(h2_ref[...].astype(bf16), wd_ref[...],
                        preferred_element_type=f32) + bd_ref[...])

    return kernel


def pack_params(w_ih1, w_hh1, b_ih1, b_hh1,
                w_ih2, w_hh2, b_ih2, b_hh2, w_d, b_d):
    """Repack PyTorch-shaped LSTM/Linear weights into the kernel layout.

    PyTorch gate order (i, f, g, o) is kept; transposing weight_ih/weight_hh
    gives column-blocked [i|f|g|o] layouts directly.  For LSTM2 the four
    32-wide gates pack exactly into one 128-lane block -> no padding at all.
    """
    bf16, f32 = jnp.bfloat16, jnp.float32
    return {
        "wih1": w_ih1.T.astype(bf16),                       # (F, 4*H1)
        "whh1": w_hh1.T.astype(bf16),                       # (H1, 4*H1)
        "b1": (b_ih1 + b_hh1).reshape(1, -1).astype(f32),   # (1, 4*H1)
        "wih2": w_ih2.T.astype(bf16),                       # (H1, 128) packed
        "whh2": w_hh2.T.astype(bf16),                       # (32, 128) packed
        "b2": (b_ih2 + b_hh2).reshape(1, -1).astype(f32),   # (1, 128) packed
        "wd": w_d.T.astype(bf16),                           # (H2, O)
        "bd": b_d.reshape(1, -1).astype(f32),               # (1, O)
    }


def init_params(key, features, horizon):
    """PyTorch-style init: U(-1/sqrt(H), 1/sqrt(H)), PyTorch weight shapes."""
    ks = jax.random.split(key, 10)
    k1 = 1.0 / HIDDEN1 ** 0.5
    k2 = 1.0 / HIDDEN2 ** 0.5
    u = jax.random.uniform
    w_ih1 = u(ks[0], (4 * HIDDEN1, features), jnp.float32, -k1, k1)
    w_hh1 = u(ks[1], (4 * HIDDEN1, HIDDEN1), jnp.float32, -k1, k1)
    b_ih1 = u(ks[2], (4 * HIDDEN1,), jnp.float32, -k1, k1)
    b_hh1 = u(ks[3], (4 * HIDDEN1,), jnp.float32, -k1, k1)
    w_ih2 = u(ks[4], (4 * HIDDEN2, HIDDEN1), jnp.float32, -k2, k2)
    w_hh2 = u(ks[5], (4 * HIDDEN2, HIDDEN2), jnp.float32, -k2, k2)
    b_ih2 = u(ks[6], (4 * HIDDEN2,), jnp.float32, -k2, k2)
    b_hh2 = u(ks[7], (4 * HIDDEN2,), jnp.float32, -k2, k2)
    w_d = u(ks[8], (horizon, HIDDEN2), jnp.float32, -k2, k2)
    b_d = u(ks[9], (horizon,), jnp.float32, -k2, k2)
    return pack_params(w_ih1, w_hh1, b_ih1, b_hh1,
                       w_ih2, w_hh2, b_ih2, b_hh2, w_d, b_d)


def lstm_autoencoder_forward(x, params, dropout_key, *,
                             chunk_timesteps=MAX_CHUNK_T):
    """x: (B, T, features) float32 (batch_first=True). Returns (B, horizon)."""
    B, T, F = x.shape
    H1 = HIDDEN1
    H2 = HIDDEN2
    O = params["wd"].shape[1]
    Bp = ((B + SUBLANE - 1) // SUBLANE) * SUBLANE       # batch padded to sublanes

    Tc = min(T, chunk_timesteps)                        # timesteps per grid step
    num_chunks = (T + Tc - 1) // Tc
    T_pad = num_chunks * Tc
    need_guard = T_pad != T
    unroll = min(Tc, 8)                                 # capped unroll

    # Layout plumbing: time-major, batch padded, (T, Bp) flattened to rows so
    # every per-step slice in the kernel is an 8-sublane-aligned (Bp, .) tile.
    x_tm = jnp.transpose(x, (1, 0, 2))                          # (T, B, F)
    x_tm = jnp.pad(x_tm, ((0, T_pad - T), (0, Bp - B), (0, 0))) # (T_pad, Bp, F)
    x2d = x_tm.reshape(T_pad * Bp, F).astype(jnp.bfloat16)

    # F.dropout(p=0.5, training=True) keep*scale mask for the LSTM1 output.
    # Drawn at the un-padded size so the result is independent of chunking.
    keep = jax.random.bernoulli(dropout_key, 1.0 - DROPOUT_P, (T * Bp, H1))
    mask = jnp.where(keep, 1.0 / (1.0 - DROPOUT_P), 0.0).astype(jnp.float32)
    mask = jnp.pad(mask, ((0, (T_pad - T) * Bp), (0, 0)))

    kernel = _build_kernel(T, Tc, Bp, need_guard, unroll)

    out = pl.pallas_call(
        kernel,
        out_shape=jax.ShapeDtypeStruct((Bp, O), jnp.float32),
        grid=(num_chunks,),
        in_specs=[
            pl.BlockSpec((Tc * Bp, F), lambda c: (c, 0)),          # x (chunked)
            pl.BlockSpec((Tc * Bp, H1), lambda c: (c, 0)),         # dropout mask
            pl.BlockSpec(params["wih1"].shape, lambda c: (0, 0)),  # weights:
            pl.BlockSpec(params["whh1"].shape, lambda c: (0, 0)),  # constant
            pl.BlockSpec(params["b1"].shape, lambda c: (0, 0)),    # block index
            pl.BlockSpec(params["wih2"].shape, lambda c: (0, 0)),  # -> fetched
            pl.BlockSpec(params["whh2"].shape, lambda c: (0, 0)),  # once, stay
            pl.BlockSpec(params["b2"].shape, lambda c: (0, 0)),    # resident
            pl.BlockSpec(params["wd"].shape, lambda c: (0, 0)),
            pl.BlockSpec(params["bd"].shape, lambda c: (0, 0)),
        ],
        out_specs=pl.BlockSpec((Bp, O), lambda c: (0, 0)),
        scratch_shapes=[
            pltpu.VMEM((Tc * Bp, 4 * H1), jnp.float32),   # xg1: hoisted proj 1
            pltpu.VMEM((Tc * Bp, 4 * H2), jnp.float32),   # xg2: fused proj 2 (packed)
            pltpu.VMEM((Bp, H1), jnp.float32),            # h1 (carried)
            pltpu.VMEM((Bp, H1), jnp.float32),            # c1 (carried)
            pltpu.VMEM((Bp, H2), jnp.float32),            # h2 (carried)
            pltpu.VMEM((Bp, H2), jnp.float32),            # c2 (carried)
        ],
        compiler_params=pltpu.CompilerParams(
            dimension_semantics=("arbitrary",)),          # serial recurrence
    )(x2d, mask,
      params["wih1"], params["whh1"], params["b1"],
      params["wih2"], params["whh2"], params["b2"],
      params["wd"], params["bd"])
    return out[:B]


if __name__ == "__main__":
    FEATURES = 16        # config['features']
    HORIZON = 4          # config['forecast_horizon']
    BATCH, SEQ = 2, 8

    key = jax.random.PRNGKey(0)
    kx, kp, kdrop = jax.random.split(key, 3)
    x = jax.random.normal(kx, (BATCH, SEQ, FEATURES), dtype=jnp.float32)
    params = init_params(kp, FEATURES, HORIZON)

    # Single-chunk path (T <= chunk size).
    y = lstm_autoencoder_forward(x, params, kdrop)
    jax.block_until_ready(y)
    assert y.shape == (BATCH, HORIZON), y.shape
    assert bool(jnp.all(jnp.isfinite(y)))

    # Multi-chunk path with a ragged tail (2 chunks of 6 over T=8): same mask,
    # padded steps guarded out -> must match the single-chunk result.
    y_chunked = lstm_autoencoder_forward(x, params, kdrop, chunk_timesteps=6)
    jax.block_until_ready(y_chunked)
    assert bool(jnp.allclose(y, y_chunked, atol=1e-3, rtol=1e-3))

    print("KERNEL_OK")
</pallas_src>

<mosaic_0001>
module attributes {stable_mosaic.version = 11 : i64} {
  func.func @kernel(%arg0: i32, %arg1: memref<64x16xbf16, #tpu.memory_space<vmem>>, %arg2: memref<64x128xf32, #tpu.memory_space<vmem>>, %arg3: memref<16x512xbf16, #tpu.memory_space<vmem>>, %arg4: memref<128x512xbf16, #tpu.memory_space<vmem>>, %arg5: memref<1x512xf32, #tpu.memory_space<vmem>>, %arg6: memref<128x128xbf16, #tpu.memory_space<vmem>>, %arg7: memref<32x128xbf16, #tpu.memory_space<vmem>>, %arg8: memref<1x128xf32, #tpu.memory_space<vmem>>, %arg9: memref<32x4xbf16, #tpu.memory_space<vmem>>, %arg10: memref<1x4xf32, #tpu.memory_space<vmem>>, %arg11: memref<8x4xf32, #tpu.memory_space<vmem>>, %arg12: memref<64x512xf32, #tpu.memory_space<vmem>>, %arg13: memref<64x128xf32, #tpu.memory_space<vmem>>, %arg14: memref<8x128xf32, #tpu.memory_space<vmem>>, %arg15: memref<8x128xf32, #tpu.memory_space<vmem>>, %arg16: memref<8x32xf32, #tpu.memory_space<vmem>>, %arg17: memref<8x32xf32, #tpu.memory_space<vmem>>) attributes {dimension_semantics = [#tpu.dimension_semantics<arbitrary>], iteration_bounds = array<i64: 1>, scalar_prefetch = 0 : i64, scratch_operands = 6 : i64, tpu.core_type = #tpu.core_type<tc>, window_params = [{transform_indices = @transform_0, window_bounds = array<i64: 64, 16>}, {transform_indices = @transform_1, window_bounds = array<i64: 64, 128>}, {pipeline_mode = #tpu.pipeline_mode<synchronous>, transform_indices = @transform_2, window_bounds = array<i64: 16, 512>}, {pipeline_mode = #tpu.pipeline_mode<synchronous>, transform_indices = @transform_3, window_bounds = array<i64: 128, 512>}, {pipeline_mode = #tpu.pipeline_mode<synchronous>, transform_indices = @transform_4, window_bounds = array<i64: 1, 512>}, {pipeline_mode = #tpu.pipeline_mode<synchronous>, transform_indices = @transform_5, window_bounds = array<i64: 128, 128>}, {pipeline_mode = #tpu.pipeline_mode<synchronous>, transform_indices = @transform_6, window_bounds = array<i64: 32, 128>}, {pipeline_mode = #tpu.pipeline_mode<synchronous>, transform_indices = @transform_7, window_bounds = array<i64: 1, 128>}, {pipeline_mode = #tpu.pipeline_mode<synchronous>, transform_indices = @transform_8, window_bounds = array<i64: 32, 4>}, {pipeline_mode = #tpu.pipeline_mode<synchronous>, transform_indices = @transform_9, window_bounds = array<i64: 1, 4>}, {pipeline_mode = #tpu.pipeline_mode<synchronous>, transform_indices = @transform_10, window_bounds = array<i64: 8, 4>}]} {
    %c0_i32 = arith.constant 0 : i32
    %0 = arith.cmpi eq, %arg0, %c0_i32 : i32
    %1 = arith.extui %0 : i1 to i32
    %c0_i32_0 = arith.constant 0 : i32
    %2 = arith.cmpi ne, %1, %c0_i32_0 : i32
    scf.if %2 {
      %cst_316 = arith.constant 0.000000e+00 : f32
      %627 = vector.broadcast %cst_316 : f32 to vector<8x128xf32>
      %c0_317 = arith.constant 0 : index
      %c0_318 = arith.constant 0 : index
      %628 = vector.load %arg14[%c0_317, %c0_318] : memref<8x128xf32, #tpu.memory_space<vmem>>, vector<8x128xf32>
      tpu.vector_store %arg14[%c0_317, %c0_318], %627 {strides = array<i32>} : memref<8x128xf32, #tpu.memory_space<vmem>>, vector<8x128xf32>,
      %cst_319 = arith.constant 0.000000e+00 : f32
      %629 = vector.broadcast %cst_319 : f32 to vector<8x128xf32>
      %c0_320 = arith.constant 0 : index
      %c0_321 = arith.constant 0 : index
      %630 = vector.load %arg15[%c0_320, %c0_321] : memref<8x128xf32, #tpu.memory_space<vmem>>, vector<8x128xf32>
      tpu.vector_store %arg15[%c0_320, %c0_321], %629 {strides = array<i32>} : memref<8x128xf32, #tpu.memory_space<vmem>>, vector<8x128xf32>,
      %cst_322 = arith.constant 0.000000e+00 : f32
      %631 = vector.broadcast %cst_322 : f32 to vector<8x32xf32>
      %c0_323 = arith.constant 0 : index
      %c0_324 = arith.constant 0 : index
      %632 = vector.load %arg16[%c0_323, %c0_324] : memref<8x32xf32, #tpu.memory_space<vmem>>, vector<8x32xf32>
      tpu.vector_store %arg16[%c0_323, %c0_324], %631 {strides = array<i32>} : memref<8x32xf32, #tpu.memory_space<vmem>>, vector<8x32xf32>,
      %cst_325 = arith.constant 0.000000e+00 : f32
      %633 = vector.broadcast %cst_325 : f32 to vector<8x32xf32>
      %c0_326 = arith.constant 0 : index
      %c0_327 = arith.constant 0 : index
      %634 = vector.load %arg17[%c0_326, %c0_327] : memref<8x32xf32, #tpu.memory_space<vmem>>, vector<8x32xf32>
      tpu.vector_store %arg17[%c0_326, %c0_327], %633 {strides = array<i32>} : memref<8x32xf32, #tpu.memory_space<vmem>>, vector<8x32xf32>,
    } else {
    }
    %c0 = arith.constant 0 : index
    %c0_1 = arith.constant 0 : index
    %3 = vector.load %arg1[%c0, %c0_1] : memref<64x16xbf16, #tpu.memory_space<vmem>>, vector<64x16xbf16>
    %c0_2 = arith.constant 0 : index
    %c0_3 = arith.constant 0 : index
    %4 = vector.load %arg3[%c0_2, %c0_3] : memref<16x512xbf16, #tpu.memory_space<vmem>>, vector<16x512xbf16>
    %cst = arith.constant dense<0.000000e+00> : vector<64x512xf32>
    %5 = tpu.matmul %3, %4, %cst {dimension_numbers = #tpu.dot_dimension_numbers<[1], [0], [0], [1], [0, 0, 1, 1], [], []>} : vector<64x16xbf16>, vector<16x512xbf16>, vector<64x512xf32> -> vector<64x512xf32>
    %c0_4 = arith.constant 0 : index
    %c0_5 = arith.constant 0 : index
    %6 = vector.load %arg5[%c0_4, %c0_5] : memref<1x512xf32, #tpu.memory_space<vmem>>, vector<1x512xf32>
    %7 = vector.broadcast %6 : vector<1x512xf32> to vector<64x512xf32>
    %8 = arith.addf %5, %7 : vector<64x512xf32>
    %c0_6 = arith.constant 0 : index
    %c0_7 = arith.constant 0 : index
    %9 = vector.load %arg12[%c0_6, %c0_7] : memref<64x512xf32, #tpu.memory_space<vmem>>, vector<64x512xf32>
    tpu.vector_store %arg12[%c0_6, %c0_7], %8 {strides = array<i32>} : memref<64x512xf32, #tpu.memory_space<vmem>>, vector<64x512xf32>,
    %c0_i32_8 = arith.constant 0 : i32
    %c8_i32 = arith.constant 8 : i32
    %10 = arith.muli %c0_i32_8, %c8_i32 : i32
    %11 = tpu.assume_multiple %10, 8 : i32
    %12 = arith.index_cast %11 : i32 to index
    %c0_9 = arith.constant 0 : index
    %13 = vector.load %arg12[%12, %c0_9] : memref<64x512xf32, #tpu.memory_space<vmem>>, vector<8x512xf32>
    %c0_10 = arith.constant 0 : index
    %c0_11 = arith.constant 0 : index
    %14 = vector.load %arg14[%c0_10, %c0_11] : memref<8x128xf32, #tpu.memory_space<vmem>>, vector<8x128xf32>
    %15 = arith.truncf %14 : vector<8x128xf32> to vector<8x128xbf16>
    %c0_12 = arith.constant 0 : index
    %c0_13 = arith.constant 0 : index
    %16 = vector.load %arg4[%c0_12, %c0_13] : memref<128x512xbf16, #tpu.memory_space<vmem>>, vector<128x512xbf16>
    %cst_14 = arith.constant dense<0.000000e+00> : vector<8x512xf32>
    %17 = tpu.matmul %15, %16, %cst_14 {dimension_numbers = #tpu.dot_dimension_numbers<[1], [0], [0], [1], [0, 0, 1, 1], [], []>} : vector<8x128xbf16>, vector<128x512xbf16>, vector<8x512xf32> -> vector<8x512xf32>
    %18 = arith.addf %13, %17 : vector<8x512xf32>
    %19 = vector.extract_strided_slice %18 {offsets = [0, 0], sizes = [8, 128], strides = [1, 1]} : vector<8x512xf32> to vector<8x128xf32>
    %20 = arith.negf %19 : vector<8x128xf32>
    %21 = math.exp %20 : vector<8x128xf32>
    %cst_15 = arith.constant 1.000000e+00 : f32
    %22 = vector.broadcast %cst_15 : f32 to vector<8x128xf32>
    %23 = arith.addf %22, %21 : vector<8x128xf32>
    %24 = arith.divf %22, %23 : vector<8x128xf32>
    %25 = vector.extract_strided_slice %18 {offsets = [0, 128], sizes = [8, 128], strides = [1, 1]} : vector<8x512xf32> to vector<8x128xf32>
    %26 = arith.negf %25 : vector<8x128xf32>
    %27 = math.exp %26 : vector<8x128xf32>
    %cst_16 = arith.constant 1.000000e+00 : f32
    %28 = vector.broadcast %cst_16 : f32 to vector<8x128xf32>
    %29 = arith.addf %28, %27 : vector<8x128xf32>
    %30 = arith.divf %28, %29 : vector<8x128xf32>
    %31 = vector.extract_strided_slice %18 {offsets = [0, 256], sizes = [8, 128], strides = [1, 1]} : vector<8x512xf32> to vector<8x128xf32>
    %32 = math.tanh %31 : vector<8x128xf32>
    %33 = vector.extract_strided_slice %18 {offsets = [0, 384], sizes = [8, 128], strides = [1, 1]} : vector<8x512xf32> to vector<8x128xf32>
    %34 = arith.negf %33 : vector<8x128xf32>
    %35 = math.exp %34 : vector<8x128xf32>
    %cst_17 = arith.constant 1.000000e+00 : f32
    %36 = vector.broadcast %cst_17 : f32 to vector<8x128xf32>
    %37 = arith.addf %36, %35 : vector<8x128xf32>
    %38 = arith.divf %36, %37 : vector<8x128xf32>
    %c0_18 = arith.constant 0 : index
    %c0_19 = arith.constant 0 : index
    %39 = vector.load %arg15[%c0_18, %c0_19] : memref<8x128xf32, #tpu.memory_space<vmem>>, vector<8x128xf32>
    %40 = arith.mulf %30, %39 : vector<8x128xf32>
    %41 = arith.mulf %24, %32 : vector<8x128xf32>
    %42 = arith.addf %40, %41 : vector<8x128xf32>
    %43 = math.tanh %42 : vector<8x128xf32>
    %44 = arith.mulf %38, %43 : vector<8x128xf32>
    %45 = arith.index_cast %11 : i32 to index
    %c0_20 = arith.constant 0 : index
    %46 = vector.load %arg2[%45, %c0_20] : memref<64x128xf32, #tpu.memory_space<vmem>>, vector<8x128xf32>
    %47 = arith.mulf %44, %46 : vector<8x128xf32>
    %48 = arith.truncf %47 : vector<8x128xf32> to vector<8x128xbf16>
    %c0_21 = arith.constant 0 : index
    %c0_22 = arith.constant 0 : index
    %49 = vector.load %arg6[%c0_21, %c0_22] : memref<128x128xbf16, #tpu.memory_space<vmem>>, vector<128x128xbf16>
    %cst_23 = arith.constant dense<0.000000e+00> : vector<8x128xf32>
    %50 = tpu.matmul %48, %49, %cst_23 {dimension_numbers = #tpu.dot_dimension_numbers<[1], [0], [0], [1], [0, 0, 1, 1], [], []>} : vector<8x128xbf16>, vector<128x128xbf16>, vector<8x128xf32> -> vector<8x128xf32>
    %c0_24 = arith.constant 0 : index
    %c0_25 = arith.constant 0 : index
    %51 = vector.load %arg8[%c0_24, %c0_25] : memref<1x128xf32, #tpu.memory_space<vmem>>, vector<1x128xf32>
    %52 = vector.broadcast %51 : vector<1x128xf32> to vector<8x128xf32>
    %53 = arith.addf %50, %52 : vector<8x128xf32>
    %c0_26 = arith.constant 0 : index
    %c0_27 = arith.constant 0 : index
    %54 = vector.load %arg15[%c0_26, %c0_27] : memref<8x128xf32, #tpu.memory_space<vmem>>, vector<8x128xf32>
    tpu.vector_store %arg15[%c0_26, %c0_27], %42 {strides = array<i32>} : memref<8x128xf32, #tpu.memory_space<vmem>>, vector<8x128xf32>,
    %c0_28 = arith.constant 0 : index
    %c0_29 = arith.constant 0 : index
    %55 = vector.load %arg14[%c0_28, %c0_29] : memref<8x128xf32, #tpu.memory_space<vmem>>, vector<8x128xf32>
    tpu.vector_store %arg14[%c0_28, %c0_29], %44 {strides = array<i32>} : memref<8x128xf32, #tpu.memory_space<vmem>>, vector<8x128xf32>,
    %56 = arith.index_cast %11 : i32 to index
    %c0_30 = arith.constant 0 : index
    %57 = vector.load %arg13[%56, %c0_30] : memref<64x128xf32, #tpu.memory_space<vmem>>, vector<8x128xf32>
    tpu.vector_store %arg13[%56, %c0_30], %53 {strides = array<i32>} : memref<64x128xf32, #tpu.memory_space<vmem>>, vector<8x128xf32>,
    %c1_i32 = arith.constant 1 : i32
    %c8_i32_31 = arith.constant 8 : i32
    %58 = arith.muli %c1_i32, %c8_i32_31 : i32
    %59 = tpu.assume_multiple %58, 8 : i32
    %60 = arith.index_cast %59 : i32 to index
    %c0_32 = arith.constant 0 : index
    %61 = vector.load %arg12[%60, %c0_32] : memref<64x512xf32, #tpu.memory_space<vmem>>, vector<8x512xf32>
    %c0_33 = arith.constant 0 : index
    %c0_34 = arith.constant 0 : index
    %62 = vector.load %arg14[%c0_33, %c0_34] : memref<8x128xf32, #tpu.memory_space<vmem>>, vector<8x128xf32>
    %63 = arith.truncf %62 : vector<8x128xf32> to vector<8x128xbf16>
    %c0_35 = arith.constant 0 : index
    %c0_36 = arith.constant 0 : index
    %64 = vector.load %arg4[%c0_35, %c0_36] : memref<128x512xbf16, #tpu.memory_space<vmem>>, vector<128x512xbf16>
    %cst_37 = arith.constant dense<0.000000e+00> : vector<8x512xf32>
    %65 = tpu.matmul %63, %64, %cst_37 {dimension_numbers = #tpu.dot_dimension_numbers<[1], [0], [0], [1], [0, 0, 1, 1], [], []>} : vector<8x128xbf16>, vector<128x512xbf16>, vector<8x512xf32> -> vector<8x512xf32>
    %66 = arith.addf %61, %65 : vector<8x512xf32>
    %67 = vector.extract_strided_slice %66 {offsets = [0, 0], sizes = [8, 128], strides = [1, 1]} : vector<8x512xf32> to vector<8x128xf32>
    %68 = arith.negf %67 : vector<8x128xf32>
    %69 = math.exp %68 : vector<8x128xf32>
    %cst_38 = arith.constant 1.000000e+00 : f32
    %70 = vector.broadcast %cst_38 : f32 to vector<8x128xf32>
    %71 = arith.addf %70, %69 : vector<8x128xf32>
    %72 = arith.divf %70, %71 : vector<8x128xf32>
    %73 = vector.extract_strided_slice %66 {offsets = [0, 128], sizes = [8, 128], strides = [1, 1]} : vector<8x512xf32> to vector<8x128xf32>
    %74 = arith.negf %73 : vector<8x128xf32>
    %75 = math.exp %74 : vector<8x128xf32>
    %cst_39 = arith.constant 1.000000e+00 : f32
    %76 = vector.broadcast %cst_39 : f32 to vector<8x128xf32>
    %77 = arith.addf %76, %75 : vector<8x128xf32>
    %78 = arith.divf %76, %77 : vector<8x128xf32>
    %79 = vector.extract_strided_slice %66 {offsets = [0, 256], sizes = [8, 128], strides = [1, 1]} : vector<8x512xf32> to vector<8x128xf32>
    %80 = math.tanh %79 : vector<8x128xf32>
    %81 = vector.extract_strided_slice %66 {offsets = [0, 384], sizes = [8, 128], strides = [1, 1]} : vector<8x512xf32> to vector<8x128xf32>
    %82 = arith.negf %81 : vector<8x128xf32>
    %83 = math.exp %82 : vector<8x128xf32>
    %cst_40 = arith.constant 1.000000e+00 : f32
    %84 = vector.broadcast %cst_40 : f32 to vector<8x128xf32>
    %85 = arith.addf %84, %83 : vector<8x128xf32>
    %86 = arith.divf %84, %85 : vector<8x128xf32>
    %c0_41 = arith.constant 0 : index
    %c0_42 = arith.constant 0 : index
    %87 = vector.load %arg15[%c0_41, %c0_42] : memref<8x128xf32, #tpu.memory_space<vmem>>, vector<8x128xf32>
    %88 = arith.mulf %78, %87 : vector<8x128xf32>
    %89 = arith.mulf %72, %80 : vector<8x128xf32>
    %90 = arith.addf %88, %89 : vector<8x128xf32>
    %91 = math.tanh %90 : vector<8x128xf32>
    %92 = arith.mulf %86, %91 : vector<8x128xf32>
    %93 = arith.index_cast %59 : i32 to index
    %c0_43 = arith.constant 0 : index
    %94 = vector.load %arg2[%93, %c0_43] : memref<64x128xf32, #tpu.memory_space<vmem>>, vector<8x128xf32>
    %95 = arith.mulf %92, %94 : vector<8x128xf32>
    %96 = arith.truncf %95 : vector<8x128xf32> to vector<8x128xbf16>
    %c0_44 = arith.constant 0 : index
    %c0_45 = arith.constant 0 : index
    %97 = vector.load %arg6[%c0_44, %c0_45] : memref<128x128xbf16, #tpu.memory_space<vmem>>, vector<128x128xbf16>
    %cst_46 = arith.constant dense<0.000000e+00> : vector<8x128xf32>
    %98 = tpu.matmul %96, %97, %cst_46 {dimension_numbers = #tpu.dot_dimension_numbers<[1], [0], [0], [1], [0, 0, 1, 1], [], []>} : vector<8x128xbf16>, vector<128x128xbf16>, vector<8x128xf32> -> vector<8x128xf32>
    %c0_47 = arith.constant 0 : index
    %c0_48 = arith.constant 0 : index
    %99 = vector.load %arg8[%c0_47, %c0_48] : memref<1x128xf32, #tpu.memory_space<vmem>>, vector<1x128xf32>
    %100 = vector.broadcast %99 : vector<1x128xf32> to vector<8x128xf32>
    %101 = arith.addf %98, %100 : vector<8x128xf32>
    %c0_49 = arith.constant 0 : index
    %c0_50 = arith.constant 0 : index
    %102 = vector.load %arg15[%c0_49, %c0_50] : memref<8x128xf32, #tpu.memory_space<vmem>>, vector<8x128xf32>
    tpu.vector_store %arg15[%c0_49, %c0_50], %90 {strides = array<i32>} : memref<8x128xf32, #tpu.memory_space<vmem>>, vector<8x128xf32>,
    %c0_51 = arith.constant 0 : index
    %c0_52 = arith.constant 0 : index
    %103 = vector.load %arg14[%c0_51, %c0_52] : memref<8x128xf32, #tpu.memory_space<vmem>>, vector<8x128xf32>
    tpu.vector_store %arg14[%c0_51, %c0_52], %92 {strides = array<i32>} : memref<8x128xf32, #tpu.memory_space<vmem>>, vector<8x128xf32>,
    %104 = arith.index_cast %59 : i32 to index
    %c0_53 = arith.constant 0 : index
    %105 = vector.load %arg13[%104, %c0_53] : memref<64x128xf32, #tpu.memory_space<vmem>>, vector<8x128xf32>
    tpu.vector_store %arg13[%104, %c0_53], %101 {strides = array<i32>} : memref<64x128xf32, #tpu.memory_space<vmem>>, vector<8x128xf32>,
    %c2_i32 = arith.constant 2 : i32
    %c8_i32_54 = arith.constant 8 : i32
    %106 = arith.muli %c2_i32, %c8_i32_54 : i32
    %107 = tpu.assume_multiple %106, 8 : i32
    %108 = arith.index_cast %107 : i32 to index
    %c0_55 = arith.constant 0 : index
    %109 = vector.load %arg12[%108, %c0_55] : memref<64x512xf32, #tpu.memory_space<vmem>>, vector<8x512xf32>
    %c0_56 = arith.constant 0 : index
    %c0_57 = arith.constant 0 : index
    %110 = vector.load %arg14[%c0_56, %c0_57] : memref<8x128xf32, #tpu.memory_space<vmem>>, vector<8x128xf32>
    %111 = arith.truncf %110 : vector<8x128xf32> to vector<8x128xbf16>
    %c0_58 = arith.constant 0 : index
    %c0_59 = arith.constant 0 : index
    %112 = vector.load %arg4[%c0_58, %c0_59] : memref<128x512xbf16, #tpu.memory_space<vmem>>, vector<128x512xbf16>
    %cst_60 = arith.constant dense<0.000000e+00> : vector<8x512xf32>
    %113 = tpu.matmul %111, %112, %cst_60 {dimension_numbers = #tpu.dot_dimension_numbers<[1], [0], [0], [1], [0, 0, 1, 1], [], []>} : vector<8x128xbf16>, vector<128x512xbf16>, vector<8x512xf32> -> vector<8x512xf32>
    %114 = arith.addf %109, %113 : vector<8x512xf32>
    %115 = vector.extract_strided_slice %114 {offsets = [0, 0], sizes = [8, 128], strides = [1, 1]} : vector<8x512xf32> to vector<8x128xf32>
    %116 = arith.negf %115 : vector<8x128xf32>
    %117 = math.exp %116 : vector<8x128xf32>
    %cst_61 = arith.constant 1.000000e+00 : f32
    %118 = vector.broadcast %cst_61 : f32 to vector<8x128xf32>
    %119 = arith.addf %118, %117 : vector<8x128xf32>
    %120 = arith.divf %118, %119 : vector<8x128xf32>
    %121 = vector.extract_strided_slice %114 {offsets = [0, 128], sizes = [8, 128], strides = [1, 1]} : vector<8x512xf32> to vector<8x128xf32>
    %122 = arith.negf %121 : vector<8x128xf32>
    %123 = math.exp %122 : vector<8x128xf32>
    %cst_62 = arith.constant 1.000000e+00 : f32
    %124 = vector.broadcast %cst_62 : f32 to vector<8x128xf32>
    %125 = arith.addf %124, %123 : vector<8x128xf32>
    %126 = arith.divf %124, %125 : vector<8x128xf32>
    %127 = vector.extract_strided_slice %114 {offsets = [0, 256], sizes = [8, 128], strides = [1, 1]} : vector<8x512xf32> to vector<8x128xf32>
    %128 = math.tanh %127 : vector<8x128xf32>
    %129 = vector.extract_strided_slice %114 {offsets = [0, 384], sizes = [8, 128], strides = [1, 1]} : vector<8x512xf32> to vector<8x128xf32>
    %130 = arith.negf %129 : vector<8x128xf32>
    %131 = math.exp %130 : vector<8x128xf32>
    %cst_63 = arith.constant 1.000000e+00 : f32
    %132 = vector.broadcast %cst_63 : f32 to vector<8x128xf32>
    %133 = arith.addf %132, %131 : vector<8x128xf32>
    %134 = arith.divf %132, %133 : vector<8x128xf32>
    %c0_64 = arith.constant 0 : index
    %c0_65 = arith.constant 0 : index
    %135 = vector.load %arg15[%c0_64, %c0_65] : memref<8x128xf32, #tpu.memory_space<vmem>>, vector<8x128xf32>
    %136 = arith.mulf %126, %135 : vector<8x128xf32>
    %137 = arith.mulf %120, %128 : vector<8x128xf32>
    %138 = arith.addf %136, %137 : vector<8x128xf32>
    %139 = math.tanh %138 : vector<8x128xf32>
    %140 = arith.mulf %134, %139 : vector<8x128xf32>
    %141 = arith.index_cast %107 : i32 to index
    %c0_66 = arith.constant 0 : index
    %142 = vector.load %arg2[%141, %c0_66] : memref<64x128xf32, #tpu.memory_space<vmem>>, vector<8x128xf32>
    %143 = arith.mulf %140, %142 : vector<8x128xf32>
    %144 = arith.truncf %143 : vector<8x128xf32> to vector<8x128xbf16>
    %c0_67 = arith.constant 0 : index
    %c0_68 = arith.constant 0 : index
    %145 = vector.load %arg6[%c0_67, %c0_68] : memref<128x128xbf16, #tpu.memory_space<vmem>>, vector<128x128xbf16>
    %cst_69 = arith.constant dense<0.000000e+00> : vector<8x128xf32>
    %146 = tpu.matmul %144, %145, %cst_69 {dimension_numbers = #tpu.dot_dimension_numbers<[1], [0], [0], [1], [0, 0, 1, 1], [], []>} : vector<8x128xbf16>, vector<128x128xbf16>, vector<8x128xf32> -> vector<8x128xf32>
    %c0_70 = arith.constant 0 : index
    %c0_71 = arith.constant 0 : index
    %147 = vector.load %arg8[%c0_70, %c0_71] : memref<1x128xf32, #tpu.memory_space<vmem>>, vector<1x128xf32>
    %148 = vector.broadcast %147 : vector<1x128xf32> to vector<8x128xf32>
    %149 = arith.addf %146, %148 : vector<8x128xf32>
    %c0_72 = arith.constant 0 : index
    %c0_73 = arith.constant 0 : index
    %150 = vector.load %arg15[%c0_72, %c0_73] : memref<8x128xf32, #tpu.memory_space<vmem>>, vector<8x128xf32>
    tpu.vector_store %arg15[%c0_72, %c0_73], %138 {strides = array<i32>} : memref<8x128xf32, #tpu.memory_space<vmem>>, vector<8x128xf32>,
    %c0_74 = arith.constant 0 : index
    %c0_75 = arith.constant 0 : index
    %151 = vector.load %arg14[%c0_74, %c0_75] : memref<8x128xf32, #tpu.memory_space<vmem>>, vector<8x128xf32>
    tpu.vector_store %arg14[%c0_74, %c0_75], %140 {strides = array<i32>} : memref<8x128xf32, #tpu.memory_space<vmem>>, vector<8x128xf32>,
    %152 = arith.index_cast %107 : i32 to index
    %c0_76 = arith.constant 0 : index
    %153 = vector.load %arg13[%152, %c0_76] : memref<64x128xf32, #tpu.memory_space<vmem>>, vector<8x128xf32>
    tpu.vector_store %arg13[%152, %c0_76], %149 {strides = array<i32>} : memref<64x128xf32, #tpu.memory_space<vmem>>, vector<8x128xf32>,
    %c3_i32 = arith.constant 3 : i32
    %c8_i32_77 = arith.constant 8 : i32
    %154 = arith.muli %c3_i32, %c8_i32_77 : i32
    %155 = tpu.assume_multiple %154, 8 : i32
    %156 = arith.index_cast %155 : i32 to index
    %c0_78 = arith.constant 0 : index
    %157 = vector.load %arg12[%156, %c0_78] : memref<64x512xf32, #tpu.memory_space<vmem>>, vector<8x512xf32>
    %c0_79 = arith.constant 0 : index
    %c0_80 = arith.constant 0 : index
    %158 = vector.load %arg14[%c0_79, %c0_80] : memref<8x128xf32, #tpu.memory_space<vmem>>, vector<8x128xf32>
    %159 = arith.truncf %158 : vector<8x128xf32> to vector<8x128xbf16>
    %c0_81 = arith.constant 0 : index
    %c0_82 = arith.constant 0 : index
    %160 = vector.load %arg4[%c0_81, %c0_82] : memref<128x512xbf16, #tpu.memory_space<vmem>>, vector<128x512xbf16>
    %cst_83 = arith.constant dense<0.000000e+00> : vector<8x512xf32>
    %161 = tpu.matmul %159, %160, %cst_83 {dimension_numbers = #tpu.dot_dimension_numbers<[1], [0], [0], [1], [0, 0, 1, 1], [], []>} : vector<8x128xbf16>, vector<128x512xbf16>, vector<8x512xf32> -> vector<8x512xf32>
    %162 = arith.addf %157, %161 : vector<8x512xf32>
    %163 = vector.extract_strided_slice %162 {offsets = [0, 0], sizes = [8, 128], strides = [1, 1]} : vector<8x512xf32> to vector<8x128xf32>
    %164 = arith.negf %163 : vector<8x128xf32>
    %165 = math.exp %164 : vector<8x128xf32>
    %cst_84 = arith.constant 1.000000e+00 : f32
    %166 = vector.broadcast %cst_84 : f32 to vector<8x128xf32>
    %167 = arith.addf %166, %165 : vector<8x128xf32>
    %168 = arith.divf %166, %167 : vector<8x128xf32>
    %169 = vector.extract_strided_slice %162 {offsets = [0, 128], sizes = [8, 128], strides = [1, 1]} : vector<8x512xf32> to vector<8x128xf32>
    %170 = arith.negf %169 : vector<8x128xf32>
    %171 = math.exp %170 : vector<8x128xf32>
    %cst_85 = arith.constant 1.000000e+00 : f32
    %172 = vector.broadcast %cst_85 : f32 to vector<8x128xf32>
    %173 = arith.addf %172, %171 : vector<8x128xf32>
    %174 = arith.divf %172, %173 : vector<8x128xf32>
    %175 = vector.extract_strided_slice %162 {offsets = [0, 256], sizes = [8, 128], strides = [1, 1]} : vector<8x512xf32> to vector<8x128xf32>
    %176 = math.tanh %175 : vector<8x128xf32>
    %177 = vector.extract_strided_slice %162 {offsets = [0, 384], sizes = [8, 128], strides = [1, 1]} : vector<8x512xf32> to vector<8x128xf32>
    %178 = arith.negf %177 : vector<8x128xf32>
    %179 = math.exp %178 : vector<8x128xf32>
    %cst_86 = arith.constant 1.000000e+00 : f32
    %180 = vector.broadcast %cst_86 : f32 to vector<8x128xf32>
    %181 = arith.addf %180, %179 : vector<8x128xf32>
    %182 = arith.divf %180, %181 : vector<8x128xf32>
    %c0_87 = arith.constant 0 : index
    %c0_88 = arith.constant 0 : index
    %183 = vector.load %arg15[%c0_87, %c0_88] : memref<8x128xf32, #tpu.memory_space<vmem>>, vector<8x128xf32>
    %184 = arith.mulf %174, %183 : vector<8x128xf32>
    %185 = arith.mulf %168, %176 : vector<8x128xf32>
    %186 = arith.addf %184, %185 : vector<8x128xf32>
    %187 = math.tanh %186 : vector<8x128xf32>
    %188 = arith.mulf %182, %187 : vector<8x128xf32>
    %189 = arith.index_cast %155 : i32 to index
    %c0_89 = arith.constant 0 : index
    %190 = vector.load %arg2[%189, %c0_89] : memref<64x128xf32, #tpu.memory_space<vmem>>, vector<8x128xf32>
    %191 = arith.mulf %188, %190 : vector<8x128xf32>
    %192 = arith.truncf %191 : vector<8x128xf32> to vector<8x128xbf16>
    %c0_90 = arith.constant 0 : index
    %c0_91 = arith.constant 0 : index
    %193 = vector.load %arg6[%c0_90, %c0_91] : memref<128x128xbf16, #tpu.memory_space<vmem>>, vector<128x128xbf16>
    %cst_92 = arith.constant dense<0.000000e+00> : vector<8x128xf32>
    %194 = tpu.matmul %192, %193, %cst_92 {dimension_numbers = #tpu.dot_dimension_numbers<[1], [0], [0], [1], [0, 0, 1, 1], [], []>} : vector<8x128xbf16>, vector<128x128xbf16>, vector<8x128xf32> -> vector<8x128xf32>
    %c0_93 = arith.constant 0 : index
    %c0_94 = arith.constant 0 : index
    %195 = vector.load %arg8[%c0_93, %c0_94] : memref<1x128xf32, #tpu.memory_space<vmem>>, vector<1x128xf32>
    %196 = vector.broadcast %195 : vector<1x128xf32> to vector<8x128xf32>
    %197 = arith.addf %194, %196 : vector<8x128xf32>
    %c0_95 = arith.constant 0 : index
    %c0_96 = arith.constant 0 : index
    %198 = vector.load %arg15[%c0_95, %c0_96] : memref<8x128xf32, #tpu.memory_space<vmem>>, vector<8x128xf32>
    tpu.vector_store %arg15[%c0_95, %c0_96], %186 {strides = array<i32>} : memref<8x128xf32, #tpu.memory_space<vmem>>, vector<8x128xf32>,
    %c0_97 = arith.constant 0 : index
    %c0_98 = arith.constant 0 : index
    %199 = vector.load %arg14[%c0_97, %c0_98] : memref<8x128xf32, #tpu.memory_space<vmem>>, vector<8x128xf32>
    tpu.vector_store %arg14[%c0_97, %c0_98], %188 {strides = array<i32>} : memref<8x128xf32, #tpu.memory_space<vmem>>, vector<8x128xf32>,
    %200 = arith.index_cast %155 : i32 to index
    %c0_99 = arith.constant 0 : index
    %201 = vector.load %arg13[%200, %c0_99] : memref<64x128xf32, #tpu.memory_space<vmem>>, vector<8x128xf32>
    tpu.vector_store %arg13[%200, %c0_99], %197 {strides = array<i32>} : memref<64x128xf32, #tpu.memory_space<vmem>>, vector<8x128xf32>,
    %c4_i32 = arith.constant 4 : i32
    %c8_i32_100 = arith.constant 8 : i32
    %202 = arith.muli %c4_i32, %c8_i32_100 : i32
    %203 = tpu.assume_multiple %202, 8 : i32
    %204 = arith.index_cast %203 : i32 to index
    %c0_101 = arith.constant 0 : index
    %205 = vector.load %arg12[%204, %c0_101] : memref<64x512xf32, #tpu.memory_space<vmem>>, vector<8x512xf32>
    %c0_102 = arith.constant 0 : index
    %c0_103 = arith.constant 0 : index
    %206 = vector.load %arg14[%c0_102, %c0_103] : memref<8x128xf32, #tpu.memory_space<vmem>>, vector<8x128xf32>
    %207 = arith.truncf %206 : vector<8x128xf32> to vector<8x128xbf16>
    %c0_104 = arith.constant 0 : index
    %c0_105 = arith.constant 0 : index
    %208 = vector.load %arg4[%c0_104, %c0_105] : memref<128x512xbf16, #tpu.memory_space<vmem>>, vector<128x512xbf16>
    %cst_106 = arith.constant dense<0.000000e+00> : vector<8x512xf32>
    %209 = tpu.matmul %207, %208, %cst_106 {dimension_numbers = #tpu.dot_dimension_numbers<[1], [0], [0], [1], [0, 0, 1, 1], [], []>} : vector<8x128xbf16>, vector<128x512xbf16>, vector<8x512xf32> -> vector<8x512xf32>
    %210 = arith.addf %205, %209 : vector<8x512xf32>
    %211 = vector.extract_strided_slice %210 {offsets = [0, 0], sizes = [8, 128], strides = [1, 1]} : vector<8x512xf32> to vector<8x128xf32>
    %212 = arith.negf %211 : vector<8x128xf32>
    %213 = math.exp %212 : vector<8x128xf32>
    %cst_107 = arith.constant 1.000000e+00 : f32
    %214 = vector.broadcast %cst_107 : f32 to vector<8x128xf32>
    %215 = arith.addf %214, %213 : vector<8x128xf32>
    %216 = arith.divf %214, %215 : vector<8x128xf32>
    %217 = vector.extract_strided_slice %210 {offsets = [0, 128], sizes = [8, 128], strides = [1, 1]} : vector<8x512xf32> to vector<8x128xf32>
    %218 = arith.negf %217 : vector<8x128xf32>
    %219 = math.exp %218 : vector<8x128xf32>
    %cst_108 = arith.constant 1.000000e+00 : f32
    %220 = vector.broadcast %cst_108 : f32 to vector<8x128xf32>
    %221 = arith.addf %220, %219 : vector<8x128xf32>
    %222 = arith.divf %220, %221 : vector<8x128xf32>
    %223 = vector.extract_strided_slice %210 {offsets = [0, 256], sizes = [8, 128], strides = [1, 1]} : vector<8x512xf32> to vector<8x128xf32>
    %224 = math.tanh %223 : vector<8x128xf32>
    %225 = vector.extract_strided_slice %210 {offsets = [0, 384], sizes = [8, 128], strides = [1, 1]} : vector<8x512xf32> to vector<8x128xf32>
    %226 = arith.negf %225 : vector<8x128xf32>
    %227 = math.exp %226 : vector<8x128xf32>
    %cst_109 = arith.constant 1.000000e+00 : f32
    %228 = vector.broadcast %cst_109 : f32 to vector<8x128xf32>
    %229 = arith.addf %228, %227 : vector<8x128xf32>
    %230 = arith.divf %228, %229 : vector<8x128xf32>
    %c0_110 = arith.constant 0 : index
    %c0_111 = arith.constant 0 : index
    %231 = vector.load %arg15[%c0_110, %c0_111] : memref<8x128xf32, #tpu.memory_space<vmem>>, vector<8x128xf32>
    %232 = arith.mulf %222, %231 : vector<8x128xf32>
    %233 = arith.mulf %216, %224 : vector<8x128xf32>
    %234 = arith.addf %232, %233 : vector<8x128xf32>
    %235 = math.tanh %234 : vector<8x128xf32>
    %236 = arith.mulf %230, %235 : vector<8x128xf32>
    %237 = arith.index_cast %203 : i32 to index
    %c0_112 = arith.constant 0 : index
    %238 = vector.load %arg2[%237, %c0_112] : memref<64x128xf32, #tpu.memory_space<vmem>>, vector<8x128xf32>
    %239 = arith.mulf %236, %238 : vector<8x128xf32>
    %240 = arith.truncf %239 : vector<8x128xf32> to vector<8x128xbf16>
    %c0_113 = arith.constant 0 : index
    %c0_114 = arith.constant 0 : index
    %241 = vector.load %arg6[%c0_113, %c0_114] : memref<128x128xbf16, #tpu.memory_space<vmem>>, vector<128x128xbf16>
    %cst_115 = arith.constant dense<0.000000e+00> : vector<8x128xf32>
    %242 = tpu.matmul %240, %241, %cst_115 {dimension_numbers = #tpu.dot_dimension_numbers<[1], [0], [0], [1], [0, 0, 1, 1], [], []>} : vector<8x128xbf16>, vector<128x128xbf16>, vector<8x128xf32> -> vector<8x128xf32>
    %c0_116 = arith.constant 0 : index
    %c0_117 = arith.constant 0 : index
    %243 = vector.load %arg8[%c0_116, %c0_117] : memref<1x128xf32, #tpu.memory_space<vmem>>, vector<1x128xf32>
    %244 = vector.broadcast %243 : vector<1x128xf32> to vector<8x128xf32>
    %245 = arith.addf %242, %244 : vector<8x128xf32>
    %c0_118 = arith.constant 0 : index
    %c0_119 = arith.constant 0 : index
    %246 = vector.load %arg15[%c0_118, %c0_119] : memref<8x128xf32, #tpu.memory_space<vmem>>, vector<8x128xf32>
    tpu.vector_store %arg15[%c0_118, %c0_119], %234 {strides = array<i32>} : memref<8x128xf32, #tpu.memory_space<vmem>>, vector<8x128xf32>,
    %c0_120 = arith.constant 0 : index
    %c0_121 = arith.constant 0 : index
    %247 = vector.load %arg14[%c0_120, %c0_121] : memref<8x128xf32, #tpu.memory_space<vmem>>, vector<8x128xf32>
    tpu.vector_store %arg14[%c0_120, %c0_121], %236 {strides = array<i32>} : memref<8x128xf32, #tpu.memory_space<vmem>>, vector<8x128xf32>,
    %248 = arith.index_cast %203 : i32 to index
    %c0_122 = arith.constant 0 : index
    %249 = vector.load %arg13[%248, %c0_122] : memref<64x128xf32, #tpu.memory_space<vmem>>, vector<8x128xf32>
    tpu.vector_store %arg13[%248, %c0_122], %245 {strides = array<i32>} : memref<64x128xf32, #tpu.memory_space<vmem>>, vector<8x128xf32>,
    %c5_i32 = arith.constant 5 : i32
    %c8_i32_123 = arith.constant 8 : i32
    %250 = arith.muli %c5_i32, %c8_i32_123 : i32
    %251 = tpu.assume_multiple %250, 8 : i32
    %252 = arith.index_cast %251 : i32 to index
    %c0_124 = arith.constant 0 : index
    %253 = vector.load %arg12[%252, %c0_124] : memref<64x512xf32, #tpu.memory_space<vmem>>, vector<8x512xf32>
    %c0_125 = arith.constant 0 : index
    %c0_126 = arith.constant 0 : index
    %254 = vector.load %arg14[%c0_125, %c0_126] : memref<8x128xf32, #tpu.memory_space<vmem>>, vector<8x128xf32>
    %255 = arith.truncf %254 : vector<8x128xf32> to vector<8x128xbf16>
    %c0_127 = arith.constant 0 : index
    %c0_128 = arith.constant 0 : index
    %256 = vector.load %arg4[%c0_127, %c0_128] : memref<128x512xbf16, #tpu.memory_space<vmem>>, vector<128x512xbf16>
    %cst_129 = arith.constant dense<0.000000e+00> : vector<8x512xf32>
    %257 = tpu.matmul %255, %256, %cst_129 {dimension_numbers = #tpu.dot_dimension_numbers<[1], [0], [0], [1], [0, 0, 1, 1], [], []>} : vector<8x128xbf16>, vector<128x512xbf16>, vector<8x512xf32> -> vector<8x512xf32>
    %258 = arith.addf %253, %257 : vector<8x512xf32>
    %259 = vector.extract_strided_slice %258 {offsets = [0, 0], sizes = [8, 128], strides = [1, 1]} : vector<8x512xf32> to vector<8x128xf32>
    %260 = arith.negf %259 : vector<8x128xf32>
    %261 = math.exp %260 : vector<8x128xf32>
    %cst_130 = arith.constant 1.000000e+00 : f32
    %262 = vector.broadcast %cst_130 : f32 to vector<8x128xf32>
    %263 = arith.addf %262, %261 : vector<8x128xf32>
    %264 = arith.divf %262, %263 : vector<8x128xf32>
    %265 = vector.extract_strided_slice %258 {offsets = [0, 128], sizes = [8, 128], strides = [1, 1]} : vector<8x512xf32> to vector<8x128xf32>
    %266 = arith.negf %265 : vector<8x128xf32>
    %267 = math.exp %266 : vector<8x128xf32>
    %cst_131 = arith.constant 1.000000e+00 : f32
    %268 = vector.broadcast %cst_131 : f32 to vector<8x128xf32>
    %269 = arith.addf %268, %267 : vector<8x128xf32>
    %270 = arith.divf %268, %269 : vector<8x128xf32>
    %271 = vector.extract_strided_slice %258 {offsets = [0, 256], sizes = [8, 128], strides = [1, 1]} : vector<8x512xf32> to vector<8x128xf32>
    %272 = math.tanh %271 : vector<8x128xf32>
    %273 = vector.extract_strided_slice %258 {offsets = [0, 384], sizes = [8, 128], strides = [1, 1]} : vector<8x512xf32> to vector<8x128xf32>
    %274 = arith.negf %273 : vector<8x128xf32>
    %275 = math.exp %274 : vector<8x128xf32>
    %cst_132 = arith.constant 1.000000e+00 : f32
    %276 = vector.broadcast %cst_132 : f32 to vector<8x128xf32>
    %277 = arith.addf %276, %275 : vector<8x128xf32>
    %278 = arith.divf %276, %277 : vector<8x128xf32>
    %c0_133 = arith.constant 0 : index
    %c0_134 = arith.constant 0 : index
    %279 = vector.load %arg15[%c0_133, %c0_134] : memref<8x128xf32, #tpu.memory_space<vmem>>, vector<8x128xf32>
    %280 = arith.mulf %270, %279 : vector<8x128xf32>
    %281 = arith.mulf %264, %272 : vector<8x128xf32>
    %282 = arith.addf %280, %281 : vector<8x128xf32>
    %283 = math.tanh %282 : vector<8x128xf32>
    %284 = arith.mulf %278, %283 : vector<8x128xf32>
    %285 = arith.index_cast %251 : i32 to index
    %c0_135 = arith.constant 0 : index
    %286 = vector.load %arg2[%285, %c0_135] : memref<64x128xf32, #tpu.memory_space<vmem>>, vector<8x128xf32>
    %287 = arith.mulf %284, %286 : vector<8x128xf32>
    %288 = arith.truncf %287 : vector<8x128xf32> to vector<8x128xbf16>
    %c0_136 = arith.constant 0 : index
    %c0_137 = arith.constant 0 : index
    %289 = vector.load %arg6[%c0_136, %c0_137] : memref<128x128xbf16, #tpu.memory_space<vmem>>, vector<128x128xbf16>
    %cst_138 = arith.constant dense<0.000000e+00> : vector<8x128xf32>
    %290 = tpu.matmul %288, %289, %cst_138 {dimension_numbers = #tpu.dot_dimension_numbers<[1], [0], [0], [1], [0, 0, 1, 1], [], []>} : vector<8x128xbf16>, vector<128x128xbf16>, vector<8x128xf32> -> vector<8x128xf32>
    %c0_139 = arith.constant 0 : index
    %c0_140 = arith.constant 0 : index
    %291 = vector.load %arg8[%c0_139, %c0_140] : memref<1x128xf32, #tpu.memory_space<vmem>>, vector<1x128xf32>
    %292 = vector.broadcast %291 : vector<1x128xf32> to vector<8x128xf32>
    %293 = arith.addf %290, %292 : vector<8x128xf32>
    %c0_141 = arith.constant 0 : index
    %c0_142 = arith.constant 0 : index
    %294 = vector.load %arg15[%c0_141, %c0_142] : memref<8x128xf32, #tpu.memory_space<vmem>>, vector<8x128xf32>
    tpu.vector_store %arg15[%c0_141, %c0_142], %282 {strides = array<i32>} : memref<8x128xf32, #tpu.memory_space<vmem>>, vector<8x128xf32>,
    %c0_143 = arith.constant 0 : index
    %c0_144 = arith.constant 0 : index
    %295 = vector.load %arg14[%c0_143, %c0_144] : memref<8x128xf32, #tpu.memory_space<vmem>>, vector<8x128xf32>
    tpu.vector_store %arg14[%c0_143, %c0_144], %284 {strides = array<i32>} : memref<8x128xf32, #tpu.memory_space<vmem>>, vector<8x128xf32>,
    %296 = arith.index_cast %251 : i32 to index
    %c0_145 = arith.constant 0 : index
    %297 = vector.load %arg13[%296, %c0_145] : memref<64x128xf32, #tpu.memory_space<vmem>>, vector<8x128xf32>
    tpu.vector_store %arg13[%296, %c0_145], %293 {strides = array<i32>} : memref<64x128xf32, #tpu.memory_space<vmem>>, vector<8x128xf32>,
    %c6_i32 = arith.constant 6 : i32
    %c8_i32_146 = arith.constant 8 : i32
    %298 = arith.muli %c6_i32, %c8_i32_146 : i32
    %299 = tpu.assume_multiple %298, 8 : i32
    %300 = arith.index_cast %299 : i32 to index
    %c0_147 = arith.constant 0 : index
    %301 = vector.load %arg12[%300, %c0_147] : memref<64x512xf32, #tpu.memory_space<vmem>>, vector<8x512xf32>
    %c0_148 = arith.constant 0 : index
    %c0_149 = arith.constant 0 : index
    %302 = vector.load %arg14[%c0_148, %c0_149] : memref<8x128xf32, #tpu.memory_space<vmem>>, vector<8x128xf32>
    %303 = arith.truncf %302 : vector<8x128xf32> to vector<8x128xbf16>
    %c0_150 = arith.constant 0 : index
    %c0_151 = arith.constant 0 : index
    %304 = vector.load %arg4[%c0_150, %c0_151] : memref<128x512xbf16, #tpu.memory_space<vmem>>, vector<128x512xbf16>
    %cst_152 = arith.constant dense<0.000000e+00> : vector<8x512xf32>
    %305 = tpu.matmul %303, %304, %cst_152 {dimension_numbers = #tpu.dot_dimension_numbers<[1], [0], [0], [1], [0, 0, 1, 1], [], []>} : vector<8x128xbf16>, vector<128x512xbf16>, vector<8x512xf32> -> vector<8x512xf32>
    %306 = arith.addf %301, %305 : vector<8x512xf32>
    %307 = vector.extract_strided_slice %306 {offsets = [0, 0], sizes = [8, 128], strides = [1, 1]} : vector<8x512xf32> to vector<8x128xf32>
    %308 = arith.negf %307 : vector<8x128xf32>
    %309 = math.exp %308 : vector<8x128xf32>
    %cst_153 = arith.constant 1.000000e+00 : f32
    %310 = vector.broadcast %cst_153 : f32 to vector<8x128xf32>
    %311 = arith.addf %310, %309 : vector<8x128xf32>
    %312 = arith.divf %310, %311 : vector<8x128xf32>
    %313 = vector.extract_strided_slice %306 {offsets = [0, 128], sizes = [8, 128], strides = [1, 1]} : vector<8x512xf32> to vector<8x128xf32>
    %314 = arith.negf %313 : vector<8x128xf32>
    %315 = math.exp %314 : vector<8x128xf32>
    %cst_154 = arith.constant 1.000000e+00 : f32
    %316 = vector.broadcast %cst_154 : f32 to vector<8x128xf32>
    %317 = arith.addf %316, %315 : vector<8x128xf32>
    %318 = arith.divf %316, %317 : vector<8x128xf32>
    %319 = vector.extract_strided_slice %306 {offsets = [0, 256], sizes = [8, 128], strides = [1, 1]} : vector<8x512xf32> to vector<8x128xf32>
    %320 = math.tanh %319 : vector<8x128xf32>
    %321 = vector.extract_strided_slice %306 {offsets = [0, 384], sizes = [8, 128], strides = [1, 1]} : vector<8x512xf32> to vector<8x128xf32>
    %322 = arith.negf %321 : vector<8x128xf32>
    %323 = math.exp %322 : vector<8x128xf32>
    %cst_155 = arith.constant 1.000000e+00 : f32
    %324 = vector.broadcast %cst_155 : f32 to vector<8x128xf32>
    %325 = arith.addf %324, %323 : vector<8x128xf32>
    %326 = arith.divf %324, %325 : vector<8x128xf32>
    %c0_156 = arith.constant 0 : index
    %c0_157 = arith.constant 0 : index
    %327 = vector.load %arg15[%c0_156, %c0_157] : memref<8x128xf32, #tpu.memory_space<vmem>>, vector<8x128xf32>
    %328 = arith.mulf %318, %327 : vector<8x128xf32>
    %329 = arith.mulf %312, %320 : vector<8x128xf32>
    %330 = arith.addf %328, %329 : vector<8x128xf32>
    %331 = math.tanh %330 : vector<8x128xf32>
    %332 = arith.mulf %326, %331 : vector<8x128xf32>
    %333 = arith.index_cast %299 : i32 to index
    %c0_158 = arith.constant 0 : index
    %334 = vector.load %arg2[%333, %c0_158] : memref<64x128xf32, #tpu.memory_space<vmem>>, vector<8x128xf32>
    %335 = arith.mulf %332, %334 : vector<8x128xf32>
    %336 = arith.truncf %335 : vector<8x128xf32> to vector<8x128xbf16>
    %c0_159 = arith.constant 0 : index
    %c0_160 = arith.constant 0 : index
    %337 = vector.load %arg6[%c0_159, %c0_160] : memref<128x128xbf16, #tpu.memory_space<vmem>>, vector<128x128xbf16>
    %cst_161 = arith.constant dense<0.000000e+00> : vector<8x128xf32>
    %338 = tpu.matmul %336, %337, %cst_161 {dimension_numbers = #tpu.dot_dimension_numbers<[1], [0], [0], [1], [0, 0, 1, 1], [], []>} : vector<8x128xbf16>, vector<128x128xbf16>, vector<8x128xf32> -> vector<8x128xf32>
    %c0_162 = arith.constant 0 : index
    %c0_163 = arith.constant 0 : index
    %339 = vector.load %arg8[%c0_162, %c0_163] : memref<1x128xf32, #tpu.memory_space<vmem>>, vector<1x128xf32>
    %340 = vector.broadcast %339 : vector<1x128xf32> to vector<8x128xf32>
    %341 = arith.addf %338, %340 : vector<8x128xf32>
    %c0_164 = arith.constant 0 : index
    %c0_165 = arith.constant 0 : index
    %342 = vector.load %arg15[%c0_164, %c0_165] : memref<8x128xf32, #tpu.memory_space<vmem>>, vector<8x128xf32>
    tpu.vector_store %arg15[%c0_164, %c0_165], %330 {strides = array<i32>} : memref<8x128xf32, #tpu.memory_space<vmem>>, vector<8x128xf32>,
    %c0_166 = arith.constant 0 : index
    %c0_167 = arith.constant 0 : index
    %343 = vector.load %arg14[%c0_166, %c0_167] : memref<8x128xf32, #tpu.memory_space<vmem>>, vector<8x128xf32>
    tpu.vector_store %arg14[%c0_166, %c0_167], %332 {strides = array<i32>} : memref<8x128xf32, #tpu.memory_space<vmem>>, vector<8x128xf32>,
    %344 = arith.index_cast %299 : i32 to index
    %c0_168 = arith.constant 0 : index
    %345 = vector.load %arg13[%344, %c0_168] : memref<64x128xf32, #tpu.memory_space<vmem>>, vector<8x128xf32>
    tpu.vector_store %arg13[%344, %c0_168], %341 {strides = array<i32>} : memref<64x128xf32, #tpu.memory_space<vmem>>, vector<8x128xf32>,
    %c7_i32 = arith.constant 7 : i32
    %c8_i32_169 = arith.constant 8 : i32
    %346 = arith.muli %c7_i32, %c8_i32_169 : i32
    %347 = tpu.assume_multiple %346, 8 : i32
    %348 = arith.index_cast %347 : i32 to index
    %c0_170 = arith.constant 0 : index
    %349 = vector.load %arg12[%348, %c0_170] : memref<64x512xf32, #tpu.memory_space<vmem>>, vector<8x512xf32>
    %c0_171 = arith.constant 0 : index
    %c0_172 = arith.constant 0 : index
    %350 = vector.load %arg14[%c0_171, %c0_172] : memref<8x128xf32, #tpu.memory_space<vmem>>, vector<8x128xf32>
    %351 = arith.truncf %350 : vector<8x128xf32> to vector<8x128xbf16>
    %c0_173 = arith.constant 0 : index
    %c0_174 = arith.constant 0 : index
    %352 = vector.load %arg4[%c0_173, %c0_174] : memref<128x512xbf16, #tpu.memory_space<vmem>>, vector<128x512xbf16>
    %cst_175 = arith.constant dense<0.000000e+00> : vector<8x512xf32>
    %353 = tpu.matmul %351, %352, %cst_175 {dimension_numbers = #tpu.dot_dimension_numbers<[1], [0], [0], [1], [0, 0, 1, 1], [], []>} : vector<8x128xbf16>, vector<128x512xbf16>, vector<8x512xf32> -> vector<8x512xf32>
    %354 = arith.addf %349, %353 : vector<8x512xf32>
    %355 = vector.extract_strided_slice %354 {offsets = [0, 0], sizes = [8, 128], strides = [1, 1]} : vector<8x512xf32> to vector<8x128xf32>
    %356 = arith.negf %355 : vector<8x128xf32>
    %357 = math.exp %356 : vector<8x128xf32>
    %cst_176 = arith.constant 1.000000e+00 : f32
    %358 = vector.broadcast %cst_176 : f32 to vector<8x128xf32>
    %359 = arith.addf %358, %357 : vector<8x128xf32>
    %360 = arith.divf %358, %359 : vector<8x128xf32>
    %361 = vector.extract_strided_slice %354 {offsets = [0, 128], sizes = [8, 128], strides = [1, 1]} : vector<8x512xf32> to vector<8x128xf32>
    %362 = arith.negf %361 : vector<8x128xf32>
    %363 = math.exp %362 : vector<8x128xf32>
    %cst_177 = arith.constant 1.000000e+00 : f32
    %364 = vector.broadcast %cst_177 : f32 to vector<8x128xf32>
    %365 = arith.addf %364, %363 : vector<8x128xf32>
    %366 = arith.divf %364, %365 : vector<8x128xf32>
    %367 = vector.extract_strided_slice %354 {offsets = [0, 256], sizes = [8, 128], strides = [1, 1]} : vector<8x512xf32> to vector<8x128xf32>
    %368 = math.tanh %367 : vector<8x128xf32>
    %369 = vector.extract_strided_slice %354 {offsets = [0, 384], sizes = [8, 128], strides = [1, 1]} : vector<8x512xf32> to vector<8x128xf32>
    %370 = arith.negf %369 : vector<8x128xf32>
    %371 = math.exp %370 : vector<8x128xf32>
    %cst_178 = arith.constant 1.000000e+00 : f32
    %372 = vector.broadcast %cst_178 : f32 to vector<8x128xf32>
    %373 = arith.addf %372, %371 : vector<8x128xf32>
    %374 = arith.divf %372, %373 : vector<8x128xf32>
    %c0_179 = arith.constant 0 : index
    %c0_180 = arith.constant 0 : index
    %375 = vector.load %arg15[%c0_179, %c0_180] : memref<8x128xf32, #tpu.memory_space<vmem>>, vector<8x128xf32>
    %376 = arith.mulf %366, %375 : vector<8x128xf32>
    %377 = arith.mulf %360, %368 : vector<8x128xf32>
    %378 = arith.addf %376, %377 : vector<8x128xf32>
    %379 = math.tanh %378 : vector<8x128xf32>
    %380 = arith.mulf %374, %379 : vector<8x128xf32>
    %381 = arith.index_cast %347 : i32 to index
    %c0_181 = arith.constant 0 : index
    %382 = vector.load %arg2[%381, %c0_181] : memref<64x128xf32, #tpu.memory_space<vmem>>, vector<8x128xf32>
    %383 = arith.mulf %380, %382 : vector<8x128xf32>
    %384 = arith.truncf %383 : vector<8x128xf32> to vector<8x128xbf16>
    %c0_182 = arith.constant 0 : index
    %c0_183 = arith.constant 0 : index
    %385 = vector.load %arg6[%c0_182, %c0_183] : memref<128x128xbf16, #tpu.memory_space<vmem>>, vector<128x128xbf16>
    %cst_184 = arith.constant dense<0.000000e+00> : vector<8x128xf32>
    %386 = tpu.matmul %384, %385, %cst_184 {dimension_numbers = #tpu.dot_dimension_numbers<[1], [0], [0], [1], [0, 0, 1, 1], [], []>} : vector<8x128xbf16>, vector<128x128xbf16>, vector<8x128xf32> -> vector<8x128xf32>
    %c0_185 = arith.constant 0 : index
    %c0_186 = arith.constant 0 : index
    %387 = vector.load %arg8[%c0_185, %c0_186] : memref<1x128xf32, #tpu.memory_space<vmem>>, vector<1x128xf32>
    %388 = vector.broadcast %387 : vector<1x128xf32> to vector<8x128xf32>
    %389 = arith.addf %386, %388 : vector<8x128xf32>
    %c0_187 = arith.constant 0 : index
    %c0_188 = arith.constant 0 : index
    %390 = vector.load %arg15[%c0_187, %c0_188] : memref<8x128xf32, #tpu.memory_space<vmem>>, vector<8x128xf32>
    tpu.vector_store %arg15[%c0_187, %c0_188], %378 {strides = array<i32>} : memref<8x128xf32, #tpu.memory_space<vmem>>, vector<8x128xf32>,
    %c0_189 = arith.constant 0 : index
    %c0_190 = arith.constant 0 : index
    %391 = vector.load %arg14[%c0_189, %c0_190] : memref<8x128xf32, #tpu.memory_space<vmem>>, vector<8x128xf32>
    tpu.vector_store %arg14[%c0_189, %c0_190], %380 {strides = array<i32>} : memref<8x128xf32, #tpu.memory_space<vmem>>, vector<8x128xf32>,
    %392 = arith.index_cast %347 : i32 to index
    %c0_191 = arith.constant 0 : index
    %393 = vector.load %arg13[%392, %c0_191] : memref<64x128xf32, #tpu.memory_space<vmem>>, vector<8x128xf32>
    tpu.vector_store %arg13[%392, %c0_191], %389 {strides = array<i32>} : memref<64x128xf32, #tpu.memory_space<vmem>>, vector<8x128xf32>,
    %c8_i32_192 = arith.constant 8 : i32
    %394 = tpu.iota {dimensions = array<i32: 1>} : vector<8x128xi32>
    %c64_i32 = arith.constant 64 : i32
    %395 = vector.broadcast %c64_i32 : i32 to vector<8x128xi32>
    %396 = arith.cmpi sge, %394, %395 : vector<8x128xi32>
    %c96_i32 = arith.constant 96 : i32
    %397 = vector.broadcast %c96_i32 : i32 to vector<8x128xi32>
    %398 = arith.cmpi slt, %394, %397 : vector<8x128xi32>
    %399 = arith.andi %396, %398 : vector<8x128xi1>
    %c0_i32_193 = arith.constant 0 : i32
    %c8_i32_194 = arith.constant 8 : i32
    %400 = arith.muli %c0_i32_193, %c8_i32_194 : i32
    %401 = tpu.assume_multiple %400, 8 : i32
    %402 = arith.index_cast %401 : i32 to index
    %c0_195 = arith.constant 0 : index
    %403 = vector.load %arg13[%402, %c0_195] : memref<64x128xf32, #tpu.memory_space<vmem>>, vector<8x128xf32>
    %c0_196 = arith.constant 0 : index
    %c0_197 = arith.constant 0 : index
    %404 = vector.load %arg16[%c0_196, %c0_197] : memref<8x32xf32, #tpu.memory_space<vmem>>, vector<8x32xf32>
    %405 = arith.truncf %404 : vector<8x32xf32> to vector<8x32xbf16>
    %c0_198 = arith.constant 0 : index
    %c0_199 = arith.constant 0 : index
    %406 = vector.load %arg7[%c0_198, %c0_199] : memref<32x128xbf16, #tpu.memory_space<vmem>>, vector<32x128xbf16>
    %cst_200 = arith.constant dense<0.000000e+00> : vector<8x128xf32>
    %407 = tpu.matmul %405, %406, %cst_200 {dimension_numbers = #tpu.dot_dimension_numbers<[1], [0], [0], [1], [0, 0, 1, 1], [], []>} : vector<8x32xbf16>, vector<32x128xbf16>, vector<8x128xf32> -> vector<8x128xf32>
    %408 = arith.addf %403, %407 : vector<8x128xf32>
    %409 = math.tanh %408 : vector<8x128xf32>
    %410 = arith.negf %408 : vector<8x128xf32>
    %411 = math.exp %410 : vector<8x128xf32>
    %cst_201 = arith.constant 1.000000e+00 : f32
    %412 = vector.broadcast %cst_201 : f32 to vector<8x128xf32>
    %413 = arith.addf %412, %411 : vector<8x128xf32>
    %414 = arith.divf %412, %413 : vector<8x128xf32>
    %415 = arith.select %399, %409, %414 : vector<8x128xi1>, vector<8x128xf32>
    %416 = vector.extract_strided_slice %415 {offsets = [0, 0], sizes = [8, 32], strides = [1, 1]} : vector<8x128xf32> to vector<8x32xf32>
    %417 = vector.extract_strided_slice %415 {offsets = [0, 32], sizes = [8, 32], strides = [1, 1]} : vector<8x128xf32> to vector<8x32xf32>
    %418 = vector.extract_strided_slice %415 {offsets = [0, 64], sizes = [8, 32], strides = [1, 1]} : vector<8x128xf32> to vector<8x32xf32>
    %419 = vector.extract_strided_slice %415 {offsets = [0, 96], sizes = [8, 32], strides = [1, 1]} : vector<8x128xf32> to vector<8x32xf32>
    %c0_202 = arith.constant 0 : index
    %c0_203 = arith.constant 0 : index
    %420 = vector.load %arg17[%c0_202, %c0_203] : memref<8x32xf32, #tpu.memory_space<vmem>>, vector<8x32xf32>
    %421 = arith.mulf %417, %420 : vector<8x32xf32>
    %422 = arith.mulf %416, %418 : vector<8x32xf32>
    %423 = arith.addf %421, %422 : vector<8x32xf32>
    %424 = math.tanh %423 : vector<8x32xf32>
    %425 = arith.mulf %419, %424 : vector<8x32xf32>
    %c0_204 = arith.constant 0 : index
    %c0_205 = arith.constant 0 : index
    %426 = vector.load %arg17[%c0_204, %c0_205] : memref<8x32xf32, #tpu.memory_space<vmem>>, vector<8x32xf32>
    tpu.vector_store %arg17[%c0_204, %c0_205], %423 {strides = array<i32>} : memref<8x32xf32, #tpu.memory_space<vmem>>, vector<8x32xf32>,
    %c0_206 = arith.constant 0 : index
    %c0_207 = arith.constant 0 : index
    %427 = vector.load %arg16[%c0_206, %c0_207] : memref<8x32xf32, #tpu.memory_space<vmem>>, vector<8x32xf32>
    tpu.vector_store %arg16[%c0_206, %c0_207], %425 {strides = array<i32>} : memref<8x32xf32, #tpu.memory_space<vmem>>, vector<8x32xf32>,
    %c1_i32_208 = arith.constant 1 : i32
    %c8_i32_209 = arith.constant 8 : i32
    %428 = arith.muli %c1_i32_208, %c8_i32_209 : i32
    %429 = tpu.assume_multiple %428, 8 : i32
    %430 = arith.index_cast %429 : i32 to index
    %c0_210 = arith.constant 0 : index
    %431 = vector.load %arg13[%430, %c0_210] : memref<64x128xf32, #tpu.memory_space<vmem>>, vector<8x128xf32>
    %c0_211 = arith.constant 0 : index
    %c0_212 = arith.constant 0 : index
    %432 = vector.load %arg16[%c0_211, %c0_212] : memref<8x32xf32, #tpu.memory_space<vmem>>, vector<8x32xf32>
    %433 = arith.truncf %432 : vector<8x32xf32> to vector<8x32xbf16>
    %c0_213 = arith.constant 0 : index
    %c0_214 = arith.constant 0 : index
    %434 = vector.load %arg7[%c0_213, %c0_214] : memref<32x128xbf16, #tpu.memory_space<vmem>>, vector<32x128xbf16>
    %cst_215 = arith.constant dense<0.000000e+00> : vector<8x128xf32>
    %435 = tpu.matmul %433, %434, %cst_215 {dimension_numbers = #tpu.dot_dimension_numbers<[1], [0], [0], [1], [0, 0, 1, 1], [], []>} : vector<8x32xbf16>, vector<32x128xbf16>, vector<8x128xf32> -> vector<8x128xf32>
    %436 = arith.addf %431, %435 : vector<8x128xf32>
    %437 = math.tanh %436 : vector<8x128xf32>
    %438 = arith.negf %436 : vector<8x128xf32>
    %439 = math.exp %438 : vector<8x128xf32>
    %cst_216 = arith.constant 1.000000e+00 : f32
    %440 = vector.broadcast %cst_216 : f32 to vector<8x128xf32>
    %441 = arith.addf %440, %439 : vector<8x128xf32>
    %442 = arith.divf %440, %441 : vector<8x128xf32>
    %443 = arith.select %399, %437, %442 : vector<8x128xi1>, vector<8x128xf32>
    %444 = vector.extract_strided_slice %443 {offsets = [0, 0], sizes = [8, 32], strides = [1, 1]} : vector<8x128xf32> to vector<8x32xf32>
    %445 = vector.extract_strided_slice %443 {offsets = [0, 32], sizes = [8, 32], strides = [1, 1]} : vector<8x128xf32> to vector<8x32xf32>
    %446 = vector.extract_strided_slice %443 {offsets = [0, 64], sizes = [8, 32], strides = [1, 1]} : vector<8x128xf32> to vector<8x32xf32>
    %447 = vector.extract_strided_slice %443 {offsets = [0, 96], sizes = [8, 32], strides = [1, 1]} : vector<8x128xf32> to vector<8x32xf32>
    %c0_217 = arith.constant 0 : index
    %c0_218 = arith.constant 0 : index
    %448 = vector.load %arg17[%c0_217, %c0_218] : memref<8x32xf32, #tpu.memory_space<vmem>>, vector<8x32xf32>
    %449 = arith.mulf %445, %448 : vector<8x32xf32>
    %450 = arith.mulf %444, %446 : vector<8x32xf32>
    %451 = arith.addf %449, %450 : vector<8x32xf32>
    %452 = math.tanh %451 : vector<8x32xf32>
    %453 = arith.mulf %447, %452 : vector<8x32xf32>
    %c0_219 = arith.constant 0 : index
    %c0_220 = arith.constant 0 : index
    %454 = vector.load %arg17[%c0_219, %c0_220] : memref<8x32xf32, #tpu.memory_space<vmem>>, vector<8x32xf32>
    tpu.vector_store %arg17[%c0_219, %c0_220], %451 {strides = array<i32>} : memref<8x32xf32, #tpu.memory_space<vmem>>, vector<8x32xf32>,
    %c0_221 = arith.constant 0 : index
    %c0_222 = arith.constant 0 : index
    %455 = vector.load %arg16[%c0_221, %c0_222] : memref<8x32xf32, #tpu.memory_space<vmem>>, vector<8x32xf32>
    tpu.vector_store %arg16[%c0_221, %c0_222], %453 {strides = array<i32>} : memref<8x32xf32, #tpu.memory_space<vmem>>, vector<8x32xf32>,
    %c2_i32_223 = arith.constant 2 : i32
    %c8_i32_224 = arith.constant 8 : i32
    %456 = arith.muli %c2_i32_223, %c8_i32_224 : i32
    %457 = tpu.assume_multiple %456, 8 : i32
    %458 = arith.index_cast %457 : i32 to index
    %c0_225 = arith.constant 0 : index
    %459 = vector.load %arg13[%458, %c0_225] : memref<64x128xf32, #tpu.memory_space<vmem>>, vector<8x128xf32>
    %c0_226 = arith.constant 0 : index
    %c0_227 = arith.constant 0 : index
    %460 = vector.load %arg16[%c0_226, %c0_227] : memref<8x32xf32, #tpu.memory_space<vmem>>, vector<8x32xf32>
    %461 = arith.truncf %460 : vector<8x32xf32> to vector<8x32xbf16>
    %c0_228 = arith.constant 0 : index
    %c0_229 = arith.constant 0 : index
    %462 = vector.load %arg7[%c0_228, %c0_229] : memref<32x128xbf16, #tpu.memory_space<vmem>>, vector<32x128xbf16>
    %cst_230 = arith.constant dense<0.000000e+00> : vector<8x128xf32>
    %463 = tpu.matmul %461, %462, %cst_230 {dimension_numbers = #tpu.dot_dimension_numbers<[1], [0], [0], [1], [0, 0, 1, 1], [], []>} : vector<8x32xbf16>, vector<32x128xbf16>, vector<8x128xf32> -> vector<8x128xf32>
    %464 = arith.addf %459, %463 : vector<8x128xf32>
    %465 = math.tanh %464 : vector<8x128xf32>
    %466 = arith.negf %464 : vector<8x128xf32>
    %467 = math.exp %466 : vector<8x128xf32>
    %cst_231 = arith.constant 1.000000e+00 : f32
    %468 = vector.broadcast %cst_231 : f32 to vector<8x128xf32>
    %469 = arith.addf %468, %467 : vector<8x128xf32>
    %470 = arith.divf %468, %469 : vector<8x128xf32>
    %471 = arith.select %399, %465, %470 : vector<8x128xi1>, vector<8x128xf32>
    %472 = vector.extract_strided_slice %471 {offsets = [0, 0], sizes = [8, 32], strides = [1, 1]} : vector<8x128xf32> to vector<8x32xf32>
    %473 = vector.extract_strided_slice %471 {offsets = [0, 32], sizes = [8, 32], strides = [1, 1]} : vector<8x128xf32> to vector<8x32xf32>
    %474 = vector.extract_strided_slice %471 {offsets = [0, 64], sizes = [8, 32], strides = [1, 1]} : vector<8x128xf32> to vector<8x32xf32>
    %475 = vector.extract_strided_slice %471 {offsets = [0, 96], sizes = [8, 32], strides = [1, 1]} : vector<8x128xf32> to vector<8x32xf32>
    %c0_232 = arith.constant 0 : index
    %c0_233 = arith.constant 0 : index
    %476 = vector.load %arg17[%c0_232, %c0_233] : memref<8x32xf32, #tpu.memory_space<vmem>>, vector<8x32xf32>
    %477 = arith.mulf %473, %476 : vector<8x32xf32>
    %478 = arith.mulf %472, %474 : vector<8x32xf32>
    %479 = arith.addf %477, %478 : vector<8x32xf32>
    %480 = math.tanh %479 : vector<8x32xf32>
    %481 = arith.mulf %475, %480 : vector<8x32xf32>
    %c0_234 = arith.constant 0 : index
    %c0_235 = arith.constant 0 : index
    %482 = vector.load %arg17[%c0_234, %c0_235] : memref<8x32xf32, #tpu.memory_space<vmem>>, vector<8x32xf32>
    tpu.vector_store %arg17[%c0_234, %c0_235], %479 {strides = array<i32>} : memref<8x32xf32, #tpu.memory_space<vmem>>, vector<8x32xf32>,
    %c0_236 = arith.constant 0 : index
    %c0_237 = arith.constant 0 : index
    %483 = vector.load %arg16[%c0_236, %c0_237] : memref<8x32xf32, #tpu.memory_space<vmem>>, vector<8x32xf32>
    tpu.vector_store %arg16[%c0_236, %c0_237], %481 {strides = array<i32>} : memref<8x32xf32, #tpu.memory_space<vmem>>, vector<8x32xf32>,
    %c3_i32_238 = arith.constant 3 : i32
    %c8_i32_239 = arith.constant 8 : i32
    %484 = arith.muli %c3_i32_238, %c8_i32_239 : i32
    %485 = tpu.assume_multiple %484, 8 : i32
    %486 = arith.index_cast %485 : i32 to index
    %c0_240 = arith.constant 0 : index
    %487 = vector.load %arg13[%486, %c0_240] : memref<64x128xf32, #tpu.memory_space<vmem>>, vector<8x128xf32>
    %c0_241 = arith.constant 0 : index
    %c0_242 = arith.constant 0 : index
    %488 = vector.load %arg16[%c0_241, %c0_242] : memref<8x32xf32, #tpu.memory_space<vmem>>, vector<8x32xf32>
    %489 = arith.truncf %488 : vector<8x32xf32> to vector<8x32xbf16>
    %c0_243 = arith.constant 0 : index
    %c0_244 = arith.constant 0 : index
    %490 = vector.load %arg7[%c0_243, %c0_244] : memref<32x128xbf16, #tpu.memory_space<vmem>>, vector<32x128xbf16>
    %cst_245 = arith.constant dense<0.000000e+00> : vector<8x128xf32>
    %491 = tpu.matmul %489, %490, %cst_245 {dimension_numbers = #tpu.dot_dimension_numbers<[1], [0], [0], [1], [0, 0, 1, 1], [], []>} : vector<8x32xbf16>, vector<32x128xbf16>, vector<8x128xf32> -> vector<8x128xf32>
    %492 = arith.addf %487, %491 : vector<8x128xf32>
    %493 = math.tanh %492 : vector<8x128xf32>
    %494 = arith.negf %492 : vector<8x128xf32>
    %495 = math.exp %494 : vector<8x128xf32>
    %cst_246 = arith.constant 1.000000e+00 : f32
    %496 = vector.broadcast %cst_246 : f32 to vector<8x128xf32>
    %497 = arith.addf %496, %495 : vector<8x128xf32>
    %498 = arith.divf %496, %497 : vector<8x128xf32>
    %499 = arith.select %399, %493, %498 : vector<8x128xi1>, vector<8x128xf32>
    %500 = vector.extract_strided_slice %499 {offsets = [0, 0], sizes = [8, 32], strides = [1, 1]} : vector<8x128xf32> to vector<8x32xf32>
    %501 = vector.extract_strided_slice %499 {offsets = [0, 32], sizes = [8, 32], strides = [1, 1]} : vector<8x128xf32> to vector<8x32xf32>
    %502 = vector.extract_strided_slice %499 {offsets = [0, 64], sizes = [8, 32], strides = [1, 1]} : vector<8x128xf32> to vector<8x32xf32>
    %503 = vector.extract_strided_slice %499 {offsets = [0, 96], sizes = [8, 32], strides = [1, 1]} : vector<8x128xf32> to vector<8x32xf32>
    %c0_247 = arith.constant 0 : index
    %c0_248 = arith.constant 0 : index
    %504 = vector.load %arg17[%c0_247, %c0_248] : memref<8x32xf32, #tpu.memory_space<vmem>>, vector<8x32xf32>
    %505 = arith.mulf %501, %504 : vector<8x32xf32>
    %506 = arith.mulf %500, %502 : vector<8x32xf32>
    %507 = arith.addf %505, %506 : vector<8x32xf32>
    %508 = math.tanh %507 : vector<8x32xf32>
    %509 = arith.mulf %503, %508 : vector<8x32xf32>
    %c0_249 = arith.constant 0 : index
    %c0_250 = arith.constant 0 : index
    %510 = vector.load %arg17[%c0_249, %c0_250] : memref<8x32xf32, #tpu.memory_space<vmem>>, vector<8x32xf32>
    tpu.vector_store %arg17[%c0_249, %c0_250], %507 {strides = array<i32>} : memref<8x32xf32, #tpu.memory_space<vmem>>, vector<8x32xf32>,
    %c0_251 = arith.constant 0 : index
    %c0_252 = arith.constant 0 : index
    %511 = vector.load %arg16[%c0_251, %c0_252] : memref<8x32xf32, #tpu.memory_space<vmem>>, vector<8x32xf32>
    tpu.vector_store %arg16[%c0_251, %c0_252], %509 {strides = array<i32>} : memref<8x32xf32, #tpu.memory_space<vmem>>, vector<8x32xf32>,
    %c4_i32_253 = arith.constant 4 : i32
    %c8_i32_254 = arith.constant 8 : i32
    %512 = arith.muli %c4_i32_253, %c8_i32_254 : i32
    %513 = tpu.assume_multiple %512, 8 : i32
    %514 = arith.index_cast %513 : i32 to index
    %c0_255 = arith.constant 0 : index
    %515 = vector.load %arg13[%514, %c0_255] : memref<64x128xf32, #tpu.memory_space<vmem>>, vector<8x128xf32>
    %c0_256 = arith.constant 0 : index
    %c0_257 = arith.constant 0 : index
    %516 = vector.load %arg16[%c0_256, %c0_257] : memref<8x32xf32, #tpu.memory_space<vmem>>, vector<8x32xf32>
    %517 = arith.truncf %516 : vector<8x32xf32> to vector<8x32xbf16>
    %c0_258 = arith.constant 0 : index
    %c0_259 = arith.constant 0 : index
    %518 = vector.load %arg7[%c0_258, %c0_259] : memref<32x128xbf16, #tpu.memory_space<vmem>>, vector<32x128xbf16>
    %cst_260 = arith.constant dense<0.000000e+00> : vector<8x128xf32>
    %519 = tpu.matmul %517, %518, %cst_260 {dimension_numbers = #tpu.dot_dimension_numbers<[1], [0], [0], [1], [0, 0, 1, 1], [], []>} : vector<8x32xbf16>, vector<32x128xbf16>, vector<8x128xf32> -> vector<8x128xf32>
    %520 = arith.addf %515, %519 : vector<8x128xf32>
    %521 = math.tanh %520 : vector<8x128xf32>
    %522 = arith.negf %520 : vector<8x128xf32>
    %523 = math.exp %522 : vector<8x128xf32>
    %cst_261 = arith.constant 1.000000e+00 : f32
    %524 = vector.broadcast %cst_261 : f32 to vector<8x128xf32>
    %525 = arith.addf %524, %523 : vector<8x128xf32>
    %526 = arith.divf %524, %525 : vector<8x128xf32>
    %527 = arith.select %399, %521, %526 : vector<8x128xi1>, vector<8x128xf32>
    %528 = vector.extract_strided_slice %527 {offsets = [0, 0], sizes = [8, 32], strides = [1, 1]} : vector<8x128xf32> to vector<8x32xf32>
    %529 = vector.extract_strided_slice %527 {offsets = [0, 32], sizes = [8, 32], strides = [1, 1]} : vector<8x128xf32> to vector<8x32xf32>
    %530 = vector.extract_strided_slice %527 {offsets = [0, 64], sizes = [8, 32], strides = [1, 1]} : vector<8x128xf32> to vector<8x32xf32>
    %531 = vector.extract_strided_slice %527 {offsets = [0, 96], sizes = [8, 32], strides = [1, 1]} : vector<8x128xf32> to vector<8x32xf32>
    %c0_262 = arith.constant 0 : index
    %c0_263 = arith.constant 0 : index
    %532 = vector.load %arg17[%c0_262, %c0_263] : memref<8x32xf32, #tpu.memory_space<vmem>>, vector<8x32xf32>
    %533 = arith.mulf %529, %532 : vector<8x32xf32>
    %534 = arith.mulf %528, %530 : vector<8x32xf32>
    %535 = arith.addf %533, %534 : vector<8x32xf32>
    %536 = math.tanh %535 : vector<8x32xf32>
    %537 = arith.mulf %531, %536 : vector<8x32xf32>
    %c0_264 = arith.constant 0 : index
    %c0_265 = arith.constant 0 : index
    %538 = vector.load %arg17[%c0_264, %c0_265] : memref<8x32xf32, #tpu.memory_space<vmem>>, vector<8x32xf32>
    tpu.vector_store %arg17[%c0_264, %c0_265], %535 {strides = array<i32>} : memref<8x32xf32, #tpu.memory_space<vmem>>, vector<8x32xf32>,
    %c0_266 = arith.constant 0 : index
    %c0_267 = arith.constant 0 : index
    %539 = vector.load %arg16[%c0_266, %c0_267] : memref<8x32xf32, #tpu.memory_space<vmem>>, vector<8x32xf32>
    tpu.vector_store %arg16[%c0_266, %c0_267], %537 {strides = array<i32>} : memref<8x32xf32, #tpu.memory_space<vmem>>, vector<8x32xf32>,
    %c5_i32_268 = arith.constant 5 : i32
    %c8_i32_269 = arith.constant 8 : i32
    %540 = arith.muli %c5_i32_268, %c8_i32_269 : i32
    %541 = tpu.assume_multiple %540, 8 : i32
    %542 = arith.index_cast %541 : i32 to index
    %c0_270 = arith.constant 0 : index
    %543 = vector.load %arg13[%542, %c0_270] : memref<64x128xf32, #tpu.memory_space<vmem>>, vector<8x128xf32>
    %c0_271 = arith.constant 0 : index
    %c0_272 = arith.constant 0 : index
    %544 = vector.load %arg16[%c0_271, %c0_272] : memref<8x32xf32, #tpu.memory_space<vmem>>, vector<8x32xf32>
    %545 = arith.truncf %544 : vector<8x32xf32> to vector<8x32xbf16>
    %c0_273 = arith.constant 0 : index
    %c0_274 = arith.constant 0 : index
    %546 = vector.load %arg7[%c0_273, %c0_274] : memref<32x128xbf16, #tpu.memory_space<vmem>>, vector<32x128xbf16>
    %cst_275 = arith.constant dense<0.000000e+00> : vector<8x128xf32>
    %547 = tpu.matmul %545, %546, %cst_275 {dimension_numbers = #tpu.dot_dimension_numbers<[1], [0], [0], [1], [0, 0, 1, 1], [], []>} : vector<8x32xbf16>, vector<32x128xbf16>, vector<8x128xf32> -> vector<8x128xf32>
    %548 = arith.addf %543, %547 : vector<8x128xf32>
    %549 = math.tanh %548 : vector<8x128xf32>
    %550 = arith.negf %548 : vector<8x128xf32>
    %551 = math.exp %550 : vector<8x128xf32>
    %cst_276 = arith.constant 1.000000e+00 : f32
    %552 = vector.broadcast %cst_276 : f32 to vector<8x128xf32>
    %553 = arith.addf %552, %551 : vector<8x128xf32>
    %554 = arith.divf %552, %553 : vector<8x128xf32>
    %555 = arith.select %399, %549, %554 : vector<8x128xi1>, vector<8x128xf32>
    %556 = vector.extract_strided_slice %555 {offsets = [0, 0], sizes = [8, 32], strides = [1, 1]} : vector<8x128xf32> to vector<8x32xf32>
    %557 = vector.extract_strided_slice %555 {offsets = [0, 32], sizes = [8, 32], strides = [1, 1]} : vector<8x128xf32> to vector<8x32xf32>
    %558 = vector.extract_strided_slice %555 {offsets = [0, 64], sizes = [8, 32], strides = [1, 1]} : vector<8x128xf32> to vector<8x32xf32>
    %559 = vector.extract_strided_slice %555 {offsets = [0, 96], sizes = [8, 32], strides = [1, 1]} : vector<8x128xf32> to vector<8x32xf32>
    %c0_277 = arith.constant 0 : index
    %c0_278 = arith.constant 0 : index
    %560 = vector.load %arg17[%c0_277, %c0_278] : memref<8x32xf32, #tpu.memory_space<vmem>>, vector<8x32xf32>
    %561 = arith.mulf %557, %560 : vector<8x32xf32>
    %562 = arith.mulf %556, %558 : vector<8x32xf32>
    %563 = arith.addf %561, %562 : vector<8x32xf32>
    %564 = math.tanh %563 : vector<8x32xf32>
    %565 = arith.mulf %559, %564 : vector<8x32xf32>
    %c0_279 = arith.constant 0 : index
    %c0_280 = arith.constant 0 : index
    %566 = vector.load %arg17[%c0_279, %c0_280] : memref<8x32xf32, #tpu.memory_space<vmem>>, vector<8x32xf32>
    tpu.vector_store %arg17[%c0_279, %c0_280], %563 {strides = array<i32>} : memref<8x32xf32, #tpu.memory_space<vmem>>, vector<8x32xf32>,
    %c0_281 = arith.constant 0 : index
    %c0_282 = arith.constant 0 : index
    %567 = vector.load %arg16[%c0_281, %c0_282] : memref<8x32xf32, #tpu.memory_space<vmem>>, vector<8x32xf32>
    tpu.vector_store %arg16[%c0_281, %c0_282], %565 {strides = array<i32>} : memref<8x32xf32, #tpu.memory_space<vmem>>, vector<8x32xf32>,
    %c6_i32_283 = arith.constant 6 : i32
    %c8_i32_284 = arith.constant 8 : i32
    %568 = arith.muli %c6_i32_283, %c8_i32_284 : i32
    %569 = tpu.assume_multiple %568, 8 : i32
    %570 = arith.index_cast %569 : i32 to index
    %c0_285 = arith.constant 0 : index
    %571 = vector.load %arg13[%570, %c0_285] : memref<64x128xf32, #tpu.memory_space<vmem>>, vector<8x128xf32>
    %c0_286 = arith.constant 0 : index
    %c0_287 = arith.constant 0 : index
    %572 = vector.load %arg16[%c0_286, %c0_287] : memref<8x32xf32, #tpu.memory_space<vmem>>, vector<8x32xf32>
    %573 = arith.truncf %572 : vector<8x32xf32> to vector<8x32xbf16>
    %c0_288 = arith.constant 0 : index
    %c0_289 = arith.constant 0 : index
    %574 = vector.load %arg7[%c0_288, %c0_289] : memref<32x128xbf16, #tpu.memory_space<vmem>>, vector<32x128xbf16>
    %cst_290 = arith.constant dense<0.000000e+00> : vector<8x128xf32>
    %575 = tpu.matmul %573, %574, %cst_290 {dimension_numbers = #tpu.dot_dimension_numbers<[1], [0], [0], [1], [0, 0, 1, 1], [], []>} : vector<8x32xbf16>, vector<32x128xbf16>, vector<8x128xf32> -> vector<8x128xf32>
    %576 = arith.addf %571, %575 : vector<8x128xf32>
    %577 = math.tanh %576 : vector<8x128xf32>
    %578 = arith.negf %576 : vector<8x128xf32>
    %579 = math.exp %578 : vector<8x128xf32>
    %cst_291 = arith.constant 1.000000e+00 : f32
    %580 = vector.broadcast %cst_291 : f32 to vector<8x128xf32>
    %581 = arith.addf %580, %579 : vector<8x128xf32>
    %582 = arith.divf %580, %581 : vector<8x128xf32>
    %583 = arith.select %399, %577, %582 : vector<8x128xi1>, vector<8x128xf32>
    %584 = vector.extract_strided_slice %583 {offsets = [0, 0], sizes = [8, 32], strides = [1, 1]} : vector<8x128xf32> to vector<8x32xf32>
    %585 = vector.extract_strided_slice %583 {offsets = [0, 32], sizes = [8, 32], strides = [1, 1]} : vector<8x128xf32> to vector<8x32xf32>
    %586 = vector.extract_strided_slice %583 {offsets = [0, 64], sizes = [8, 32], strides = [1, 1]} : vector<8x128xf32> to vector<8x32xf32>
    %587 = vector.extract_strided_slice %583 {offsets = [0, 96], sizes = [8, 32], strides = [1, 1]} : vector<8x128xf32> to vector<8x32xf32>
    %c0_292 = arith.constant 0 : index
    %c0_293 = arith.constant 0 : index
    %588 = vector.load %arg17[%c0_292, %c0_293] : memref<8x32xf32, #tpu.memory_space<vmem>>, vector<8x32xf32>
    %589 = arith.mulf %585, %588 : vector<8x32xf32>
    %590 = arith.mulf %584, %586 : vector<8x32xf32>
    %591 = arith.addf %589, %590 : vector<8x32xf32>
    %592 = math.tanh %591 : vector<8x32xf32>
    %593 = arith.mulf %587, %592 : vector<8x32xf32>
    %c0_294 = arith.constant 0 : index
    %c0_295 = arith.constant 0 : index
    %594 = vector.load %arg17[%c0_294, %c0_295] : memref<8x32xf32, #tpu.memory_space<vmem>>, vector<8x32xf32>
    tpu.vector_store %arg17[%c0_294, %c0_295], %591 {strides = array<i32>} : memref<8x32xf32, #tpu.memory_space<vmem>>, vector<8x32xf32>,
    %c0_296 = arith.constant 0 : index
    %c0_297 = arith.constant 0 : index
    %595 = vector.load %arg16[%c0_296, %c0_297] : memref<8x32xf32, #tpu.memory_space<vmem>>, vector<8x32xf32>
    tpu.vector_store %arg16[%c0_296, %c0_297], %593 {strides = array<i32>} : memref<8x32xf32, #tpu.memory_space<vmem>>, vector<8x32xf32>,
    %c7_i32_298 = arith.constant 7 : i32
    %c8_i32_299 = arith.constant 8 : i32
    %596 = arith.muli %c7_i32_298, %c8_i32_299 : i32
    %597 = tpu.assume_multiple %596, 8 : i32
    %598 = arith.index_cast %597 : i32 to index
    %c0_300 = arith.constant 0 : index
    %599 = vector.load %arg13[%598, %c0_300] : memref<64x128xf32, #tpu.memory_space<vmem>>, vector<8x128xf32>
    %c0_301 = arith.constant 0 : index
    %c0_302 = arith.constant 0 : index
    %600 = vector.load %arg16[%c0_301, %c0_302] : memref<8x32xf32, #tpu.memory_space<vmem>>, vector<8x32xf32>
    %601 = arith.truncf %600 : vector<8x32xf32> to vector<8x32xbf16>
    %c0_303 = arith.constant 0 : index
    %c0_304 = arith.constant 0 : index
    %602 = vector.load %arg7[%c0_303, %c0_304] : memref<32x128xbf16, #tpu.memory_space<vmem>>, vector<32x128xbf16>
    %cst_305 = arith.constant dense<0.000000e+00> : vector<8x128xf32>
    %603 = tpu.matmul %601, %602, %cst_305 {dimension_numbers = #tpu.dot_dimension_numbers<[1], [0], [0], [1], [0, 0, 1, 1], [], []>} : vector<8x32xbf16>, vector<32x128xbf16>, vector<8x128xf32> -> vector<8x128xf32>
    %604 = arith.addf %599, %603 : vector<8x128xf32>
    %605 = math.tanh %604 : vector<8x128xf32>
    %606 = arith.negf %604 : vector<8x128xf32>
    %607 = math.exp %606 : vector<8x128xf32>
    %cst_306 = arith.constant 1.000000e+00 : f32
    %608 = vector.broadcast %cst_306 : f32 to vector<8x128xf32>
    %609 = arith.addf %608, %607 : vector<8x128xf32>
    %610 = arith.divf %608, %609 : vector<8x128xf32>
    %611 = arith.select %399, %605, %610 : vector<8x128xi1>, vector<8x128xf32>
    %612 = vector.extract_strided_slice %611 {offsets = [0, 0], sizes = [8, 32], strides = [1, 1]} : vector<8x128xf32> to vector<8x32xf32>
    %613 = vector.extract_strided_slice %611 {offsets = [0, 32], sizes = [8, 32], strides = [1, 1]} : vector<8x128xf32> to vector<8x32xf32>
    %614 = vector.extract_strided_slice %611 {offsets = [0, 64], sizes = [8, 32], strides = [1, 1]} : vector<8x128xf32> to vector<8x32xf32>
    %615 = vector.extract_strided_slice %611 {offsets = [0, 96], sizes = [8, 32], strides = [1, 1]} : vector<8x128xf32> to vector<8x32xf32>
    %c0_307 = arith.constant 0 : index
    %c0_308 = arith.constant 0 : index
    %616 = vector.load %arg17[%c0_307, %c0_308] : memref<8x32xf32, #tpu.memory_space<vmem>>, vector<8x32xf32>
    %617 = arith.mulf %613, %616 : vector<8x32xf32>
    %618 = arith.mulf %612, %614 : vector<8x32xf32>
    %619 = arith.addf %617, %618 : vector<8x32xf32>
    %620 = math.tanh %619 : vector<8x32xf32>
    %621 = arith.mulf %615, %620 : vector<8x32xf32>
    %c0_309 = arith.constant 0 : index
    %c0_310 = arith.constant 0 : index
    %622 = vector.load %arg17[%c0_309, %c0_310] : memref<8x32xf32, #tpu.memory_space<vmem>>, vector<8x32xf32>
    tpu.vector_store %arg17[%c0_309, %c0_310], %619 {strides = array<i32>} : memref<8x32xf32, #tpu.memory_space<vmem>>, vector<8x32xf32>,
    %c0_311 = arith.constant 0 : index
    %c0_312 = arith.constant 0 : index
    %623 = vector.load %arg16[%c0_311, %c0_312] : memref<8x32xf32, #tpu.memory_space<vmem>>, vector<8x32xf32>
    tpu.vector_store %arg16[%c0_311, %c0_312], %621 {strides = array<i32>} : memref<8x32xf32, #tpu.memory_space<vmem>>, vector<8x32xf32>,
    %c8_i32_313 = arith.constant 8 : i32
    %c0_i32_314 = arith.constant 0 : i32
    %624 = arith.cmpi eq, %arg0, %c0_i32_314 : i32
    %625 = arith.extui %624 : i1 to i32
    %c0_i32_315 = arith.constant 0 : i32
    %626 = arith.cmpi ne, %625, %c0_i32_315 : i32
    scf.if %626 {
      %c0_316 = arith.constant 0 : index
      %c0_317 = arith.constant 0 : index
      %627 = vector.load %arg16[%c0_316, %c0_317] : memref<8x32xf32, #tpu.memory_space<vmem>>, vector<8x32xf32>
      %628 = arith.truncf %627 : vector<8x32xf32> to vector<8x32xbf16>
      %c0_318 = arith.constant 0 : index
      %c0_319 = arith.constant 0 : index
      %629 = vector.load %arg9[%c0_318, %c0_319] : memref<32x4xbf16, #tpu.memory_space<vmem>>, vector<32x4xbf16>
      %cst_320 = arith.constant dense<0.000000e+00> : vector<8x4xf32>
      %630 = tpu.matmul %628, %629, %cst_320 {dimension_numbers = #tpu.dot_dimension_numbers<[1], [0], [0], [1], [0, 0, 1, 1], [], []>} : vector<8x32xbf16>, vector<32x4xbf16>, vector<8x4xf32> -> vector<8x4xf32>
      %c0_321 = arith.constant 0 : index
      %c0_322 = arith.constant 0 : index
      %631 = vector.load %arg10[%c0_321, %c0_322] : memref<1x4xf32, #tpu.memory_space<vmem>>, vector<1x4xf32>
      %632 = vector.broadcast %631 : vector<1x4xf32> to vector<8x4xf32>
      %633 = arith.addf %630, %632 : vector<8x4xf32>
      %c0_323 = arith.constant 0 : index
      %c0_324 = arith.constant 0 : index
      %634 = vector.load %arg11[%c0_323, %c0_324] : memref<8x4xf32, #tpu.memory_space<vmem>>, vector<8x4xf32>
      tpu.vector_store %arg11[%c0_323, %c0_324], %633 {strides = array<i32>} : memref<8x4xf32, #tpu.memory_space<vmem>>, vector<8x4xf32>,
    } else {
    }
    return
  }
  func.func @transform_0(%arg0: i32) -> (i32, i32) {
    %c0_i32 = arith.constant 0 : i32
    %c0_i32_0 = arith.constant 0 : i32
    return %arg0, %c0_i32 : i32, i32
  }
  func.func @transform_1(%arg0: i32) -> (i32, i32) {
    %c0_i32 = arith.constant 0 : i32
    %c0_i32_0 = arith.constant 0 : i32
    return %arg0, %c0_i32 : i32, i32
  }
  func.func @transform_2(%arg0: i32) -> (i32, i32) {
    %c0_i32 = arith.constant 0 : i32
    %c0_i32_0 = arith.constant 0 : i32
    %c0_i32_1 = arith.constant 0 : i32
    return %c0_i32, %c0_i32_0 : i32, i32
  }
  func.func @transform_3(%arg0: i32) -> (i32, i32) {
    %c0_i32 = arith.constant 0 : i32
    %c0_i32_0 = arith.constant 0 : i32
    %c0_i32_1 = arith.constant 0 : i32
    return %c0_i32, %c0_i32_0 : i32, i32
  }
  func.func @transform_4(%arg0: i32) -> (i32, i32) {
    %c0_i32 = arith.constant 0 : i32
    %c0_i32_0 = arith.constant 0 : i32
    %c0_i32_1 = arith.constant 0 : i32
    return %c0_i32, %c0_i32_0 : i32, i32
  }
  func.func @transform_5(%arg0: i32) -> (i32, i32) {
    %c0_i32 = arith.constant 0 : i32
    %c0_i32_0 = arith.constant 0 : i32
    %c0_i32_1 = arith.constant 0 : i32
    return %c0_i32, %c0_i32_0 : i32, i32
  }
  func.func @transform_6(%arg0: i32) -> (i32, i32) {
    %c0_i32 = arith.constant 0 : i32
    %c0_i32_0 = arith.constant 0 : i32
    %c0_i32_1 = arith.constant 0 : i32
    return %c0_i32, %c0_i32_0 : i32, i32
  }
  func.func @transform_7(%arg0: i32) -> (i32, i32) {
    %c0_i32 = arith.constant 0 : i32
    %c0_i32_0 = arith.constant 0 : i32
    %c0_i32_1 = arith.constant 0 : i32
    return %c0_i32, %c0_i32_0 : i32, i32
  }
  func.func @transform_8(%arg0: i32) -> (i32, i32) {
    %c0_i32 = arith.constant 0 : i32
    %c0_i32_0 = arith.constant 0 : i32
    %c0_i32_1 = arith.constant 0 : i32
    return %c0_i32, %c0_i32_0 : i32, i32
  }
  func.func @transform_9(%arg0: i32) -> (i32, i32) {
    %c0_i32 = arith.constant 0 : i32
    %c0_i32_0 = arith.constant 0 : i32
    %c0_i32_1 = arith.constant 0 : i32
    return %c0_i32, %c0_i32_0 : i32, i32
  }
  func.func @transform_10(%arg0: i32) -> (i32, i32) {
    %c0_i32 = arith.constant 0 : i32
    %c0_i32_0 = arith.constant 0 : i32
    %c0_i32_1 = arith.constant 0 : i32
    return %c0_i32, %c0_i32_0 : i32, i32
  }
}

</mosaic_0001>

<bundles_post_ra>
// kernel: tpu_custom_call.1
= control target key start
LH: loop header
LB: loop body
LE: loop exit
PB: predicated region body
PF: predicated region fallthrough
CT: control target
= control target key end

     0   :  { %15 = vsyncpa [#allocation9], 0  ;;  %s7272_s0 = inlined_call_operand.vmem [shape: bf16[64,16], index: 0, kind: input, shape index: {}]   ;;  %s7273_s1 = inlined_call_operand.hbm [shape: f32[64,128], index: 1, kind: input, shape index: {}]   ;;  %s7274_s2 = inlined_call_operand.hbm [shape: bf16[16,512], index: 2, kind: input, shape index: {}]   ;;  %s7275_s3 = inlined_call_operand.hbm [shape: bf16[128,512], index: 3, kind: input, shape index: {}]   ;;  %s7276_s4 = inlined_call_operand.hbm [shape: f32[1,512], index: 4, kind: input, shape index: {}]   ;;  %s7277_s5 = inlined_call_operand.vmem [shape: bf16[128,128], index: 5, kind: input, shape index: {}]   ;;  %s7278_s6 = inlined_call_operand.vmem [shape: bf16[32,128], index: 6, kind: input, shape index: {}]   ;;  %s7279_s7 = inlined_call_operand.vmem [shape: f32[1,128], index: 7, kind: input, shape index: {}]   ;;  %s7280_s8 = inlined_call_operand.vmem [shape: bf16[32,4], index: 8, kind: input, shape index: {}]   ;;  %s7281_s9 = inlined_call_operand.vmem [shape: f32[1,4], index: 9, kind: input, shape index: {}]   ;;  %s7282_s10 = inlined_call_operand.vmem [shape: f32[8,4], index: 10, kind: output, shape index: {}]  }
   0x1   :  { %16 = vsyncpa [#allocation11], 0 }
   0x2   :  { %17 = vsyncpa [#allocation14], 0  ;;  %s6058_s13 = smov [#allocation10]   ;;  %s5964_s17 = scalar_lea.hbm %s7274_s2, 512 }
   0x3   :  { %s37_s14 = sshll.u32 %s6058_s13, 4  ;;  %p5965_p0 = scmp.ne.s32.totalorder %s7274_s2, %s5964_s17  ;;  %s38_s14 = int_to_ptr.vmem [resolvable:$true] %s37_s14 }
   0x4   :  { %p5968_p1 = scmp.lt.u32.totalorder %s5964_s17, %s7274_s2 }
   0x6   :  { %p5970_p2 = pnand %p5968_p1, %p5965_p0 }
   0x8   :  { %5973 = shalt.err (!%p5970_p2)
}
   0x9   :  { %s5974_s22 = scalar_lea.vmem %s38_s14, 512  ;;  %p5979_p4 = scmp.lt.s32.totalorder %s38_s14, %s38_s14 }
   0xa   :  { %p5975_p3 = scmp.ne.s32.totalorder %s38_s14, %s5974_s22  ;;  %p5980_p5 = scmp.lt.s32.totalorder %s5974_s22, %s5974_s22 }
   0xc   :  { %p5981_p6 = por %p5980_p5, %p5979_p4 }
   0xe   :  { %p5982_p7 = pnand %p5981_p6, %p5975_p3 }
  0x10   :  { %5985 = shalt.err (!%p5982_p7)
}
  0x11   :  { %s6059_s23 = smov 256   ;;  %s6060_s24 = smov 16  }
  0x12   :  { %43 = dma.hbm_to_vmem [thread:$0]  %s7274_s2, 512, %s38_s14, [#allocation11], %s6059_s23, %s6059_s23, %s6060_s24  }
  0x13   :  { %s6061_s27 = smov [#allocation8]   ;;  %s5986_s11 = scalar_lea.hbm %s7273_s1, 1024 }
  0x14   :  { %s25_s28 = sshll.u32 %s6061_s27, 4  ;;  %p5987_p8 = scmp.ne.s32.totalorder %s7273_s1, %s5986_s11  ;;  %s26_s28 = int_to_ptr.vmem [resolvable:$true] %s25_s28 }
  0x15   :  { %p5990_p9 = scmp.lt.u32.totalorder %s5986_s11, %s7273_s1 }
  0x17   :  { %p5992_p10 = pnand %p5990_p9, %p5987_p8 }
  0x19   :  { %5995 = shalt.err (!%p5992_p10)
}
  0x1a   :  { %s5996_s17 = scalar_lea.vmem %s26_s28, 1024  ;;  %p6001_p12 = scmp.lt.s32.totalorder %s26_s28, %s26_s28 }
  0x1b   :  { %p5997_p11 = scmp.ne.s32.totalorder %s26_s28, %s5996_s17  ;;  %p6002_p13 = scmp.lt.s32.totalorder %s5996_s17, %s5996_s17 }
  0x1d   :  { %p6003_p0 = por %p6002_p13, %p6001_p12 }
  0x1f   :  { %p6004_p1 = pnand %p6003_p0, %p5997_p11 }
  0x21   :  { %6007 = shalt.err (!%p6004_p1)
}
  0x22   :  { %s6062_s2 = smov 128   ;;  %s6063_s14 = smov 8  }
  0x23   :  { %31 = dma.hbm_to_vmem [thread:$0]  %s7273_s1, 1024, %s26_s28, [#allocation9], %s6062_s2, %s6062_s2, %s6063_s14  }
  0x24   :  { %s6064_s20 = smov [#allocation12]   ;;  %s6065_s22 = smov [#allocation13]  }
  0x25   :  { %s49_s21 = sshll.u32 %s6064_s20, 4  ;;  %s62_s25 = sshll.u32 %s6065_s22, 4  ;;  %s50_s21 = int_to_ptr.vmem [resolvable:$true] %s49_s21  ;;  %s63_s25 = int_to_ptr.vmem [resolvable:$true] %s62_s25 }
  0x26   :  { %s6008_s29 = scalar_lea.hbm %s7275_s3, 4096 }
  0x27   :  { %p6009_p2 = scmp.ne.s32.totalorder %s7275_s3, %s6008_s29  ;;  %p6012_p3 = scmp.lt.u32.totalorder %s6008_s29, %s7275_s3 }
  0x29   :  { %p6014_p4 = pnand %p6012_p3, %p6009_p2 }
  0x2b   :  { %6017 = shalt.err (!%p6014_p4)
}
  0x2c   :  { %s6018_s1 = scalar_lea.vmem %s50_s21, 4096  ;;  %p6023_p6 = scmp.lt.s32.totalorder %s50_s21, %s50_s21 }
  0x2d   :  { %p6019_p5 = scmp.ne.s32.totalorder %s50_s21, %s6018_s1  ;;  %p6024_p7 = scmp.lt.s32.totalorder %s6018_s1, %s6018_s1 }
  0x2f   :  { %p6025_p8 = por %p6024_p7, %p6023_p6 }
  0x31   :  { %p6026_p9 = pnand %p6025_p8, %p6019_p5 }
  0x33   :  { %6029 = shalt.err (!%p6026_p9)
}
  0x34   :  { %55 = dma.hbm_to_vmem [thread:$0]  %s7275_s3, 4096, %s50_s21, [#allocation11], %s6059_s23, %s6059_s23, %s6060_s24  }
  0x35   :  { %s6030_s2 = scalar_lea.hbm %s7276_s4, 64 }
  0x36   :  { %p6031_p10 = scmp.ne.s32.totalorder %s7276_s4, %s6030_s2  ;;  %p6034_p11 = scmp.lt.u32.totalorder %s6030_s2, %s7276_s4 }
  0x38   :  { %p6036_p12 = pnand %p6034_p11, %p6031_p10 }
  0x3a   :  { %6039 = shalt.err (!%p6036_p12)
}
  0x3b   :  { %s6040_s22 = scalar_lea.vmem %s63_s25, 64  ;;  %p6045_p0 = scmp.lt.s32.totalorder %s63_s25, %s63_s25 }
  0x3c   :  { %p6041_p13 = scmp.ne.s32.totalorder %s63_s25, %s6040_s22  ;;  %p6046_p1 = scmp.lt.s32.totalorder %s6040_s22, %s6040_s22 }
  0x3e   :  { %p6047_p2 = por %p6046_p1, %p6045_p0 }
  0x40   :  { %p6048_p3 = pnand %p6047_p2, %p6041_p13 }
  0x42   :  { %6051 = shalt.err (!%p6048_p3)
}
  0x43   :  { %65 = dma.hbm_to_vmem [thread:$0]  %s7276_s4, 64, %s63_s25, [#allocation14]  }
  0x44   :  { %6052 = dma.done.wait [#allocation9], 1024  }
  0x45   :  { %6053 = vsyncadd [#allocation9], 4294966272 }
  0x46   :  { %6054 = dma.done.wait [#allocation11], 4608  }
  0x47   :  { %6055 = vsyncadd [#allocation11], 4294962688 }
  0x48   :  { %6056 = dma.done.wait [#allocation14], 64  }
  0x49   :  { %6057 = vsyncadd [#allocation14], 4294967232  ;;  %v7284_v0 = vmov 0   ;;  %v5516_v1 = vld [vmem:[#allocation10 + $0x4] ss:$16 sps:$4 sm:$0xff]   ;;  %vm172_vm0 = vcmask 130048   ;;  %v7283_v51 = vlaneseq }
  0x4a   :  { %217 = vmatprep.mubr.bf16.mxu0 %v7284_v0  ;;  %290 = vmatprep.mubr.bf16.mxu1 %v7284_v0  ;;  %v5518_v2 = vld [vmem:[#allocation10 + $0xc] ss:$16 sps:$4 sm:$0xff]   ;;  %v5520_v3 = vld [vmem:[#allocation10] ss:$16 sps:$4 sm:$0xff]   ;;  %v5521_v4 = vld [vmem:[#allocation10 + $0x8] ss:$16 sps:$4 sm:$0xff]  }
  0x4b   :  { %185 = vmatprep.subr.bf16.mxu0 %v5516_v1  ;;  %258 = vmatprep.subr.bf16.mxu1 %v5518_v2  ;;  %v5522_v5 = vld [vmem:[%s7272_s0] sm:$0xff]   ;;  %v5526_v8 = vld [vmem:[#allocation12 + $0x8] ss:$16 sps:$4 sm:$0xff]   ;;  %v6192_v9 = vld [vmem:[#allocation12 + $0xc] ss:$16 sps:$4 sm:$0xff]   ;;  %v6067_v41 = vmov 0.0|0.0  }
  0x4c   :  { %186 = vmatpush1.bf16.msra.mxu0 %v5520_v3  ;;  %259 = vmatpush1.bf16.msra.mxu1 %v5521_v4  ;;  %v6187_v6 = vld [vmem:[#allocation12] ss:$16 sps:$4 sm:$0xff]   ;;  %v6189_v7 = vld [vmem:[#allocation12 + $0x4] ss:$16 sps:$4 sm:$0xff]   ;;  %v6202_v12 = vld [vmem:[#allocation12 + $0x2c] ss:$16 sps:$4 sm:$0xff]  }
  0x4d   :  { %564 = vmatprep.subr.bf16.mxu0 %v6189_v7  ;;  %v6196_v10 = vld [vmem:[#allocation12 + $0x24] ss:$16 sps:$4 sm:$0xff]   ;;  %605 = vmatprep.subr.bf16.mxu1 %v6192_v9  ;;  %v6200_v11 = vld [vmem:[#allocation12 + $0x20] ss:$16 sps:$4 sm:$0xff]   ;;  %v6205_v13 = vld [vmem:[#allocation12 + $0x28] ss:$16 sps:$4 sm:$0xff]  }
  0x4e   :  { %v5535_v14 = vld [vmem:[%s7272_s0 + $0x8] sm:$0xff]   ;;  %v6213_v15 = vld [vmem:[#allocation12 + $0x44] ss:$16 sps:$4 sm:$0xff]   ;;  %v6216_v16 = vld [vmem:[#allocation12 + $0x40] ss:$16 sps:$4 sm:$0xff]   ;;  %v7286_v43 = vmov 0.0  }
  0x4f   :  { %4734 = vmatmul.mubr.msk.bf16.vlgmr.msra.gmra.mrb[0].mxu0 %vm172_vm0, %v5522_v5  ;;  %4738 = vmatmul.mubr.msk.bf16.vlgmr.msra.gmra.mrb[0].mxu1 %vm172_vm0, %v5522_v5  ;;  %v6218_v17 = vld [vmem:[#allocation12 + $0x4c] ss:$16 sps:$4 sm:$0xff]   ;;  %v6222_v18 = vld [vmem:[#allocation12 + $0x48] ss:$16 sps:$4 sm:$0xff]   ;;  %v6224_v19 = vld [vmem:[#allocation12 + $0x64] ss:$16 sps:$4 sm:$0xff]  }
  0x50   :  { %565 = vmatpush1.bf16.msra.mxu0 %v6187_v6  ;;  %606 = vmatpush1.bf16.msra.mxu1 %v5526_v8  ;;  %v6229_v20 = vld [vmem:[#allocation12 + $0x6c] ss:$16 sps:$4 sm:$0xff]   ;;  %v6232_v21 = vld [vmem:[#allocation12 + $0x60] ss:$16 sps:$4 sm:$0xff]   ;;  %v6237_v22 = vld [vmem:[#allocation12 + $0x68] ss:$16 sps:$4 sm:$0xff]  }
  0x51   :  { %566 = vmatprep.subr.bf16.mxu0 %v6196_v10  ;;  %607 = vmatprep.subr.bf16.mxu1 %v6202_v12  ;;  %v6239_v23 = vld [vmem:[#allocation12 + $0x84] ss:$16 sps:$4 sm:$0xff]   ;;  %v6243_v24 = vld [vmem:[#allocation12 + $0x8c] ss:$16 sps:$4 sm:$0xff]   ;;  %v6249_v26 = vld [vmem:[#allocation12 + $0x80] ss:$16 sps:$4 sm:$0xff]  }
  0x52   :  { %227 = vmatprep.mubr.bf16.mxu0 %v7284_v0  ;;  %300 = vmatprep.mubr.bf16.mxu1 %v7284_v0  ;;  %v5548_v25 = vld [vmem:[%s7272_s0 + $0x10] sm:$0xff]   ;;  %v6253_v27 = vld [vmem:[#allocation12 + $0x88] ss:$16 sps:$4 sm:$0xff]   ;;  %v6258_v29 = vld [vmem:[#allocation12 + $0xac] ss:$16 sps:$4 sm:$0xff]   ;;  %vm6069_vm1 = vmmov 0  }
  0x53   :  { %v6255_v28 = vld [vmem:[#allocation12 + $0xa4] ss:$16 sps:$4 sm:$0xff]   ;;  %v6262_v30 = vld [vmem:[#allocation12 + $0xa0] ss:$16 sps:$4 sm:$0xff]   ;;  %v6265_v31 = vld [vmem:[#allocation12 + $0xa8] ss:$16 sps:$4 sm:$0xff]  }
  0x54   :  { %567 = vmatpush1.bf16.msra.mxu0 %v6200_v11  ;;  %608 = vmatpush1.bf16.msra.mxu1 %v6205_v13  ;;  %v5561_v32 = vld [vmem:[%s7272_s0 + $0x18] sm:$0xff]   ;;  %v6273_v33 = vld [vmem:[#allocation12 + $0xc4] ss:$16 sps:$4 sm:$0xff]   ;;  %v6277_v34 = vld [vmem:[#allocation12 + $0xc0] ss:$16 sps:$4 sm:$0xff]   ;;  %v113_v52 = vshrl.u32 %v7283_v51, 7 }
  0x55   :  { %568 = vmatprep.subr.bf16.mxu0 %v6213_v15  ;;  %609 = vmatprep.subr.bf16.mxu1 %v6218_v17  ;;  %v6279_v35 = vld [vmem:[#allocation12 + $0xcc] ss:$16 sps:$4 sm:$0xff]   ;;  %v6281_v36 = vld [vmem:[#allocation12 + $0xc8] ss:$16 sps:$4 sm:$0xff]   ;;  %v6283_v37 = vld [vmem:[#allocation12 + $0xe4] ss:$16 sps:$4 sm:$0xff]  }
  0x56   :  { %v6286_v38 = vld [vmem:[#allocation12 + $0xec] ss:$16 sps:$4 sm:$0xff]   ;;  %v6291_v39 = vld [vmem:[#allocation12 + $0xe0] ss:$16 sps:$4 sm:$0xff]   ;;  %v6295_v40 = vld [vmem:[#allocation12 + $0xe8] ss:$16 sps:$4 sm:$0xff]  }
  0x57   :  { %4735 = vmatmul.mubr.msk.bf16.gmra.mrb[4].mxu0 %vm172_vm0, %v5535_v14  ;;  %4739 = vmatmul.mubr.msk.bf16.gmra.mrb[4].mxu1 %vm172_vm0, %v5535_v14  ;;  %v5574_v42 = vld [vmem:[%s7277_s5] sm:$0xff]   ;;  %v5575_v44 = vld [vmem:[%s7277_s5 + $0x8] sm:$0xff]   ;;  %v5576_v45 = vld [vmem:[%s7277_s5 + $0x10] sm:$0xff]   ;;  %v122_v53 = vsub.s32 2, %v113_v52  ;;  %v126_v54 = vsub.s32 3, %v113_v52  ;;  %v114_v55 = vsub.s32 0, %v113_v52 }
  0x58   :  { %569 = vmatpush1.bf16.msra.mxu0 %v6216_v16  ;;  %237 = vmatprep.mubr.bf16.mxu0 %v7284_v0  ;;  %v5577_v46 = vld [vmem:[%s7277_s5 + $0x18] sm:$0xff]   ;;  %v5578_v47 = vld [vmem:[%s7277_s5 + $0x20] sm:$0xff]   ;;  %v5579_v48 = vld [vmem:[%s7277_s5 + $0x28] sm:$0xff]   ;;  %v118_v57 = vsub.s32 1, %v113_v52  ;;  %vm95_vm2 = vcmask 261120   ;;  %s6071_s17 = smov 32  }
  0x59   :  { %610 = vmatpush1.bf16.msra.mxu1 %v6222_v18  ;;  %570 = vmatprep.subr.bf16.mxu0 %v6224_v19  ;;  %v5580_v49 = vld [vmem:[%s7277_s5 + $0x30] sm:$0xff]   ;;  %v5581_v50 = vld [vmem:[%s7277_s5 + $0x38] sm:$0xff]   ;;  %s6072_s2 = smov 96   ;;  %vm4710_vm6 = vcmask 31744  }
  0x5a   :  { %611 = vmatprep.subr.bf16.mxu1 %v6229_v20  ;;  %310 = vmatprep.mubr.bf16.mxu1 %v7284_v0  ;;  %v110_v56 = vld [vmem:[#allocation13] sm:$0xf] }
  0x5b   :  { %v6359_v58 = vrot.slane %v110_v56, %v122_v53  ;;  %v6365_v61 = vrot.slane %v110_v56, %v126_v54  ;;  %v115_v62 = vrot.slane %v110_v56, %v114_v55  ;;  %v119_v2 = vrot.slane %v110_v56, %v118_v57 }
  0x5c   :  { %571 = vmatpush1.bf16.msra.mxu0 %v6232_v21 }
  0x5d   :  { %612 = vmatpush1.bf16.msra.mxu1 %v6237_v22  ;;  %572 = vmatprep.subr.bf16.mxu0 %v6239_v23 }
  0x5e   :  { %613 = vmatprep.subr.bf16.mxu1 %v6243_v24 }
  0x5f   :  { %4736 = vmatmul.mubr.msk.bf16.gmra.mrb[8].mxu0 %vm172_vm0, %v5548_v25  ;;  %4740 = vmatmul.mubr.msk.bf16.gmra.mrb[8].mxu1 %vm172_vm0, %v5548_v25 }
  0x60   :  { %573 = vmatpush1.bf16.msra.mxu0 %v6249_v26  ;;  %247 = vmatprep.mubr.bf16.mxu0 %v7284_v0 }
  0x61   :  { %614 = vmatpush1.bf16.msra.mxu1 %v6253_v27  ;;  %574 = vmatprep.subr.bf16.mxu0 %v6255_v28 }
  0x62   :  { %615 = vmatprep.subr.bf16.mxu1 %v6258_v29  ;;  %320 = vmatprep.mubr.bf16.mxu1 %v7284_v0 }
  0x64   :  { %575 = vmatpush1.bf16.msra.mxu0 %v6262_v30 }
  0x65   :  { %616 = vmatpush1.bf16.msra.mxu1 %v6265_v31  ;;  %576 = vmatprep.subr.bf16.mxu0 %v6273_v33 }
  0x66   :  { %617 = vmatprep.subr.bf16.mxu1 %v6279_v35 }
  0x67   :  { %4737 = vmatmul.mubr.msk.bf16.gmra.mrb[12].mxu0 %vm172_vm0, %v5561_v32  ;;  %4741 = vmatmul.mubr.msk.bf16.gmra.mrb[12].mxu1 %vm172_vm0, %v5561_v32 }
  0x68   :  { %577 = vmatpush1.bf16.msra.mxu0 %v6277_v34  ;;  %596 = vmatprep.mubr.bf16.mxu0 %v7284_v0 }
  0x69   :  { %618 = vmatpush1.bf16.msra.mxu1 %v6281_v36  ;;  %578 = vmatprep.subr.bf16.mxu0 %v6283_v37 }
  0x6a   :  { %619 = vmatprep.subr.bf16.mxu1 %v6286_v38  ;;  %637 = vmatprep.mubr.bf16.mxu1 %v7284_v0 }
  0x6c   :  { %579 = vmatpush1.bf16.msra.mxu0 %v6291_v39 }
  0x6d   :  { %620 = vmatpush1.bf16.msra.mxu1 %v6295_v40  ;;  %5229 = vmatprep.subr.bf16.mxu0 %v7286_v43 }
  0x6e   :  { %993 = vmatprep.subr.bf16.mxu1 %v6189_v7 }
  0x6f   :  { %597 = vmatmul.mubr.bf16.vlgmr.msra.gmra.mrb[16].mxu0 %v6067_v41 }
  0x70   :  { %638 = vmatmul.mubr.bf16.vlgmr.msra.gmra.mrb[16].mxu1 %v6067_v41  ;;  %5230 = vmatpush3.bf16.msra.mxu0 %v5574_v42 }
  0x71   :  { %994 = vmatpush1.bf16.msra.mxu1 %v6187_v6  ;;  %1025 = vmatprep.mubr.bf16.mxu1 %v7284_v0 }
  0x72   :  { %995 = vmatprep.subr.bf16.mxu1 %v6196_v10  ;;  %5231 = vmatprep.subr.bf16.mxu0 %v7286_v43 }
  0x73   :  { %5245 = vmatprep.mubr.msk.bf16.mxu0 %vm6069_vm1, %v7286_v43 }
  0x74   :  { %5232 = vmatpush3.bf16.msra.mxu0 %v5575_v44 }
  0x75   :  { %996 = vmatpush1.bf16.msra.mxu1 %v6200_v11  ;;  %5233 = vmatprep.subr.bf16.mxu0 %v7286_v43 }
  0x76   :  { %997 = vmatprep.subr.bf16.mxu1 %v6213_v15 }
  0x78   :  { %5234 = vmatpush3.bf16.msra.mxu0 %v5576_v45 }
  0x79   :  { %998 = vmatpush1.bf16.msra.mxu1 %v6216_v16  ;;  %5235 = vmatprep.subr.bf16.mxu0 %v7286_v43 }
  0x7a   :  { %999 = vmatprep.subr.bf16.mxu1 %v6224_v19 }
  0x7c   :  { %5236 = vmatpush3.bf16.msra.mxu0 %v5577_v46 }
  0x7d   :  { %1000 = vmatpush1.bf16.msra.mxu1 %v6232_v21  ;;  %5237 = vmatprep.subr.bf16.mxu0 %v7286_v43 }
  0x7e   :  { %1001 = vmatprep.subr.bf16.mxu1 %v6239_v23 }
  0x80   :  { %5238 = vmatpush3.bf16.msra.mxu0 %v5578_v47 }
  0x81   :  { %1002 = vmatpush1.bf16.msra.mxu1 %v6249_v26  ;;  %5239 = vmatprep.subr.bf16.mxu0 %v7286_v43 }
  0x82   :  { %1003 = vmatprep.subr.bf16.mxu1 %v6255_v28 }
  0x84   :  { %5240 = vmatpush3.bf16.msra.mxu0 %v5579_v48 }
  0x85   :  { %1004 = vmatpush1.bf16.msra.mxu1 %v6262_v30  ;;  %5241 = vmatprep.subr.bf16.mxu0 %v7286_v43 }
  0x86   :  { %1005 = vmatprep.subr.bf16.mxu1 %v6273_v33 }
  0x88   :  { %5242 = vmatpush3.bf16.msra.mxu0 %v5580_v49 }
  0x89   :  { %1006 = vmatpush1.bf16.msra.mxu1 %v6277_v34  ;;  %5243 = vmatprep.subr.bf16.mxu0 %v7286_v43 }
  0x8a   :  { %1007 = vmatprep.subr.bf16.mxu1 %v6283_v37 }
  0x8c   :  { %5244 = vmatpush3.bf16.msra.mxu0 %v5581_v50 }
  0x8d   :  { %1008 = vmatpush1.bf16.msra.mxu1 %v6291_v39  ;;  %1034 = vmatprep.subr.bf16.mxu0 %v6192_v9 }
  0x8e   :  { %5249 = vmatprep.subr.bf16.mxu1 %v7286_v43 }
 0x122   :  { %v6361_v59 = vpop.f32.mrb[0].mxu0  ;;  %v6363_v60 = vpop.f32.mrb[0].mxu1 }
 0x123   :  { %v221_v63 = vpop.f32.mrb[1].mxu0  ;;  %v294_v1 = vpop.f32.mrb[1].mxu1 }
 0x124   :  { %v223_v3 = vpop.f32.mrb[2].mxu0  ;;  %v296_v4 = vpop.f32.mrb[2].mxu1 }
 0x125   :  { %v6367_v5 = vadd.f32 %v223_v3, %v115_v62  ;;  %v225_v6 = vpop.f32.mrb[3].mxu0  ;;  %v6370_v7 = vadd.f32 %v296_v4, %v6359_v58  ;;  %v298_v8 = vpop.f32.mrb[3].mxu1 }
 0x126   :  { %v6372_v9 = vadd.f32 %v225_v6, %v119_v2  ;;  %v6375_v10 = vadd.f32 %v298_v8, %v6365_v61 }
 0x12a   :  { %v229_v11 = vpop.f32.mrb[4].mxu0  ;;  %v302_v14 = vpop.f32.mrb[4].mxu1 }
 0x12b   :  { %v6377_v25 = vadd.f32 %v229_v11, %v115_v62  ;;  %v231_v32 = vpop.f32.mrb[5].mxu0  ;;  %v6380_v41 = vadd.f32 %v302_v14, %v6359_v58  ;;  %v304_v42 = vpop.f32.mrb[5].mxu1 }
 0x12c   :  { %v6382_v44 = vadd.f32 %v231_v32, %v119_v2  ;;  %v233_v45 = vpop.f32.mrb[6].mxu0  ;;  %v6385_v46 = vadd.f32 %v304_v42, %v6365_v61  ;;  %v306_v47 = vpop.f32.mrb[6].mxu1 }
 0x12d   :  { %v6387_v48 = vadd.f32 %v233_v45, %v115_v62  ;;  %v235_v49 = vpop.f32.mrb[7].mxu0  ;;  %v6390_v50 = vadd.f32 %v306_v47, %v6359_v58  ;;  %v308_v52 = vpop.f32.mrb[7].mxu1 }
 0x12e   :  { %v6392_v53 = vadd.f32 %v235_v49, %v119_v2  ;;  %v6395_v54 = vadd.f32 %v308_v52, %v6365_v61 }
 0x132   :  { %v239_v55 = vpop.f32.mrb[8].mxu0  ;;  %v312_v56 = vpop.f32.mrb[8].mxu1 }
 0x133   :  { %v6397_v57 = vadd.f32 %v239_v55, %v115_v62  ;;  %v241_v3 = vpop.f32.mrb[9].mxu0  ;;  %v6400_v4 = vadd.f32 %v312_v56, %v6359_v58  ;;  %v314_v6 = vpop.f32.mrb[9].mxu1 }
 0x134   :  { %v6402_v8 = vadd.f32 %v241_v3, %v119_v2  ;;  %v243_v11 = vpop.f32.mrb[10].mxu0  ;;  %v6405_v14 = vadd.f32 %v314_v6, %v6365_v61  ;;  %v316_v32 = vpop.f32.mrb[10].mxu1 }
 0x135   :  { %7288 = vst [vmem:[#allocation18_spill] sm:$0xff] %v6400_v4  ;;  %v6407_v42 = vadd.f32 %v243_v11, %v115_v62  ;;  %v245_v45 = vpop.f32.mrb[11].mxu0  ;;  %v6410_v47 = vadd.f32 %v316_v32, %v6359_v58  ;;  %v318_v49 = vpop.f32.mrb[11].mxu1 }
 0x136   :  { %7289 = vst [vmem:[#allocation19_spill] sm:$0xff] %v6402_v8  ;;  %7290 = vst [vmem:[#allocation20_spill] sm:$0xff] %v6405_v14  ;;  %v6412_v52 = vadd.f32 %v245_v45, %v119_v2  ;;  %v6415_v55 = vadd.f32 %v318_v49, %v6365_v61 }
 0x137   :  { %7291 = vst [vmem:[#allocation21_spill] sm:$0xff] %v6407_v42  ;;  %7292 = vst [vmem:[#allocation22_spill] sm:$0xff] %v6410_v47 }
 0x138   :  { %7293 = vst [vmem:[#allocation23_spill] sm:$0xff] %v6412_v52  ;;  %7294 = vst [vmem:[#allocation24_spill] sm:$0xff] %v6415_v55 }
 0x13a   :  { %v249_v56 = vpop.f32.mrb[12].mxu0  ;;  %v322_v3 = vpop.f32.mrb[12].mxu1 }
 0x13b   :  { %v6417_v51 = vadd.f32 %v249_v56, %v115_v62  ;;  %v251_v0 = vpop.f32.mrb[13].mxu0  ;;  %v6420_v6 = vadd.f32 %v322_v3, %v6359_v58  ;;  %v324_v11 = vpop.f32.mrb[13].mxu1 }
 0x13c   :  { %v6422_v43 = vadd.f32 %v251_v0, %v119_v2  ;;  %v253_v42 = vpop.f32.mrb[14].mxu0  ;;  %v6425_v32 = vadd.f32 %v324_v11, %v6365_v61  ;;  %v326_v45 = vpop.f32.mrb[14].mxu1  ;;  %v220_v0 = vadd.f32 %v6361_v59, %v115_v62  ;;  %v293_v11 = vadd.f32 %v6363_v60, %v6359_v58 }
 0x13d   :  { %7295 = vst [vmem:[#allocation25_spill] sm:$0xff] %v6417_v51  ;;  %7296 = vst [vmem:[#allocation26_spill] sm:$0xff] %v6420_v6  ;;  %v6427_v47 = vadd.f32 %v253_v42, %v115_v62  ;;  %v255_v49 = vpop.f32.mrb[15].mxu0  ;;  %v6430_v55 = vadd.f32 %v326_v45, %v6359_v58  ;;  %v328_v56 = vpop.f32.mrb[15].mxu1  ;;  %v222_v6 = vadd.f32 %v221_v63, %v119_v2 }
 0x13e   :  { %7297 = vst [vmem:[#allocation27_spill] sm:$0xff] %v6422_v43  ;;  %7298 = vst [vmem:[#allocation28_spill] sm:$0xff] %v6425_v32  ;;  %v6432_v51 = vadd.f32 %v255_v49, %v119_v2  ;;  %v6435_v3 = vadd.f32 %v328_v56, %v6365_v61  ;;  %v295_v42 = vadd.f32 %v294_v1, %v6365_v61 }
 0x13f   :  { %7299 = vst [vmem:[#allocation29_spill] sm:$0xff] %v6427_v47  ;;  %7300 = vst [vmem:[#allocation30_spill] sm:$0xff] %v6430_v55 }
 0x140   :  { %7301 = vst [vmem:[#allocation31_spill] sm:$0xff] %v6432_v51  ;;  %7302 = vst [vmem:[#allocation32_spill] sm:$0xff] %v6435_v3 }
 0x142   :  { %v598_v32 = vpop.f32.mrb[16].mxu0 }
 0x143   :  { %v646_v47 = vadd.f32 %v598_v32, %v220_v0  ;;  %v639_v43 = vpop.f32.mrb[16].mxu1  ;;  %v600_v52 = vpop.f32.mrb[17].mxu0 }
 0x144   :  { %v648_v45 = vadd.f32 %v639_v43, %v293_v11  ;;  %v647_v55 = vadd.f32 %v600_v52, %v222_v6  ;;  %v641_v14 = vpop.f32.mrb[17].mxu1  ;;  %v602_v49 = vpop.f32.mrb[18].mxu0 }
 0x145   :  { %v4774_v51 = vmul.f32 -1.442695, %v646_v47  ;;  %v649_v4 = vadd.f32 %v641_v14, %v295_v42  ;;  %v603_v56 = vpop.f32.mrb[19].mxu0  ;;  %v643_v3 = vpop.f32.mrb[18].mxu1  ;;  %v7303_v42 = vmov 0.0   ;;  %v7304_v49 = vmov 0  }
 0x146   :  { %v4775_v8 = vmul.f32 -1.442695, %v647_v55  ;;  %v644_v59 = vpop.f32.mrb[19].mxu1  ;;  %96 = vst.msk [vmem:[#allocation6] sm:$0xff] %vm95_vm2, %v7303_v42  ;;  %97 = vst.msk [vmem:[#allocation7] sm:$0xff] %vm95_vm2, %v7303_v42 }
 0x147   :  { %5752 = vpow2.f32 %v4774_v51  ;;  %v4776_v62 = vmul.f32 -1.442695, %v649_v4 }
 0x148   :  { %5754 = vpow2.f32 %v4775_v8  ;;  %v675_v8 = vld [vmem:[#allocation8] sm:$0xff] }
 0x149   :  { %5756 = vpow2.f32 %v4776_v62 }
 0x14a   :  { %5758 = vtanh.f32 %v648_v45  ;;  %v6446_v45 = vld [vmem:[#allocation12 + $0x8] ss:$16 sps:$4 sm:$0xff]  }
 0x151   :  { %v5753_v58 = vpop.eup %5752 }
 0x152   :  { %v5755_v60 = vpop.eup %5754  ;;  %v653_v63 = vadd.f32 1.0, %v5753_v58 }
 0x153   :  { %v659_v61 = vadd.f32 1.0, %v5755_v60  ;;  %v5757_v43 = vpop.eup %5756 }
 0x154   :  { %5760 = vrcp.f32 %v653_v63  ;;  %v5759_v1 = vpop.eup %5758  ;;  %v666_v52 = vadd.f32 1.0, %v5757_v43 }
 0x155   :  { %5762 = vrcp.f32 %v659_v61 }
 0x156   :  { %5764 = vrcp.f32 %v666_v52  ;;  %v1105_v52 = vld [vmem:[#allocation8 + $0x8] sm:$0xff] }
 0x15e   :  { %v5761_v2 = vpop.eup %5760 }
 0x15f   :  { %v5763_v47 = vpop.eup %5762  ;;  %v671_v14 = vmul.f32 %v5761_v2, %v5759_v1 }
 0x160   :  { %v670_v6 = vmul.f32 0.0, %v5763_v47  ;;  %v5765_v51 = vpop.eup %5764 }
 0x162   :  { %v6441_v55 = vadd.f32 %v671_v14, %v670_v6 }
 0x164   :  { %5766 = vtanh.f32 %v6441_v55 }
 0x16e   :  { %v5767_v4 = vpop.eup %5766 }
 0x16f   :  { %v674_v32 = vmul.f32 %v5767_v4, %v5765_v51 }
 0x171   :  { %v800_v3 = vpack.c.bf16 %v674_v32, %v674_v32  ;;  %v676_v0 = vmul.f32 %v675_v8, %v674_v32  ;;  %v5951_v32 = vld [vmem:[#allocation12 + $0x28] ss:$16 sps:$4 sm:$0xff]  }
 0x173   :  { %1026 = vmatmul.mubr.bf16.vlgmr.msra.gmra.mrb[20].mxu1 %v800_v3  ;;  %v677_v11 = vpack.c.bf16 %v676_v0, %v676_v0  ;;  %v5953_v0 = vld [vmem:[#allocation12 + $0x48] ss:$16 sps:$4 sm:$0xff]  }
 0x174   :  { %5265 = vmatprep.mubr.msk.bf16.mxu1 %vm6069_vm1, %v7303_v42 }
 0x175   :  { %5246 = vmatmul.mubr.bf16.vlgmr.msra.gmra.mrb[20].mxu0 %v677_v11  ;;  %v5954_v11 = vld [vmem:[#allocation12 + $0x6c] ss:$16 sps:$4 sm:$0xff]  }
 0x176   :  { %1035 = vmatpush1.bf16.msra.mxu0 %v6446_v45  ;;  %1066 = vmatprep.mubr.bf16.mxu0 %v7304_v49 }
 0x177   :  { %1036 = vmatprep.subr.bf16.mxu0 %v6202_v12  ;;  %v5945_v12 = vld [vmem:[#allocation12 + $0x4] ss:$16 sps:$4 sm:$0xff]  }
 0x17a   :  { %1037 = vmatpush1.bf16.msra.mxu0 %v6205_v13  ;;  %v5946_v13 = vld [vmem:[#allocation12] ss:$16 sps:$4 sm:$0xff]  }
 0x17b   :  { %1038 = vmatprep.subr.bf16.mxu0 %v6218_v17  ;;  %v5947_v17 = vld [vmem:[#allocation12 + $0x24] ss:$16 sps:$4 sm:$0xff]  }
 0x17e   :  { %1039 = vmatpush1.bf16.msra.mxu0 %v6222_v18  ;;  %v5948_v18 = vld [vmem:[#allocation12 + $0x20] ss:$16 sps:$4 sm:$0xff]  }
 0x17f   :  { %1040 = vmatprep.subr.bf16.mxu0 %v6229_v20  ;;  %v5585_v20 = vld [vmem:[%s7277_s5 + $0x18] sm:$0xff]  }
 0x182   :  { %1041 = vmatpush1.bf16.msra.mxu0 %v6237_v22  ;;  %v5587_v22 = vld [vmem:[%s7277_s5 + $0x28] sm:$0xff]  }
 0x183   :  { %1042 = vmatprep.subr.bf16.mxu0 %v6243_v24  ;;  %v5589_v24 = vld [vmem:[%s7277_s5 + $0x38] sm:$0xff]  }
 0x186   :  { %1043 = vmatpush1.bf16.msra.mxu0 %v6253_v27 }
 0x187   :  { %1044 = vmatprep.subr.bf16.mxu0 %v6258_v29 }
 0x18a   :  { %1045 = vmatpush1.bf16.msra.mxu0 %v6265_v31 }
 0x18b   :  { %1046 = vmatprep.subr.bf16.mxu0 %v6279_v35 }
 0x18e   :  { %1047 = vmatpush1.bf16.msra.mxu0 %v6281_v36 }
 0x18f   :  { %1048 = vmatprep.subr.bf16.mxu0 %v6286_v38 }
 0x192   :  { %1049 = vmatpush1.bf16.msra.mxu0 %v6295_v40 }
 0x193   :  { %1424 = vmatprep.subr.bf16.mxu0 %v5945_v12  ;;  %v5955_v12 = vld [vmem:[#allocation12 + $0x68] ss:$16 sps:$4 sm:$0xff]  }
 0x195   :  { %1067 = vmatmul.mubr.bf16.vlgmr.msra.gmra.mrb[24].mxu0 %v800_v3  ;;  %v5952_v3 = vld [vmem:[#allocation12 + $0x4c] ss:$16 sps:$4 sm:$0xff]  }
 0x196   :  { %1425 = vmatpush1.bf16.msra.mxu0 %v5946_v13  ;;  %1456 = vmatprep.mubr.bf16.mxu0 %v7304_v49  ;;  %v5956_v13 = vld [vmem:[#allocation12 + $0x8c] ss:$16 sps:$4 sm:$0xff]  }
 0x197   :  { %1426 = vmatprep.subr.bf16.mxu0 %v5947_v17  ;;  %v5957_v17 = vld [vmem:[#allocation12 + $0x88] ss:$16 sps:$4 sm:$0xff]  }
 0x19a   :  { %1427 = vmatpush1.bf16.msra.mxu0 %v5948_v18  ;;  %v5958_v18 = vld [vmem:[#allocation12 + $0xac] ss:$16 sps:$4 sm:$0xff]  }
 0x19b   :  { %1428 = vmatprep.subr.bf16.mxu0 %v6213_v15  ;;  %v5582_v15 = vld [vmem:[%s7277_s5] sm:$0xff]  }
 0x19c   :  { %5250 = vmatpush3.bf16.msra.mxu1 %v5582_v15  ;;  %v5960_v15 = vld [vmem:[#allocation12 + $0xcc] ss:$16 sps:$4 sm:$0xff]  }
 0x19d   :  { %5251 = vmatprep.subr.bf16.mxu1 %v7303_v42 }
 0x19e   :  { %1429 = vmatpush1.bf16.msra.mxu0 %v6216_v16  ;;  %v5583_v16 = vld [vmem:[%s7277_s5 + $0x8] sm:$0xff]  }
 0x19f   :  { %1430 = vmatprep.subr.bf16.mxu0 %v6224_v19  ;;  %v5584_v19 = vld [vmem:[%s7277_s5 + $0x10] sm:$0xff]  }
 0x1a0   :  { %5252 = vmatpush3.bf16.msra.mxu1 %v5583_v16  ;;  %v5961_v16 = vld [vmem:[#allocation12 + $0xc8] ss:$16 sps:$4 sm:$0xff]  }
 0x1a1   :  { %5253 = vmatprep.subr.bf16.mxu1 %v7303_v42 }
 0x1a2   :  { %1431 = vmatpush1.bf16.msra.mxu0 %v6232_v21  ;;  %v5586_v21 = vld [vmem:[%s7277_s5 + $0x20] sm:$0xff]  }
 0x1a3   :  { %1432 = vmatprep.subr.bf16.mxu0 %v6239_v23  ;;  %v5588_v23 = vld [vmem:[%s7277_s5 + $0x30] sm:$0xff]  }
 0x1a4   :  { %5254 = vmatpush3.bf16.msra.mxu1 %v5584_v19  ;;  %v5962_v19 = vld [vmem:[#allocation12 + $0xec] ss:$16 sps:$4 sm:$0xff]  }
 0x1a5   :  { %5255 = vmatprep.subr.bf16.mxu1 %v7303_v42 }
 0x1a6   :  { %1433 = vmatpush1.bf16.msra.mxu0 %v6249_v26  ;;  %v5949_v26 = vld [vmem:[#allocation12 + $0xc] ss:$16 sps:$4 sm:$0xff]  }
 0x1a7   :  { %1434 = vmatprep.subr.bf16.mxu0 %v6255_v28 }
 0x1a8   :  { %5256 = vmatpush3.bf16.msra.mxu1 %v5585_v20  ;;  %v5963_v20 = vld [vmem:[#allocation12 + $0xe8] ss:$16 sps:$4 sm:$0xff]  }
 0x1a9   :  { %5257 = vmatprep.subr.bf16.mxu1 %v7303_v42 }
 0x1aa   :  { %1435 = vmatpush1.bf16.msra.mxu0 %v6262_v30 }
 0x1ab   :  { %1436 = vmatprep.subr.bf16.mxu0 %v6273_v33 }
 0x1ac   :  { %5258 = vmatpush3.bf16.msra.mxu1 %v5586_v21  ;;  %v6522_v21 = vld [vmem:[#allocation12 + $0x4] ss:$16 sps:$4 sm:$0xff]  }
 0x1ad   :  { %5259 = vmatprep.subr.bf16.mxu1 %v7303_v42 }
 0x1ae   :  { %1437 = vmatpush1.bf16.msra.mxu0 %v6277_v34 }
 0x1af   :  { %1438 = vmatprep.subr.bf16.mxu0 %v6283_v37 }
 0x1b0   :  { %5260 = vmatpush3.bf16.msra.mxu1 %v5587_v22  ;;  %v6524_v22 = vld [vmem:[#allocation12] ss:$16 sps:$4 sm:$0xff]  }
 0x1b1   :  { %5261 = vmatprep.subr.bf16.mxu1 %v7303_v42 }
 0x1b2   :  { %1439 = vmatpush1.bf16.msra.mxu0 %v6291_v39 }
 0x1b3   :  { %5269 = vmatprep.subr.bf16.mxu0 %v7303_v42 }
 0x1b4   :  { %5262 = vmatpush3.bf16.msra.mxu1 %v5588_v23  ;;  %v5593_v23 = vld [vmem:[%s7277_s5] sm:$0xff]  }
 0x1b5   :  { %5263 = vmatprep.subr.bf16.mxu1 %v7303_v42 }
 0x1b8   :  { %5264 = vmatpush3.bf16.msra.mxu1 %v5589_v24  ;;  %v6531_v24 = vld [vmem:[#allocation12 + $0x24] ss:$16 sps:$4 sm:$0xff]  }
 0x1b9   :  { %1465 = vmatprep.subr.bf16.mxu1 %v5949_v26  ;;  %v6533_v26 = vld [vmem:[#allocation12 + $0x20] ss:$16 sps:$4 sm:$0xff]  }
 0x246   :  { %v1027_v27 = vpop.f32.mrb[20].mxu1 }
 0x247   :  { %v1075_v28 = vadd.f32 %v1027_v27, %v6367_v5  ;;  %v1029_v29 = vpop.f32.mrb[21].mxu1  ;;  %v5597_v27 = vld [vmem:[%s7277_s5 + $0x8] sm:$0xff]  }
 0x248   :  { %v1076_v30 = vadd.f32 %v1029_v29, %v6372_v9  ;;  %v1031_v31 = vpop.f32.mrb[22].mxu1  ;;  %v6543_v29 = vld [vmem:[#allocation12 + $0x40] ss:$16 sps:$4 sm:$0xff]  }
 0x249   :  { %v1032_v33 = vpop.f32.mrb[23].mxu1  ;;  %v4818_v35 = vmul.f32 -1.442695, %v1075_v28  ;;  %v6541_v28 = vld [vmem:[#allocation12 + $0x44] ss:$16 sps:$4 sm:$0xff]  }
 0x24a   :  { %v4819_v34 = vmul.f32 -1.442695, %v1076_v30  ;;  %v5601_v30 = vld [vmem:[%s7277_s5 + $0x10] sm:$0xff]  }
 0x24b   :  { %v6551_v31 = vld [vmem:[#allocation12 + $0x64] ss:$16 sps:$4 sm:$0xff]   ;;  %v6553_v33 = vld [vmem:[#allocation12 + $0x60] ss:$16 sps:$4 sm:$0xff]  }
 0x24c   :  { %5768 = vpow2.f32 %v4819_v34  ;;  %v5605_v34 = vld [vmem:[%s7277_s5 + $0x18] sm:$0xff]  }
 0x24d   :  { %5770 = vpow2.f32 %v4818_v35  ;;  %v6561_v35 = vld [vmem:[#allocation12 + $0x84] ss:$16 sps:$4 sm:$0xff]  }
 0x256   :  { %v5769_v36 = vpop.eup %5768 }
 0x257   :  { %v5771_v37 = vpop.eup %5770  ;;  %v1088_v38 = vadd.f32 1.0, %v5769_v36  ;;  %v6563_v36 = vld [vmem:[#allocation12 + $0x80] ss:$16 sps:$4 sm:$0xff]  }
 0x258   :  { %v1082_v39 = vadd.f32 1.0, %v5771_v37  ;;  %v5609_v37 = vld [vmem:[%s7277_s5 + $0x20] sm:$0xff]  }
 0x259   :  { %5772 = vrcp.f32 %v1088_v38  ;;  %v6571_v38 = vld [vmem:[#allocation12 + $0xa0] ss:$16 sps:$4 sm:$0xff]  }
 0x25a   :  { %5774 = vrcp.f32 %v1082_v39  ;;  %v6573_v39 = vld [vmem:[#allocation12 + $0xa4] ss:$16 sps:$4 sm:$0xff]  }
 0x263   :  { %v5773_v60 = vpop.eup %5772 }
 0x264   :  { %v5775_v63 = vpop.eup %5774  ;;  %v1099_v43 = vmul.f32 %v5773_v60, %v6441_v55  ;;  %v5950_v55 = vld [vmem:[#allocation12 + $0x2c] ss:$16 sps:$4 sm:$0xff]  }
 0x265   :  { %v6602_v60 = vld [vmem:[#allocation12 + $0xc] ss:$16 sps:$4 sm:$0xff]  }
 0x268   :  { %v1068_v40 = vpop.f32.mrb[24].mxu0 }
 0x269   :  { %v1077_v56 = vadd.f32 %v1068_v40, %v6370_v7  ;;  %v1070_v59 = vpop.f32.mrb[25].mxu0  ;;  %v5613_v40 = vld [vmem:[%s7277_s5 + $0x28] sm:$0xff]  }
 0x26a   :  { %v1078_v5 = vadd.f32 %v1070_v59, %v6375_v10  ;;  %v1072_v62 = vpop.f32.mrb[26].mxu0  ;;  %v6583_v59 = vld [vmem:[#allocation12 + $0xc0] ss:$16 sps:$4 sm:$0xff]  }
 0x26b   :  { %5776 = vtanh.f32 %v1077_v56  ;;  %v1073_v9 = vpop.f32.mrb[27].mxu0  ;;  %v6578_v56 = vld [vmem:[#allocation12 + $0xc4] ss:$16 sps:$4 sm:$0xff]  }
 0x26c   :  { %v4820_v58 = vmul.f32 -1.442695, %v1078_v5  ;;  %v5617_v5 = vld [vmem:[%s7277_s5 + $0x30] sm:$0xff]  }
 0x26d   :  { %v6589_v62 = vld [vmem:[#allocation12 + $0xe4] ss:$16 sps:$4 sm:$0xff]   ;;  %v6593_v9 = vld [vmem:[#allocation12 + $0xe0] ss:$16 sps:$4 sm:$0xff]  }
 0x26e   :  { %5778 = vpow2.f32 %v4820_v58  ;;  %v5621_v58 = vld [vmem:[%s7277_s5 + $0x38] sm:$0xff]  }
 0x275   :  { %v5777_v61 = vpop.eup %5776 }
 0x276   :  { %v1100_v1 = vmul.f32 %v5777_v61, %v5775_v63 }
 0x278   :  { %v5779_v2 = vpop.eup %5778  ;;  %v6514_v47 = vadd.f32 %v1100_v1, %v1099_v43 }
 0x279   :  { %v1095_v14 = vadd.f32 1.0, %v5779_v2 }
 0x27a   :  { %5780 = vtanh.f32 %v6514_v47 }
 0x27b   :  { %5782 = vrcp.f32 %v1095_v14 }
 0x284   :  { %v5781_v7 = vpop.eup %5780 }
 0x285   :  { %v5783_v10 = vpop.eup %5782 }
 0x286   :  { %v1103_v6 = vmul.f32 %v5783_v10, %v5781_v7 }
 0x288   :  { %v1231_v51 = vpack.c.bf16 %v1103_v6, %v1103_v6  ;;  %v1106_v4 = vmul.f32 %v1105_v52, %v1103_v6 }
 0x28a   :  { %1457 = vmatmul.mubr.bf16.vlgmr.msra.gmra.mrb[28].mxu0 %v1231_v51  ;;  %v1107_v8 = vpack.c.bf16 %v1106_v4, %v1106_v4 }
 0x28b   :  { %5285 = vmatprep.mubr.msk.bf16.mxu0 %vm6069_vm1, %v7303_v42  ;;  %5270 = vmatpush3.bf16.msra.mxu0 %v5593_v23 }
 0x28c   :  { %5266 = vmatmul.mubr.bf16.vlgmr.msra.gmra.mrb[24].mxu1 %v1107_v8  ;;  %5271 = vmatprep.subr.bf16.mxu0 %v7303_v42 }
 0x28d   :  { %1466 = vmatpush1.bf16.msra.mxu1 %v6446_v45  ;;  %1497 = vmatprep.mubr.bf16.mxu1 %v7304_v49  ;;  %v5959_v45 = vld [vmem:[#allocation12 + $0xa8] ss:$16 sps:$4 sm:$0xff]  }
 0x28e   :  { %1467 = vmatprep.subr.bf16.mxu1 %v5950_v55 }
 0x28f   :  { %5272 = vmatpush3.bf16.msra.mxu0 %v5597_v27 }
 0x290   :  { %5273 = vmatprep.subr.bf16.mxu0 %v7303_v42 }
 0x291   :  { %1468 = vmatpush1.bf16.msra.mxu1 %v5951_v32 }
 0x292   :  { %1469 = vmatprep.subr.bf16.mxu1 %v5952_v3 }
 0x293   :  { %5274 = vmatpush3.bf16.msra.mxu0 %v5601_v30  ;;  %v6613_v30 = vld [vmem:[#allocation12 + $0x8] ss:$16 sps:$4 sm:$0xff]  }
 0x294   :  { %5275 = vmatprep.subr.bf16.mxu0 %v7303_v42 }
 0x295   :  { %1470 = vmatpush1.bf16.msra.mxu1 %v5953_v0 }
 0x296   :  { %1471 = vmatprep.subr.bf16.mxu1 %v5954_v11 }
 0x297   :  { %5276 = vmatpush3.bf16.msra.mxu0 %v5605_v34 }
 0x298   :  { %5277 = vmatprep.subr.bf16.mxu0 %v7303_v42 }
 0x299   :  { %1472 = vmatpush1.bf16.msra.mxu1 %v5955_v12 }
 0x29a   :  { %1473 = vmatprep.subr.bf16.mxu1 %v5956_v13 }
 0x29b   :  { %5278 = vmatpush3.bf16.msra.mxu0 %v5609_v37  ;;  %v6615_v37 = vld [vmem:[#allocation12 + $0x2c] ss:$16 sps:$4 sm:$0xff]  }
 0x29c   :  { %5279 = vmatprep.subr.bf16.mxu0 %v7303_v42 }
 0x29d   :  { %1474 = vmatpush1.bf16.msra.mxu1 %v5957_v17 }
 0x29e   :  { %1475 = vmatprep.subr.bf16.mxu1 %v5958_v18 }
 0x29f   :  { %5280 = vmatpush3.bf16.msra.mxu0 %v5613_v40  ;;  %v6624_v40 = vld [vmem:[#allocation12 + $0x4c] ss:$16 sps:$4 sm:$0xff]  }
 0x2a0   :  { %5281 = vmatprep.subr.bf16.mxu0 %v7303_v42 }
 0x2a1   :  { %1476 = vmatpush1.bf16.msra.mxu1 %v5959_v45 }
 0x2a2   :  { %1477 = vmatprep.subr.bf16.mxu1 %v5960_v15 }
 0x2a3   :  { %5282 = vmatpush3.bf16.msra.mxu0 %v5617_v5  ;;  %v6627_v5 = vld [vmem:[#allocation12 + $0x48] ss:$16 sps:$4 sm:$0xff]  }
 0x2a4   :  { %5283 = vmatprep.subr.bf16.mxu0 %v7303_v42 }
 0x2a5   :  { %1478 = vmatpush1.bf16.msra.mxu1 %v5961_v16 }
 0x2a6   :  { %1479 = vmatprep.subr.bf16.mxu1 %v5962_v19  ;;  %v1536_v19 = vld [vmem:[#allocation8 + $0x10] sm:$0xff] }
 0x2a7   :  { %5284 = vmatpush3.bf16.msra.mxu0 %v5621_v58  ;;  %v6630_v58 = vld [vmem:[#allocation12 + $0x6c] ss:$16 sps:$4 sm:$0xff]  }
 0x2a8   :  { %1896 = vmatprep.subr.bf16.mxu0 %v6602_v60 }
 0x2a9   :  { %1480 = vmatpush1.bf16.msra.mxu1 %v5963_v20 }
 0x2aa   :  { %1855 = vmatprep.subr.bf16.mxu1 %v6522_v21 }
 0x2ac   :  { %1498 = vmatmul.mubr.bf16.vlgmr.msra.gmra.mrb[28].mxu1 %v1231_v51 }
 0x2ad   :  { %1887 = vmatprep.mubr.bf16.mxu1 %v7304_v49  ;;  %1856 = vmatpush1.bf16.msra.mxu1 %v6524_v22 }
 0x2ae   :  { %1857 = vmatprep.subr.bf16.mxu1 %v6531_v24 }
 0x2b1   :  { %1858 = vmatpush1.bf16.msra.mxu1 %v6533_v26 }
 0x2b2   :  { %1859 = vmatprep.subr.bf16.mxu1 %v6541_v28 }
 0x2b5   :  { %1860 = vmatpush1.bf16.msra.mxu1 %v6543_v29 }
 0x2b6   :  { %1861 = vmatprep.subr.bf16.mxu1 %v6551_v31 }
 0x2b9   :  { %1862 = vmatpush1.bf16.msra.mxu1 %v6553_v33 }
 0x2ba   :  { %1863 = vmatprep.subr.bf16.mxu1 %v6561_v35 }
 0x2bd   :  { %1864 = vmatpush1.bf16.msra.mxu1 %v6563_v36 }
 0x2be   :  { %1865 = vmatprep.subr.bf16.mxu1 %v6573_v39 }
 0x2c1   :  { %1866 = vmatpush1.bf16.msra.mxu1 %v6571_v38 }
 0x2c2   :  { %1867 = vmatprep.subr.bf16.mxu1 %v6578_v56 }
 0x2c5   :  { %1868 = vmatpush1.bf16.msra.mxu1 %v6583_v59 }
 0x2c6   :  { %1869 = vmatprep.subr.bf16.mxu1 %v6589_v62 }
 0x2c9   :  { %1870 = vmatpush1.bf16.msra.mxu1 %v6593_v9 }
 0x2ca   :  { %5289 = vmatprep.subr.bf16.mxu1 %v7303_v42 }
 0x35d   :  { %v1458_v63 = vpop.f32.mrb[28].mxu0 }
 0x35e   :  { %v1506_v61 = vadd.f32 %v1458_v63, %v6377_v25  ;;  %v1460_v43 = vpop.f32.mrb[29].mxu0  ;;  %v6633_v63 = vld [vmem:[#allocation12 + $0x68] ss:$16 sps:$4 sm:$0xff]  }
 0x35f   :  { %v1507_v1 = vadd.f32 %v1460_v43, %v6382_v44  ;;  %v1462_v2 = vpop.f32.mrb[30].mxu0  ;;  %v6639_v43 = vld [vmem:[#allocation12 + $0x88] ss:$16 sps:$4 sm:$0xff]  }
 0x360   :  { %v1463_v14 = vpop.f32.mrb[31].mxu0  ;;  %v4862_v10 = vmul.f32 -1.442695, %v1506_v61  ;;  %v6636_v61 = vld [vmem:[#allocation12 + $0x8c] ss:$16 sps:$4 sm:$0xff]  }
 0x361   :  { %v4863_v7 = vmul.f32 -1.442695, %v1507_v1  ;;  %v6642_v1 = vld [vmem:[#allocation12 + $0xac] ss:$16 sps:$4 sm:$0xff]   ;;  %v6645_v2 = vld [vmem:[#allocation12 + $0xa8] ss:$16 sps:$4 sm:$0xff]  }
 0x362   :  { %v6648_v14 = vld [vmem:[#allocation12 + $0xcc] ss:$16 sps:$4 sm:$0xff]  }
 0x363   :  { %5784 = vpow2.f32 %v4863_v7  ;;  %v6651_v7 = vld [vmem:[#allocation12 + $0xc8] ss:$16 sps:$4 sm:$0xff]  }
 0x364   :  { %5786 = vpow2.f32 %v4862_v10  ;;  %v6654_v10 = vld [vmem:[#allocation12 + $0xec] ss:$16 sps:$4 sm:$0xff]  }
 0x36d   :  { %v5785_v52 = vpop.eup %5784 }
 0x36e   :  { %v5787_v6 = vpop.eup %5786  ;;  %v1519_v51 = vadd.f32 1.0, %v5785_v52  ;;  %v6657_v52 = vld [vmem:[#allocation12 + $0xe8] ss:$16 sps:$4 sm:$0xff]  }
 0x36f   :  { %v1513_v4 = vadd.f32 1.0, %v5787_v6  ;;  %v5646_v6 = vld [vmem:[%s7277_s5] sm:$0xff]  }
 0x370   :  { %5788 = vrcp.f32 %v1519_v51  ;;  %v5647_v51 = vld [vmem:[%s7277_s5 + $0x8] sm:$0xff]  }
 0x371   :  { %5790 = vrcp.f32 %v1513_v4  ;;  %v5648_v4 = vld [vmem:[%s7277_s5 + $0x10] sm:$0xff]  }
 0x37a   :  { %v5789_v11 = vpop.eup %5788 }
 0x37b   :  { %v5791_v12 = vpop.eup %5790  ;;  %v1530_v17 = vmul.f32 %v5789_v11, %v6514_v47  ;;  %v6620_v47 = vld [vmem:[#allocation12 + $0x28] ss:$16 sps:$4 sm:$0xff]  }
 0x37f   :  { %v1499_v8 = vpop.f32.mrb[28].mxu1 }
 0x380   :  { %v1508_v55 = vadd.f32 %v1499_v8, %v6380_v41  ;;  %v1501_v32 = vpop.f32.mrb[29].mxu1  ;;  %v5649_v8 = vld [vmem:[%s7277_s5 + $0x18] sm:$0xff]  }
 0x381   :  { %v1509_v25 = vadd.f32 %v1501_v32, %v6385_v46  ;;  %v1503_v3 = vpop.f32.mrb[30].mxu1  ;;  %v5651_v32 = vld [vmem:[%s7277_s5 + $0x28] sm:$0xff]  }
 0x382   :  { %5792 = vtanh.f32 %v1508_v55  ;;  %v1504_v44 = vpop.f32.mrb[31].mxu1  ;;  %v5650_v55 = vld [vmem:[%s7277_s5 + $0x20] sm:$0xff]   ;;  %v5653_v3 = vld [vmem:[%s7277_s5 + $0x38] sm:$0xff]  }
 0x383   :  { %v4864_v0 = vmul.f32 -1.442695, %v1509_v25  ;;  %v5652_v25 = vld [vmem:[%s7277_s5 + $0x30] sm:$0xff]  }
 0x385   :  { %5794 = vpow2.f32 %v4864_v0 }
 0x38c   :  { %v5793_v13 = vpop.eup %5792 }
 0x38d   :  { %v1531_v18 = vmul.f32 %v5793_v13, %v5791_v12 }
 0x38f   :  { %v5795_v45 = vpop.eup %5794  ;;  %v6610_v15 = vadd.f32 %v1531_v18, %v1530_v17 }
 0x390   :  { %v1526_v16 = vadd.f32 1.0, %v5795_v45 }
 0x391   :  { %5796 = vtanh.f32 %v6610_v15 }
 0x392   :  { %5798 = vrcp.f32 %v1526_v16 }
 0x39b   :  { %v5797_v41 = vpop.eup %5796 }
 0x39c   :  { %v5799_v46 = vpop.eup %5798 }
 0x39d   :  { %v1534_v20 = vmul.f32 %v5799_v46, %v5797_v41 }
 0x39f   :  { %v1662_v23 = vpack.c.bf16 %v1534_v20, %v1534_v20  ;;  %v1537_v27 = vmul.f32 %v1536_v19, %v1534_v20 }
 0x3a1   :  { %1888 = vmatmul.mubr.bf16.vlgmr.msra.gmra.mrb[32].mxu1 %v1662_v23  ;;  %v1538_v34 = vpack.c.bf16 %v1537_v27, %v1537_v27 }
 0x3a2   :  { %5305 = vmatprep.mubr.msk.bf16.mxu1 %vm6069_vm1, %v7303_v42  ;;  %5290 = vmatpush3.bf16.msra.mxu1 %v5646_v6 }
 0x3a3   :  { %5286 = vmatmul.mubr.bf16.vlgmr.msra.gmra.mrb[32].mxu0 %v1538_v34  ;;  %5291 = vmatprep.subr.bf16.mxu1 %v7303_v42 }
 0x3a4   :  { %1897 = vmatpush1.bf16.msra.mxu0 %v6613_v30  ;;  %1928 = vmatprep.mubr.bf16.mxu0 %v7304_v49 }
 0x3a5   :  { %1898 = vmatprep.subr.bf16.mxu0 %v6615_v37 }
 0x3a6   :  { %5292 = vmatpush3.bf16.msra.mxu1 %v5647_v51 }
 0x3a7   :  { %5293 = vmatprep.subr.bf16.mxu1 %v7303_v42 }
 0x3a8   :  { %1899 = vmatpush1.bf16.msra.mxu0 %v6620_v47 }
 0x3a9   :  { %1900 = vmatprep.subr.bf16.mxu0 %v6624_v40 }
 0x3aa   :  { %5294 = vmatpush3.bf16.msra.mxu1 %v5648_v4 }
 0x3ab   :  { %5295 = vmatprep.subr.bf16.mxu1 %v7303_v42 }
 0x3ac   :  { %1901 = vmatpush1.bf16.msra.mxu0 %v6627_v5 }
 0x3ad   :  { %1902 = vmatprep.subr.bf16.mxu0 %v6630_v58 }
 0x3ae   :  { %5296 = vmatpush3.bf16.msra.mxu1 %v5649_v8 }
 0x3af   :  { %5297 = vmatprep.subr.bf16.mxu1 %v7303_v42 }
 0x3b0   :  { %1903 = vmatpush1.bf16.msra.mxu0 %v6633_v63 }
 0x3b1   :  { %1904 = vmatprep.subr.bf16.mxu0 %v6636_v61 }
 0x3b2   :  { %5298 = vmatpush3.bf16.msra.mxu1 %v5650_v55 }
 0x3b3   :  { %5299 = vmatprep.subr.bf16.mxu1 %v7303_v42 }
 0x3b4   :  { %1905 = vmatpush1.bf16.msra.mxu0 %v6639_v43 }
 0x3b5   :  { %1906 = vmatprep.subr.bf16.mxu0 %v6642_v1 }
 0x3b6   :  { %5300 = vmatpush3.bf16.msra.mxu1 %v5651_v32 }
 0x3b7   :  { %5301 = vmatprep.subr.bf16.mxu1 %v7303_v42 }
 0x3b8   :  { %1907 = vmatpush1.bf16.msra.mxu0 %v6645_v2 }
 0x3b9   :  { %1908 = vmatprep.subr.bf16.mxu0 %v6648_v14 }
 0x3ba   :  { %5302 = vmatpush3.bf16.msra.mxu1 %v5652_v25 }
 0x3bb   :  { %5303 = vmatprep.subr.bf16.mxu1 %v7303_v42 }
 0x3bc   :  { %1909 = vmatpush1.bf16.msra.mxu0 %v6651_v7 }
 0x3bd   :  { %1910 = vmatprep.subr.bf16.mxu0 %v6654_v10 }
 0x3be   :  { %5304 = vmatpush3.bf16.msra.mxu1 %v5653_v3 }
 0x3bf   :  { %2327 = vmatprep.subr.bf16.mxu1 %v6602_v60 }
 0x3c0   :  { %1911 = vmatpush1.bf16.msra.mxu0 %v6657_v52 }
 0x3c1   :  { %2286 = vmatprep.subr.bf16.mxu0 %v6522_v21 }
 0x3c3   :  { %1929 = vmatmul.mubr.bf16.vlgmr.msra.gmra.mrb[36].mxu0 %v1662_v23 }
 0x3c4   :  { %2287 = vmatpush1.bf16.msra.mxu0 %v6524_v22  ;;  %2318 = vmatprep.mubr.bf16.mxu0 %v7304_v49 }
 0x3c5   :  { %2288 = vmatprep.subr.bf16.mxu0 %v6531_v24 }
 0x3c8   :  { %2289 = vmatpush1.bf16.msra.mxu0 %v6533_v26 }
 0x3c9   :  { %2290 = vmatprep.subr.bf16.mxu0 %v6541_v28 }
 0x3cc   :  { %2291 = vmatpush1.bf16.msra.mxu0 %v6543_v29 }
 0x3cd   :  { %2292 = vmatprep.subr.bf16.mxu0 %v6551_v31 }
 0x3d0   :  { %2293 = vmatpush1.bf16.msra.mxu0 %v6553_v33 }
 0x3d1   :  { %2294 = vmatprep.subr.bf16.mxu0 %v6561_v35 }
 0x3d4   :  { %2295 = vmatpush1.bf16.msra.mxu0 %v6563_v36 }
 0x3d5   :  { %2296 = vmatprep.subr.bf16.mxu0 %v6573_v39 }
 0x3d8   :  { %2297 = vmatpush1.bf16.msra.mxu0 %v6571_v38 }
 0x3d9   :  { %2298 = vmatprep.subr.bf16.mxu0 %v6578_v56 }
 0x3dc   :  { %2299 = vmatpush1.bf16.msra.mxu0 %v6583_v59 }
 0x3dd   :  { %2300 = vmatprep.subr.bf16.mxu0 %v6589_v62 }
 0x3e0   :  { %2301 = vmatpush1.bf16.msra.mxu0 %v6593_v9 }
 0x3e1   :  { %5309 = vmatprep.subr.bf16.mxu0 %v7303_v42 }
 0x474   :  { %v1889_v44 = vpop.f32.mrb[32].mxu1 }
 0x475   :  { %v1937_v0 = vadd.f32 %v1889_v44, %v6387_v48  ;;  %v1891_v11 = vpop.f32.mrb[33].mxu1 }
 0x476   :  { %v1938_v12 = vadd.f32 %v1891_v11, %v6392_v53  ;;  %v1893_v13 = vpop.f32.mrb[34].mxu1 }
 0x477   :  { %v1894_v17 = vpop.f32.mrb[35].mxu1  ;;  %v4906_v45 = vmul.f32 -1.442695, %v1937_v0  ;;  %v1967_v0 = vld [vmem:[#allocation8 + $0x18] sm:$0xff] }
 0x478   :  { %v4907_v18 = vmul.f32 -1.442695, %v1938_v12 }
 0x47a   :  { %5800 = vpow2.f32 %v4907_v18 }
 0x47b   :  { %5802 = vpow2.f32 %v4906_v45 }
 0x484   :  { %v5801_v16 = vpop.eup %5800 }
 0x485   :  { %v5803_v41 = vpop.eup %5802  ;;  %v1950_v46 = vadd.f32 1.0, %v5801_v16 }
 0x486   :  { %v1944_v19 = vadd.f32 1.0, %v5803_v41 }
 0x487   :  { %5804 = vrcp.f32 %v1950_v46 }
 0x488   :  { %5806 = vrcp.f32 %v1944_v19  ;;  %v7306_v19 = vld [vmem:[#allocation18_spill] sm:$0xff] }
 0x491   :  { %v5805_v51 = vpop.eup %5804 }
 0x492   :  { %v5807_v4 = vpop.eup %5806  ;;  %v1961_v55 = vmul.f32 %v5805_v51, %v6610_v15 }
 0x496   :  { %v1930_v20 = vpop.f32.mrb[36].mxu0 }
 0x497   :  { %v1939_v23 = vadd.f32 %v1930_v20, %v6390_v50  ;;  %v1932_v27 = vpop.f32.mrb[37].mxu0 }
 0x498   :  { %v1940_v48 = vadd.f32 %v1932_v27, %v6395_v54  ;;  %v1934_v34 = vpop.f32.mrb[38].mxu0 }
 0x499   :  { %5808 = vtanh.f32 %v1939_v23  ;;  %v1935_v53 = vpop.f32.mrb[39].mxu0 }
 0x49a   :  { %v4908_v6 = vmul.f32 -1.442695, %v1940_v48 }
 0x49c   :  { %5810 = vpow2.f32 %v4908_v6 }
 0x4a3   :  { %v5809_v8 = vpop.eup %5808 }
 0x4a4   :  { %v1962_v32 = vmul.f32 %v5809_v8, %v5807_v4 }
 0x4a6   :  { %v5811_v25 = vpop.eup %5810  ;;  %v6716_v3 = vadd.f32 %v1962_v32, %v1961_v55 }
 0x4a7   :  { %v1957_v44 = vadd.f32 1.0, %v5811_v25 }
 0x4a8   :  { %5812 = vtanh.f32 %v6716_v3 }
 0x4a9   :  { %5814 = vrcp.f32 %v1957_v44 }
 0x4b2   :  { %v5813_v50 = vpop.eup %5812 }
 0x4b3   :  { %v5815_v54 = vpop.eup %5814 }
 0x4b4   :  { %v1965_v11 = vmul.f32 %v5815_v54, %v5813_v50  ;;  %v2398_v54 = vld [vmem:[#allocation8 + $0x20] sm:$0xff] }
 0x4b6   :  { %v2093_v12 = vpack.c.bf16 %v1965_v11, %v1965_v11  ;;  %v1968_v13 = vmul.f32 %v1967_v0, %v1965_v11 }
 0x4b8   :  { %2319 = vmatmul.mubr.bf16.vlgmr.msra.gmra.mrb[40].mxu0 %v2093_v12  ;;  %v1969_v17 = vpack.c.bf16 %v1968_v13, %v1968_v13 }
 0x4b9   :  { %5325 = vmatprep.mubr.msk.bf16.mxu0 %vm6069_vm1, %v7303_v42 }
 0x4ba   :  { %5306 = vmatmul.mubr.bf16.vlgmr.msra.gmra.mrb[36].mxu1 %v1969_v17  ;;  %v6865_v17 = vld [vmem:[#allocation12 + $0xa4] ss:$16 sps:$4 sm:$0xff]  }
 0x4bb   :  { %2328 = vmatpush1.bf16.msra.mxu1 %v6613_v30  ;;  %2359 = vmatprep.mubr.bf16.mxu1 %v7304_v49 }
 0x4bc   :  { %2329 = vmatprep.subr.bf16.mxu1 %v6615_v37 }
 0x4bf   :  { %2330 = vmatpush1.bf16.msra.mxu1 %v6620_v47 }
 0x4c0   :  { %2331 = vmatprep.subr.bf16.mxu1 %v6624_v40 }
 0x4c3   :  { %2332 = vmatpush1.bf16.msra.mxu1 %v6627_v5 }
 0x4c4   :  { %2333 = vmatprep.subr.bf16.mxu1 %v6630_v58 }
 0x4c7   :  { %2334 = vmatpush1.bf16.msra.mxu1 %v6633_v63 }
 0x4c8   :  { %2335 = vmatprep.subr.bf16.mxu1 %v6636_v61 }
 0x4cb   :  { %2336 = vmatpush1.bf16.msra.mxu1 %v6639_v43 }
 0x4cc   :  { %2337 = vmatprep.subr.bf16.mxu1 %v6642_v1 }
 0x4cf   :  { %2338 = vmatpush1.bf16.msra.mxu1 %v6645_v2 }
 0x4d0   :  { %2339 = vmatprep.subr.bf16.mxu1 %v6648_v14 }
 0x4d3   :  { %2340 = vmatpush1.bf16.msra.mxu1 %v6651_v7 }
 0x4d4   :  { %2341 = vmatprep.subr.bf16.mxu1 %v6654_v10 }
 0x4d7   :  { %2342 = vmatpush1.bf16.msra.mxu1 %v6657_v52 }
 0x4d8   :  { %2717 = vmatprep.subr.bf16.mxu1 %v6522_v21  ;;  %v5654_v21 = vld [vmem:[%s7277_s5] sm:$0xff]  }
 0x4d9   :  { %5310 = vmatpush3.bf16.msra.mxu0 %v5654_v21  ;;  %v5685_v21 = vld [vmem:[%s7277_s5 + $0x28] sm:$0xff]  }
 0x4da   :  { %2360 = vmatmul.mubr.bf16.vlgmr.msra.gmra.mrb[40].mxu1 %v2093_v12  ;;  %5311 = vmatprep.subr.bf16.mxu0 %v7303_v42 }
 0x4db   :  { %2718 = vmatpush1.bf16.msra.mxu1 %v6524_v22  ;;  %2749 = vmatprep.mubr.bf16.mxu1 %v7304_v49  ;;  %v5655_v22 = vld [vmem:[%s7277_s5 + $0x8] sm:$0xff]  }
 0x4dc   :  { %2719 = vmatprep.subr.bf16.mxu1 %v6531_v24  ;;  %v5656_v24 = vld [vmem:[%s7277_s5 + $0x10] sm:$0xff]  }
 0x4dd   :  { %5312 = vmatpush3.bf16.msra.mxu0 %v5655_v22  ;;  %v6870_v22 = vld [vmem:[#allocation12 + $0xc4] ss:$16 sps:$4 sm:$0xff]  }
 0x4de   :  { %5313 = vmatprep.subr.bf16.mxu0 %v7303_v42 }
 0x4df   :  { %2720 = vmatpush1.bf16.msra.mxu1 %v6533_v26  ;;  %v5657_v26 = vld [vmem:[%s7277_s5 + $0x18] sm:$0xff]  }
 0x4e0   :  { %2721 = vmatprep.subr.bf16.mxu1 %v6541_v28  ;;  %v5658_v28 = vld [vmem:[%s7277_s5 + $0x20] sm:$0xff]  }
 0x4e1   :  { %5314 = vmatpush3.bf16.msra.mxu0 %v5656_v24  ;;  %v6875_v24 = vld [vmem:[#allocation12 + $0xc0] ss:$16 sps:$4 sm:$0xff]  }
 0x4e2   :  { %5315 = vmatprep.subr.bf16.mxu0 %v7303_v42 }
 0x4e3   :  { %2722 = vmatpush1.bf16.msra.mxu1 %v6543_v29  ;;  %v5659_v29 = vld [vmem:[%s7277_s5 + $0x28] sm:$0xff]  }
 0x4e4   :  { %2723 = vmatprep.subr.bf16.mxu1 %v6551_v31  ;;  %v5660_v31 = vld [vmem:[%s7277_s5 + $0x30] sm:$0xff]  }
 0x4e5   :  { %5316 = vmatpush3.bf16.msra.mxu0 %v5657_v26  ;;  %v5689_v26 = vld [vmem:[%s7277_s5 + $0x30] sm:$0xff]  }
 0x4e6   :  { %5317 = vmatprep.subr.bf16.mxu0 %v7303_v42 }
 0x4e7   :  { %2724 = vmatpush1.bf16.msra.mxu1 %v6553_v33  ;;  %v5661_v33 = vld [vmem:[%s7277_s5 + $0x38] sm:$0xff]  }
 0x4e8   :  { %2725 = vmatprep.subr.bf16.mxu1 %v6561_v35 }
 0x4e9   :  { %5318 = vmatpush3.bf16.msra.mxu0 %v5658_v28  ;;  %v6881_v28 = vld [vmem:[#allocation12 + $0xe4] ss:$16 sps:$4 sm:$0xff]  }
 0x4ea   :  { %5319 = vmatprep.subr.bf16.mxu0 %v7303_v42 }
 0x4eb   :  { %2726 = vmatpush1.bf16.msra.mxu1 %v6563_v36 }
 0x4ec   :  { %2727 = vmatprep.subr.bf16.mxu1 %v6573_v39  ;;  %v7305_v39 = vld [vmem:[#allocation19_spill] sm:$0xff] }
 0x4ed   :  { %5320 = vmatpush3.bf16.msra.mxu0 %v5659_v29  ;;  %v6885_v29 = vld [vmem:[#allocation12 + $0xe0] ss:$16 sps:$4 sm:$0xff]  }
 0x4ee   :  { %5321 = vmatprep.subr.bf16.mxu0 %v7303_v42 }
 0x4ef   :  { %2728 = vmatpush1.bf16.msra.mxu1 %v6571_v38 }
 0x4f0   :  { %2729 = vmatprep.subr.bf16.mxu1 %v6578_v56 }
 0x4f1   :  { %5322 = vmatpush3.bf16.msra.mxu0 %v5660_v31  ;;  %v5693_v31 = vld [vmem:[%s7277_s5 + $0x38] sm:$0xff]  }
 0x4f2   :  { %5323 = vmatprep.subr.bf16.mxu0 %v7303_v42 }
 0x4f3   :  { %2730 = vmatpush1.bf16.msra.mxu1 %v6583_v59 }
 0x4f4   :  { %2731 = vmatprep.subr.bf16.mxu1 %v6589_v62 }
 0x4f5   :  { %5324 = vmatpush3.bf16.msra.mxu0 %v5661_v33  ;;  %v6894_v33 = vld [vmem:[#allocation12 + $0xc] ss:$16 sps:$4 sm:$0xff]  }
 0x4f6   :  { %2758 = vmatprep.subr.bf16.mxu0 %v6602_v60 }
 0x4f7   :  { %2732 = vmatpush1.bf16.msra.mxu1 %v6593_v9 }
 0x4f8   :  { %5329 = vmatprep.subr.bf16.mxu1 %v7303_v42 }
 0x58b   :  { %v2320_v35 = vpop.f32.mrb[40].mxu0 }
 0x58c   :  { %v2368_v36 = vadd.f32 %v2320_v35, %v6397_v57  ;;  %v2322_v38 = vpop.f32.mrb[41].mxu0  ;;  %v7307_v57 = vld [vmem:[#allocation20_spill] sm:$0xff] }
 0x58d   :  { %v2369_v56 = vadd.f32 %v2322_v38, %v7305_v39  ;;  %v2324_v59 = vpop.f32.mrb[42].mxu0 }
 0x58e   :  { %v2325_v62 = vpop.f32.mrb[43].mxu0  ;;  %v4950_v15 = vmul.f32 -1.442695, %v2368_v36  ;;  %v7308_v36 = vld [vmem:[#allocation21_spill] sm:$0xff] }
 0x58f   :  { %v4951_v9 = vmul.f32 -1.442695, %v2369_v56  ;;  %v7309_v56 = vld [vmem:[#allocation23_spill] sm:$0xff] }
 0x591   :  { %5816 = vpow2.f32 %v4951_v9 }
 0x592   :  { %5818 = vpow2.f32 %v4950_v15 }
 0x59b   :  { %v5817_v18 = vpop.eup %5816 }
 0x59c   :  { %v5819_v45 = vpop.eup %5818  ;;  %v2381_v16 = vadd.f32 1.0, %v5817_v18 }
 0x59d   :  { %v2375_v41 = vadd.f32 1.0, %v5819_v45 }
 0x59e   :  { %5820 = vrcp.f32 %v2381_v16 }
 0x59f   :  { %5822 = vrcp.f32 %v2375_v41 }
 0x5a8   :  { %v5821_v53 = vpop.eup %5820 }
 0x5a9   :  { %v5823_v6 = vpop.eup %5822  ;;  %v2392_v4 = vmul.f32 %v5821_v53, %v6716_v3  ;;  %v6863_v3 = vld [vmem:[#allocation12 + $0xa0] ss:$16 sps:$4 sm:$0xff]  }
 0x5ad   :  { %v2361_v46 = vpop.f32.mrb[40].mxu1 }
 0x5ae   :  { %v2370_v60 = vadd.f32 %v2361_v46, %v7306_v19  ;;  %v2363_v20 = vpop.f32.mrb[41].mxu1 }
 0x5af   :  { %v2371_v23 = vadd.f32 %v2363_v20, %v7307_v57  ;;  %v2365_v27 = vpop.f32.mrb[42].mxu1 }
 0x5b0   :  { %5824 = vtanh.f32 %v2370_v60  ;;  %v2366_v48 = vpop.f32.mrb[43].mxu1  ;;  %v7310_v60 = vld [vmem:[#allocation22_spill] sm:$0xff] }
 0x5b1   :  { %v4952_v34 = vmul.f32 -1.442695, %v2371_v23  ;;  %v7311_v23 = vld [vmem:[#allocation24_spill] sm:$0xff] }
 0x5b3   :  { %5826 = vpow2.f32 %v4952_v34 }
 0x5ba   :  { %v5825_v51 = vpop.eup %5824 }
 0x5bb   :  { %v2393_v8 = vmul.f32 %v5825_v51, %v5823_v6 }
 0x5bd   :  { %v5827_v55 = vpop.eup %5826  ;;  %v6792_v32 = vadd.f32 %v2393_v8, %v2392_v4 }
 0x5be   :  { %v2388_v25 = vadd.f32 1.0, %v5827_v55 }
 0x5bf   :  { %5828 = vtanh.f32 %v6792_v32 }
 0x5c0   :  { %5830 = vrcp.f32 %v2388_v25 }
 0x5c9   :  { %v5829_v44 = vpop.eup %5828 }
 0x5ca   :  { %v5831_v50 = vpop.eup %5830 }
 0x5cb   :  { %v2396_v0 = vmul.f32 %v5831_v50, %v5829_v44 }
 0x5cd   :  { %v2524_v11 = vpack.c.bf16 %v2396_v0, %v2396_v0  ;;  %v2399_v12 = vmul.f32 %v2398_v54, %v2396_v0 }
 0x5cf   :  { %2750 = vmatmul.mubr.bf16.vlgmr.msra.gmra.mrb[44].mxu1 %v2524_v11  ;;  %v2400_v13 = vpack.c.bf16 %v2399_v12, %v2399_v12 }
 0x5d0   :  { %5345 = vmatprep.mubr.msk.bf16.mxu1 %vm6069_vm1, %v7303_v42 }
 0x5d1   :  { %5326 = vmatmul.mubr.bf16.vlgmr.msra.gmra.mrb[44].mxu0 %v2400_v13 }
 0x5d2   :  { %2759 = vmatpush1.bf16.msra.mxu0 %v6613_v30  ;;  %2790 = vmatprep.mubr.bf16.mxu0 %v7304_v49  ;;  %v6814_v30 = vld [vmem:[#allocation12 + $0x4] ss:$16 sps:$4 sm:$0xff]  }
 0x5d3   :  { %2760 = vmatprep.subr.bf16.mxu0 %v6615_v37  ;;  %v6816_v37 = vld [vmem:[#allocation12] ss:$16 sps:$4 sm:$0xff]  }
 0x5d6   :  { %2761 = vmatpush1.bf16.msra.mxu0 %v6620_v47  ;;  %v5665_v47 = vld [vmem:[%s7277_s5] sm:$0xff]  }
 0x5d7   :  { %2762 = vmatprep.subr.bf16.mxu0 %v6624_v40  ;;  %5330 = vmatpush3.bf16.msra.mxu1 %v5665_v47  ;;  %v6823_v40 = vld [vmem:[#allocation12 + $0x24] ss:$16 sps:$4 sm:$0xff]  }
 0x5d8   :  { %5331 = vmatprep.subr.bf16.mxu1 %v7303_v42 }
 0x5da   :  { %2763 = vmatpush1.bf16.msra.mxu0 %v6627_v5  ;;  %v6825_v5 = vld [vmem:[#allocation12 + $0x20] ss:$16 sps:$4 sm:$0xff]  }
 0x5db   :  { %2764 = vmatprep.subr.bf16.mxu0 %v6630_v58  ;;  %v5669_v58 = vld [vmem:[%s7277_s5 + $0x8] sm:$0xff]  }
 0x5dc   :  { %5332 = vmatpush3.bf16.msra.mxu1 %v5669_v58  ;;  %v6905_v58 = vld [vmem:[#allocation12 + $0x8] ss:$16 sps:$4 sm:$0xff]  }
 0x5dd   :  { %5333 = vmatprep.subr.bf16.mxu1 %v7303_v42 }
 0x5de   :  { %2765 = vmatpush1.bf16.msra.mxu0 %v6633_v63  ;;  %v6833_v63 = vld [vmem:[#allocation12 + $0x44] ss:$16 sps:$4 sm:$0xff]  }
 0x5df   :  { %2766 = vmatprep.subr.bf16.mxu0 %v6636_v61  ;;  %v6835_v61 = vld [vmem:[#allocation12 + $0x40] ss:$16 sps:$4 sm:$0xff]  }
 0x5e2   :  { %2767 = vmatpush1.bf16.msra.mxu0 %v6639_v43  ;;  %v5673_v43 = vld [vmem:[%s7277_s5 + $0x10] sm:$0xff]  }
 0x5e3   :  { %2768 = vmatprep.subr.bf16.mxu0 %v6642_v1  ;;  %5334 = vmatpush3.bf16.msra.mxu1 %v5673_v43  ;;  %v6843_v1 = vld [vmem:[#allocation12 + $0x64] ss:$16 sps:$4 sm:$0xff]  }
 0x5e4   :  { %5335 = vmatprep.subr.bf16.mxu1 %v7303_v42 }
 0x5e6   :  { %2769 = vmatpush1.bf16.msra.mxu0 %v6645_v2  ;;  %v6845_v2 = vld [vmem:[#allocation12 + $0x60] ss:$16 sps:$4 sm:$0xff]  }
 0x5e7   :  { %2770 = vmatprep.subr.bf16.mxu0 %v6648_v14  ;;  %v5677_v14 = vld [vmem:[%s7277_s5 + $0x18] sm:$0xff]  }
 0x5e8   :  { %5336 = vmatpush3.bf16.msra.mxu1 %v5677_v14  ;;  %v6907_v14 = vld [vmem:[#allocation12 + $0x2c] ss:$16 sps:$4 sm:$0xff]  }
 0x5e9   :  { %5337 = vmatprep.subr.bf16.mxu1 %v7303_v42 }
 0x5ea   :  { %2771 = vmatpush1.bf16.msra.mxu0 %v6651_v7  ;;  %v6853_v7 = vld [vmem:[#allocation12 + $0x84] ss:$16 sps:$4 sm:$0xff]  }
 0x5eb   :  { %2772 = vmatprep.subr.bf16.mxu0 %v6654_v10  ;;  %v6855_v10 = vld [vmem:[#allocation12 + $0x80] ss:$16 sps:$4 sm:$0xff]  }
 0x5ee   :  { %2773 = vmatpush1.bf16.msra.mxu0 %v6657_v52  ;;  %v5681_v52 = vld [vmem:[%s7277_s5 + $0x20] sm:$0xff]  }
 0x5ef   :  { %3148 = vmatprep.subr.bf16.mxu0 %v6814_v30  ;;  %5338 = vmatpush3.bf16.msra.mxu1 %v5681_v52  ;;  %v6916_v52 = vld [vmem:[#allocation12 + $0x4c] ss:$16 sps:$4 sm:$0xff]  }
 0x5f0   :  { %5339 = vmatprep.subr.bf16.mxu1 %v7303_v42 }
 0x5f1   :  { %2791 = vmatmul.mubr.bf16.vlgmr.msra.gmra.mrb[48].mxu0 %v2524_v11  ;;  %v2829_v11 = vld [vmem:[#allocation8 + $0x28] sm:$0xff] }
 0x5f2   :  { %3180 = vmatprep.mubr.bf16.mxu0 %v7304_v49  ;;  %3149 = vmatpush1.bf16.msra.mxu0 %v6816_v37 }
 0x5f3   :  { %3150 = vmatprep.subr.bf16.mxu0 %v6823_v40  ;;  %5340 = vmatpush3.bf16.msra.mxu1 %v5685_v21  ;;  %v6919_v21 = vld [vmem:[#allocation12 + $0x48] ss:$16 sps:$4 sm:$0xff]  }
 0x5f4   :  { %5341 = vmatprep.subr.bf16.mxu1 %v7303_v42 }
 0x5f6   :  { %3151 = vmatpush1.bf16.msra.mxu0 %v6825_v5 }
 0x5f7   :  { %3152 = vmatprep.subr.bf16.mxu0 %v6833_v63  ;;  %5342 = vmatpush3.bf16.msra.mxu1 %v5689_v26  ;;  %v6922_v26 = vld [vmem:[#allocation12 + $0x6c] ss:$16 sps:$4 sm:$0xff]  }
 0x5f8   :  { %5343 = vmatprep.subr.bf16.mxu1 %v7303_v42 }
 0x5fa   :  { %3153 = vmatpush1.bf16.msra.mxu0 %v6835_v61 }
 0x5fb   :  { %3154 = vmatprep.subr.bf16.mxu0 %v6843_v1  ;;  %5344 = vmatpush3.bf16.msra.mxu1 %v5693_v31  ;;  %v6925_v31 = vld [vmem:[#allocation12 + $0x68] ss:$16 sps:$4 sm:$0xff]  }
 0x5fc   :  { %3189 = vmatprep.subr.bf16.mxu1 %v6894_v33 }
 0x5fe   :  { %3155 = vmatpush1.bf16.msra.mxu0 %v6845_v2 }
 0x5ff   :  { %3156 = vmatprep.subr.bf16.mxu0 %v6853_v7 }
 0x602   :  { %3157 = vmatpush1.bf16.msra.mxu0 %v6855_v10 }
 0x603   :  { %3158 = vmatprep.subr.bf16.mxu0 %v6865_v17 }
 0x606   :  { %3159 = vmatpush1.bf16.msra.mxu0 %v6863_v3 }
 0x607   :  { %3160 = vmatprep.subr.bf16.mxu0 %v6870_v22 }
 0x60a   :  { %3161 = vmatpush1.bf16.msra.mxu0 %v6875_v24 }
 0x60b   :  { %3162 = vmatprep.subr.bf16.mxu0 %v6881_v28 }
 0x60e   :  { %3163 = vmatpush1.bf16.msra.mxu0 %v6885_v29 }
 0x60f   :  { %5349 = vmatprep.subr.bf16.mxu0 %v7303_v42 }
 0x6a2   :  { %v2751_v35 = vpop.f32.mrb[44].mxu1 }
 0x6a3   :  { %v2799_v38 = vadd.f32 %v2751_v35, %v7308_v36  ;;  %v2753_v39 = vpop.f32.mrb[45].mxu1  ;;  %v6928_v35 = vld [vmem:[#allocation12 + $0x8c] ss:$16 sps:$4 sm:$0xff]   ;;  %v6931_v36 = vld [vmem:[#allocation12 + $0x88] ss:$16 sps:$4 sm:$0xff]  }
 0x6a4   :  { %v2800_v59 = vadd.f32 %v2753_v39, %v7309_v56  ;;  %v2755_v62 = vpop.f32.mrb[46].mxu1  ;;  %v6937_v39 = vld [vmem:[#allocation12 + $0xa8] ss:$16 sps:$4 sm:$0xff]   ;;  %v6940_v56 = vld [vmem:[#allocation12 + $0xcc] ss:$16 sps:$4 sm:$0xff]  }
 0x6a5   :  { %v2756_v9 = vpop.f32.mrb[47].mxu1  ;;  %v4994_v18 = vmul.f32 -1.442695, %v2799_v38  ;;  %v6934_v38 = vld [vmem:[#allocation12 + $0xac] ss:$16 sps:$4 sm:$0xff]  }
 0x6a6   :  { %v4995_v15 = vmul.f32 -1.442695, %v2800_v59  ;;  %v6943_v59 = vld [vmem:[#allocation12 + $0xc8] ss:$16 sps:$4 sm:$0xff]   ;;  %v6946_v62 = vld [vmem:[#allocation12 + $0xec] ss:$16 sps:$4 sm:$0xff]  }
 0x6a7   :  { %v6949_v9 = vld [vmem:[#allocation12 + $0xe8] ss:$16 sps:$4 sm:$0xff]  }
 0x6a8   :  { %5832 = vpow2.f32 %v4995_v15 }
 0x6a9   :  { %5834 = vpow2.f32 %v4994_v18 }
 0x6b2   :  { %v5833_v45 = vpop.eup %5832 }
 0x6b3   :  { %v5835_v16 = vpop.eup %5834  ;;  %v2812_v41 = vadd.f32 1.0, %v5833_v45 }
 0x6b4   :  { %v2806_v46 = vadd.f32 1.0, %v5835_v16 }
 0x6b5   :  { %5836 = vrcp.f32 %v2812_v41 }
 0x6b6   :  { %5838 = vrcp.f32 %v2806_v46 }
 0x6bf   :  { %v5837_v6 = vpop.eup %5836 }
 0x6c0   :  { %v5839_v51 = vpop.eup %5838  ;;  %v2823_v8 = vmul.f32 %v5837_v6, %v6792_v32  ;;  %v6912_v32 = vld [vmem:[#allocation12 + $0x28] ss:$16 sps:$4 sm:$0xff]  }
 0x6c4   :  { %v2792_v19 = vpop.f32.mrb[48].mxu0 }
 0x6c5   :  { %v2801_v20 = vadd.f32 %v2792_v19, %v7310_v60  ;;  %v2794_v57 = vpop.f32.mrb[49].mxu0  ;;  %v7314_v19 = vld [vmem:[#allocation26_spill] sm:$0xff] }
 0x6c6   :  { %v2802_v27 = vadd.f32 %v2794_v57, %v7311_v23  ;;  %v2796_v48 = vpop.f32.mrb[50].mxu0  ;;  %v7315_v57 = vld [vmem:[#allocation28_spill] sm:$0xff] }
 0x6c7   :  { %5840 = vtanh.f32 %v2801_v20  ;;  %v2797_v34 = vpop.f32.mrb[51].mxu0 }
 0x6c8   :  { %v4996_v53 = vmul.f32 -1.442695, %v2802_v27 }
 0x6ca   :  { %5842 = vpow2.f32 %v4996_v53 }
 0x6d1   :  { %v5841_v4 = vpop.eup %5840 }
 0x6d2   :  { %v2824_v55 = vmul.f32 %v5841_v4, %v5839_v51 }
 0x6d4   :  { %v5843_v25 = vpop.eup %5842  ;;  %v6902_v44 = vadd.f32 %v2824_v55, %v2823_v8 }
 0x6d5   :  { %v2819_v50 = vadd.f32 1.0, %v5843_v25 }
 0x6d6   :  { %5844 = vtanh.f32 %v6902_v44 }
 0x6d7   :  { %5846 = vrcp.f32 %v2819_v50 }
 0x6e0   :  { %v5845_v54 = vpop.eup %5844 }
 0x6e1   :  { %v5847_v0 = vpop.eup %5846 }
 0x6e2   :  { %v2827_v12 = vmul.f32 %v5847_v0, %v5845_v54 }
 0x6e4   :  { %v2955_v13 = vpack.c.bf16 %v2827_v12, %v2827_v12  ;;  %v2830_v47 = vmul.f32 %v2829_v11, %v2827_v12  ;;  %v3260_v11 = vld [vmem:[#allocation8 + $0x30] sm:$0xff] }
 0x6e6   :  { %3181 = vmatmul.mubr.bf16.vlgmr.msra.gmra.mrb[52].mxu0 %v2955_v13  ;;  %v2831_v43 = vpack.c.bf16 %v2830_v47, %v2830_v47 }
 0x6e7   :  { %5365 = vmatprep.mubr.msk.bf16.mxu0 %vm6069_vm1, %v7303_v42 }
 0x6e8   :  { %5346 = vmatmul.mubr.bf16.vlgmr.msra.gmra.mrb[48].mxu1 %v2831_v43 }
 0x6e9   :  { %3190 = vmatpush1.bf16.msra.mxu1 %v6905_v58  ;;  %3221 = vmatprep.mubr.bf16.mxu1 %v7304_v49 }
 0x6ea   :  { %3191 = vmatprep.subr.bf16.mxu1 %v6907_v14 }
 0x6ed   :  { %3192 = vmatpush1.bf16.msra.mxu1 %v6912_v32 }
 0x6ee   :  { %3193 = vmatprep.subr.bf16.mxu1 %v6916_v52 }
 0x6f1   :  { %3194 = vmatpush1.bf16.msra.mxu1 %v6919_v21 }
 0x6f2   :  { %3195 = vmatprep.subr.bf16.mxu1 %v6922_v26 }
 0x6f5   :  { %3196 = vmatpush1.bf16.msra.mxu1 %v6925_v31 }
 0x6f6   :  { %3197 = vmatprep.subr.bf16.mxu1 %v6928_v35 }
 0x6f9   :  { %3198 = vmatpush1.bf16.msra.mxu1 %v6931_v36 }
 0x6fa   :  { %3199 = vmatprep.subr.bf16.mxu1 %v6934_v38 }
 0x6fd   :  { %3200 = vmatpush1.bf16.msra.mxu1 %v6937_v39 }
 0x6fe   :  { %3201 = vmatprep.subr.bf16.mxu1 %v6940_v56 }
 0x701   :  { %3202 = vmatpush1.bf16.msra.mxu1 %v6943_v59 }
 0x702   :  { %3203 = vmatprep.subr.bf16.mxu1 %v6946_v62 }
 0x705   :  { %3204 = vmatpush1.bf16.msra.mxu1 %v6949_v9 }
 0x706   :  { %3579 = vmatprep.subr.bf16.mxu1 %v6814_v30  ;;  %v5718_v30 = vld [vmem:[%s7277_s5] sm:$0xff]  }
 0x707   :  { %5350 = vmatpush3.bf16.msra.mxu0 %v5718_v30 }
 0x708   :  { %3222 = vmatmul.mubr.bf16.vlgmr.msra.gmra.mrb[52].mxu1 %v2955_v13  ;;  %5351 = vmatprep.subr.bf16.mxu0 %v7303_v42 }
 0x709   :  { %3580 = vmatpush1.bf16.msra.mxu1 %v6816_v37  ;;  %3611 = vmatprep.mubr.bf16.mxu1 %v7304_v49  ;;  %v5719_v37 = vld [vmem:[%s7277_s5 + $0x8] sm:$0xff]  }
 0x70a   :  { %3581 = vmatprep.subr.bf16.mxu1 %v6823_v40  ;;  %v5720_v40 = vld [vmem:[%s7277_s5 + $0x10] sm:$0xff]  }
 0x70b   :  { %5352 = vmatpush3.bf16.msra.mxu0 %v5719_v37 }
 0x70c   :  { %5353 = vmatprep.subr.bf16.mxu0 %v7303_v42 }
 0x70d   :  { %3582 = vmatpush1.bf16.msra.mxu1 %v6825_v5  ;;  %v5721_v5 = vld [vmem:[%s7277_s5 + $0x18] sm:$0xff]  }
 0x70e   :  { %3583 = vmatprep.subr.bf16.mxu1 %v6833_v63  ;;  %v5722_v63 = vld [vmem:[%s7277_s5 + $0x20] sm:$0xff]  }
 0x70f   :  { %5354 = vmatpush3.bf16.msra.mxu0 %v5720_v40 }
 0x710   :  { %5355 = vmatprep.subr.bf16.mxu0 %v7303_v42 }
 0x711   :  { %3584 = vmatpush1.bf16.msra.mxu1 %v6835_v61  ;;  %v5723_v61 = vld [vmem:[%s7277_s5 + $0x28] sm:$0xff]  }
 0x712   :  { %3585 = vmatprep.subr.bf16.mxu1 %v6843_v1  ;;  %v5724_v1 = vld [vmem:[%s7277_s5 + $0x30] sm:$0xff]  }
 0x713   :  { %5356 = vmatpush3.bf16.msra.mxu0 %v5721_v5 }
 0x714   :  { %5357 = vmatprep.subr.bf16.mxu0 %v7303_v42 }
 0x715   :  { %3586 = vmatpush1.bf16.msra.mxu1 %v6845_v2  ;;  %v5725_v2 = vld [vmem:[%s7277_s5 + $0x38] sm:$0xff]  }
 0x716   :  { %3587 = vmatprep.subr.bf16.mxu1 %v6853_v7 }
 0x717   :  { %5358 = vmatpush3.bf16.msra.mxu0 %v5722_v63 }
 0x718   :  { %5359 = vmatprep.subr.bf16.mxu0 %v7303_v42 }
 0x719   :  { %3588 = vmatpush1.bf16.msra.mxu1 %v6855_v10  ;;  %v7312_v10 = vld [vmem:[#allocation25_spill] sm:$0xff] }
 0x71a   :  { %3589 = vmatprep.subr.bf16.mxu1 %v6865_v17 }
 0x71b   :  { %5360 = vmatpush3.bf16.msra.mxu0 %v5723_v61 }
 0x71c   :  { %5361 = vmatprep.subr.bf16.mxu0 %v7303_v42 }
 0x71d   :  { %3590 = vmatpush1.bf16.msra.mxu1 %v6863_v3 }
 0x71e   :  { %3591 = vmatprep.subr.bf16.mxu1 %v6870_v22  ;;  %v7313_v22 = vld [vmem:[#allocation27_spill] sm:$0xff] }
 0x71f   :  { %5362 = vmatpush3.bf16.msra.mxu0 %v5724_v1 }
 0x720   :  { %5363 = vmatprep.subr.bf16.mxu0 %v7303_v42 }
 0x721   :  { %3592 = vmatpush1.bf16.msra.mxu1 %v6875_v24 }
 0x722   :  { %3593 = vmatprep.subr.bf16.mxu1 %v6881_v28 }
 0x723   :  { %5364 = vmatpush3.bf16.msra.mxu0 %v5725_v2 }
 0x724   :  { %3620 = vmatprep.subr.bf16.mxu0 %v6894_v33 }
 0x725   :  { %3594 = vmatpush1.bf16.msra.mxu1 %v6885_v29 }
 0x726   :  { %5369 = vmatprep.subr.bf16.mxu1 %v7303_v42 }
 0x7b9   :  { %v3182_v7 = vpop.f32.mrb[52].mxu0 }
 0x7ba   :  { %v3230_v3 = vadd.f32 %v3182_v7, %v7312_v10  ;;  %v3184_v17 = vpop.f32.mrb[53].mxu0 }
 0x7bb   :  { %v3231_v24 = vadd.f32 %v3184_v17, %v7313_v22  ;;  %v3186_v28 = vpop.f32.mrb[54].mxu0 }
 0x7bc   :  { %v3187_v29 = vpop.f32.mrb[55].mxu0  ;;  %v5038_v18 = vmul.f32 -1.442695, %v3230_v3  ;;  %v7318_v3 = vld [vmem:[#allocation30_spill] sm:$0xff] }
 0x7bd   :  { %v5039_v15 = vmul.f32 -1.442695, %v3231_v24  ;;  %v7319_v24 = vld [vmem:[#allocation32_spill] sm:$0xff] }
 0x7bf   :  { %5848 = vpow2.f32 %v5039_v15 }
 0x7c0   :  { %5850 = vpow2.f32 %v5038_v18 }
 0x7c9   :  { %v5849_v33 = vpop.eup %5848 }
 0x7ca   :  { %v5851_v45 = vpop.eup %5850  ;;  %v3243_v16 = vadd.f32 1.0, %v5849_v33  ;;  %v7086_v33 = vld [vmem:[%s7279_s7] ss:$0 sm:$0xff]  ;;  %s6070_s7 = smov 64  }
 0x7cb   :  { %v3237_v41 = vadd.f32 1.0, %v5851_v45 }
 0x7cc   :  { %5852 = vrcp.f32 %v3243_v16 }
 0x7cd   :  { %5854 = vrcp.f32 %v3237_v41 }
 0x7d6   :  { %v5853_v53 = vpop.eup %5852 }
 0x7d7   :  { %v5855_v6 = vpop.eup %5854  ;;  %v3254_v4 = vmul.f32 %v5853_v53, %v6902_v44  ;;  %v5727_v44 = vld [vmem:[%s7278_s6 + $0x8] sm:$0xff]  }
 0x7db   :  { %v3223_v46 = vpop.f32.mrb[52].mxu1 }
 0x7dc   :  { %v3232_v60 = vadd.f32 %v3223_v46, %v7314_v19  ;;  %v3225_v20 = vpop.f32.mrb[53].mxu1 }
 0x7dd   :  { %v3233_v23 = vadd.f32 %v3225_v20, %v7315_v57  ;;  %v3227_v27 = vpop.f32.mrb[54].mxu1 }
 0x7de   :  { %5856 = vtanh.f32 %v3232_v60  ;;  %v3228_v48 = vpop.f32.mrb[55].mxu1 }
 0x7df   :  { %v5040_v34 = vmul.f32 -1.442695, %v3233_v23 }
 0x7e1   :  { %5858 = vpow2.f32 %v5040_v34 }
 0x7e8   :  { %v5857_v51 = vpop.eup %5856 }
 0x7e9   :  { %v3255_v8 = vmul.f32 %v5857_v51, %v5855_v6 }
 0x7eb   :  { %v5859_v55 = vpop.eup %5858  ;;  %v7012_v25 = vadd.f32 %v3255_v8, %v3254_v4  ;;  %v7320_v8 = vlaneseq }
 0x7ec   :  { %v3250_v50 = vadd.f32 1.0, %v5859_v55 }
 0x7ed   :  { %5860 = vtanh.f32 %v7012_v25  ;;  %v3810_v55 = vand.u32 127, %v7320_v8 }
 0x7ee   :  { %5862 = vrcp.f32 %v3250_v50 }
 0x7ef   :  { %vm3811_vm3 = vcmp.ge.s32.totalorder %v3810_v55, 64  ;;  %vm3812_vm4 = vcmp.lt.s32.totalorder %v3810_v55, 96 }
 0x7f0   :  { %vm7091_vm5 = vmand %vm3811_vm3, %vm3812_vm4 }
 0x7f7   :  { %v5861_v54 = vpop.eup %5860 }
 0x7f8   :  { %v5863_v0 = vpop.eup %5862 }
 0x7f9   :  { %v3258_v12 = vmul.f32 %v5863_v0, %v5861_v54  ;;  %v3691_v0 = vld [vmem:[#allocation8 + $0x38] sm:$0xff] }
 0x7fb   :  { %v3386_v13 = vpack.c.bf16 %v3258_v12, %v3258_v12  ;;  %v3261_v47 = vmul.f32 %v3260_v11, %v3258_v12 }
 0x7fd   :  { %3612 = vmatmul.mubr.bf16.vlgmr.msra.gmra.mrb[56].mxu1 %v3386_v13  ;;  %v3262_v43 = vpack.c.bf16 %v3261_v47, %v3261_v47 }
 0x7fe   :  { %5385 = vmatprep.mubr.msk.bf16.mxu1 %vm6069_vm1, %v7303_v42 }
 0x7ff   :  { %5366 = vmatmul.mubr.bf16.vlgmr.msra.gmra.mrb[56].mxu0 %v3262_v43 }
 0x800   :  { %3621 = vmatpush1.bf16.msra.mxu0 %v6905_v58  ;;  %3652 = vmatprep.mubr.bf16.mxu0 %v7304_v49  ;;  %v5726_v49 = vld [vmem:[%s7278_s6] sm:$0xff]  }
 0x801   :  { %3622 = vmatprep.subr.bf16.mxu0 %v6907_v14  ;;  %v3815_v58 = vld [vmem:[#allocation6] sm:$0xff] }
 0x802   :  { %v3816_v14 = vpack.c.bf16 %v3815_v58, %v3815_v58 }
 0x804   :  { %3623 = vmatpush1.bf16.msra.mxu0 %v6912_v32  ;;  %v5728_v32 = vld [vmem:[%s7277_s5] sm:$0xff]  }
 0x805   :  { %3624 = vmatprep.subr.bf16.mxu0 %v6916_v52  ;;  %5370 = vmatpush3.bf16.msra.mxu1 %v5728_v32  ;;  %v5729_v52 = vld [vmem:[%s7277_s5 + $0x8] sm:$0xff]  }
 0x806   :  { %5371 = vmatprep.subr.bf16.mxu1 %v7303_v42 }
 0x808   :  { %3625 = vmatpush1.bf16.msra.mxu0 %v6919_v21  ;;  %v5730_v21 = vld [vmem:[%s7277_s5 + $0x10] sm:$0xff]  }
 0x809   :  { %3626 = vmatprep.subr.bf16.mxu0 %v6922_v26  ;;  %5372 = vmatpush3.bf16.msra.mxu1 %v5729_v52  ;;  %v5731_v26 = vld [vmem:[%s7277_s5 + $0x18] sm:$0xff]  }
 0x80a   :  { %5373 = vmatprep.subr.bf16.mxu1 %v7303_v42 }
 0x80c   :  { %3627 = vmatpush1.bf16.msra.mxu0 %v6925_v31  ;;  %v5732_v31 = vld [vmem:[%s7277_s5 + $0x20] sm:$0xff]  }
 0x80d   :  { %3628 = vmatprep.subr.bf16.mxu0 %v6928_v35  ;;  %5374 = vmatpush3.bf16.msra.mxu1 %v5730_v21  ;;  %v5733_v35 = vld [vmem:[%s7277_s5 + $0x28] sm:$0xff]  }
 0x80e   :  { %5375 = vmatprep.subr.bf16.mxu1 %v7303_v42 }
 0x810   :  { %3629 = vmatpush1.bf16.msra.mxu0 %v6931_v36  ;;  %v5734_v36 = vld [vmem:[%s7277_s5 + $0x30] sm:$0xff]  }
 0x811   :  { %3630 = vmatprep.subr.bf16.mxu0 %v6934_v38  ;;  %5376 = vmatpush3.bf16.msra.mxu1 %v5731_v26  ;;  %v5735_v38 = vld [vmem:[%s7277_s5 + $0x38] sm:$0xff]  }
 0x812   :  { %5377 = vmatprep.subr.bf16.mxu1 %v7303_v42 }
 0x814   :  { %3631 = vmatpush1.bf16.msra.mxu0 %v6937_v39 }
 0x815   :  { %3632 = vmatprep.subr.bf16.mxu0 %v6940_v56  ;;  %5378 = vmatpush3.bf16.msra.mxu1 %v5732_v31  ;;  %v7316_v56 = vld [vmem:[#allocation29_spill] sm:$0xff] }
 0x816   :  { %5379 = vmatprep.subr.bf16.mxu1 %v7303_v42 }
 0x818   :  { %3633 = vmatpush1.bf16.msra.mxu0 %v6943_v59 }
 0x819   :  { %3634 = vmatprep.subr.bf16.mxu0 %v6946_v62  ;;  %5380 = vmatpush3.bf16.msra.mxu1 %v5733_v35  ;;  %v5736_v35 = vld [vmem:[%s7278_s6] sm:$0xff]  }
 0x81a   :  { %5381 = vmatprep.subr.bf16.mxu1 %v7303_v42 }
 0x81c   :  { %3635 = vmatpush1.bf16.msra.mxu0 %v6949_v9  ;;  %v7317_v9 = vld [vmem:[#allocation31_spill] sm:$0xff] }
 0x81d   :  { %5389 = vmatprep.subr.bf16.mxu0 %v7303_v42  ;;  %5382 = vmatpush3.bf16.msra.mxu1 %v5734_v36  ;;  %v5737_v36 = vld [vmem:[%s7278_s6 + $0x8] sm:$0xff]  }
 0x81e   :  { %5383 = vmatprep.subr.bf16.mxu1 %v7303_v42 }
 0x81f   :  { %3653 = vmatmul.mubr.bf16.vlgmr.msra.gmra.mrb[60].mxu0 %v3386_v13  ;;  %v5750_v13 = vld [vmem:[%s7280_s8] sm:$0xff]  }
 0x820   :  { %5390 = vmatpush3.bf16.msra.mxu0 %v5726_v49  ;;  %5393 = vmatprep.mubr.msk.bf16.mxu0 %vm6069_vm1, %v7303_v42 }
 0x821   :  { %5391 = vmatprep.subr.bf16.mxu0 %v7303_v42  ;;  %5384 = vmatpush3.bf16.msra.mxu1 %v5735_v38 }
 0x822   :  { %5397 = vmatprep.subr.bf16.mxu1 %v7303_v42 }
 0x824   :  { %5392 = vmatpush3.bf16.msra.mxu0 %v5727_v44  ;;  %v3886_v44 = vld [vmem:[#allocation7] sm:$0xff] }
 0x825   :  { %5405 = vmatprep.subr.bf16.mxu0 %v7303_v42 }
 0x827   :  { %5394 = vmatmul.mubr.msk.bf16.vlgmr.msra.gmra.mrb[20].mxu0 %vm95_vm2, %v3816_v14 }
 0x828   :  { %5409 = vmatprep.mubr.msk.bf16.mxu0 %vm6069_vm1, %v7303_v42 }
 0x8d0   :  { %v3613_v39 = vpop.f32.mrb[56].mxu1 }
 0x8d1   :  { %v3661_v59 = vadd.f32 %v3613_v39, %v7316_v56  ;;  %v3615_v62 = vpop.f32.mrb[57].mxu1 }
 0x8d2   :  { %v3662_v30 = vadd.f32 %v3615_v62, %v7317_v9  ;;  %v3617_v37 = vpop.f32.mrb[58].mxu1 }
 0x8d3   :  { %v3618_v40 = vpop.f32.mrb[59].mxu1  ;;  %v5082_v63 = vmul.f32 -1.442695, %v3661_v59 }
 0x8d4   :  { %v5083_v5 = vmul.f32 -1.442695, %v3662_v30 }
 0x8d6   :  { %5864 = vpow2.f32 %v5083_v5 }
 0x8d7   :  { %5866 = vpow2.f32 %v5082_v63 }
 0x8e0   :  { %v5865_v61 = vpop.eup %5864 }
 0x8e1   :  { %v5867_v1 = vpop.eup %5866  ;;  %v3674_v2 = vadd.f32 1.0, %v5865_v61 }
 0x8e2   :  { %v3668_v7 = vadd.f32 1.0, %v5867_v1 }
 0x8e3   :  { %5868 = vrcp.f32 %v3674_v2 }
 0x8e4   :  { %5870 = vrcp.f32 %v3668_v7 }
 0x8ed   :  { %v5869_v19 = vpop.eup %5868 }
 0x8ee   :  { %v5871_v57 = vpop.eup %5870  ;;  %v3685_v27 = vmul.f32 %v5869_v19, %v7012_v25 }
 0x8f2   :  { %v3654_v10 = vpop.f32.mrb[60].mxu0 }
 0x8f3   :  { %v3663_v17 = vadd.f32 %v3654_v10, %v7318_v3  ;;  %v3656_v22 = vpop.f32.mrb[61].mxu0 }
 0x8f4   :  { %v3664_v28 = vadd.f32 %v3656_v22, %v7319_v24  ;;  %v3658_v29 = vpop.f32.mrb[62].mxu0 }
 0x8f5   :  { %5872 = vtanh.f32 %v3663_v17  ;;  %v3659_v15 = vpop.f32.mrb[63].mxu0 }
 0x8f6   :  { %v5084_v18 = vmul.f32 -1.442695, %v3664_v28 }
 0x8f8   :  { %5874 = vpow2.f32 %v5084_v18 }
 0x8fa   :  { %v3871_v45 = vpop.f32.mrb[20].mxu0 }
 0x8fb   :  { %v5461_v16 = vadd.f32 %v7086_v33, %v3871_v45  ;;  %v5395_v41 = vpop.f32.mrb[21].mxu0 }
 0x8fc   :  { %v3874_v46 = vpop.f32.mrb[22].mxu0  ;;  %v5739_v41 = vld [vmem:[%s7278_s6 + $0x8] sm:$0xff]  }
 0x8fd   :  { %v5097_v60 = vmul.f32 -1.442695, %v5461_v16  ;;  %v5396_v20 = vpop.f32.mrb[23].mxu0 }
 0x8ff   :  { %v5873_v23 = vpop.eup %5872  ;;  %5876 = vpow2.f32 %v5097_v60 }
 0x900   :  { %v3686_v48 = vmul.f32 %v5873_v23, %v5871_v57 }
 0x902   :  { %v5875_v34 = vpop.eup %5874  ;;  %v3687_v53 = vadd.f32 %v3686_v48, %v3685_v27 }
 0x903   :  { %v3681_v6 = vadd.f32 1.0, %v5875_v34 }
 0x904   :  { %5878 = vtanh.f32 %v3687_v53 }
 0x905   :  { %5880 = vrcp.f32 %v3681_v6 }
 0x906   :  { %5882 = vtanh.f32 %v5461_v16  ;;  %v5738_v16 = vld [vmem:[%s7278_s6] sm:$0xff]  }
 0x907   :  { %5406 = vmatpush3.bf16.msra.mxu0 %v5738_v16 }
 0x908   :  { %5407 = vmatprep.subr.bf16.mxu0 %v7303_v42 }
 0x909   :  { %v5877_v51 = vpop.eup %5876 }
 0x90a   :  { %v3882_v4 = vadd.f32 1.0, %v5877_v51 }
 0x90b   :  { %5408 = vmatpush3.bf16.msra.mxu0 %v5739_v41 }
 0x90c   :  { %5884 = vrcp.f32 %v3882_v4  ;;  %5421 = vmatprep.subr.bf16.mxu0 %v7303_v42 }
 0x90e   :  { %v5879_v50 = vpop.eup %5878 }
 0x90f   :  { %v5881_v54 = vpop.eup %5880 }
 0x910   :  { %v3689_v11 = vmul.f32 %v5881_v54, %v5879_v50  ;;  %v5883_v47 = vpop.eup %5882 }
 0x912   :  { %v3692_v12 = vmul.f32 %v3691_v0, %v3689_v11 }
 0x914   :  { %v3693_v25 = vpack.c.bf16 %v3692_v12, %v3692_v12 }
 0x916   :  { %v5885_v43 = vpop.eup %5884  ;;  %5386 = vmatmul.mubr.bf16.vlgmr.msra.gmra.mrb[60].mxu1 %v3693_v25 }
 0x917   :  { %v3885_v49 = vsel %vm7091_vm5, %v5883_v47, %v5885_v43  ;;  %5401 = vmatprep.mubr.msk.bf16.mxu1 %vm6069_vm1, %v7303_v42  ;;  %5398 = vmatpush3.bf16.msra.mxu1 %v5736_v35 }
 0x918   :  { %3893 = vrot.lane.b32.xlu0 %v3885_v49, %s6070_s7  ;;  %5399 = vmatprep.subr.bf16.mxu1 %v7303_v42 }
 0x91b   :  { %5400 = vmatpush3.bf16.msra.mxu1 %v5737_v36 }
 0x91c   :  { %3888 = vrot.lane.b32.xlu0 %v3886_v44, %s6071_s17  ;;  %5413 = vmatprep.subr.bf16.mxu1 %v7303_v42 }
 0x98a   :  { %v3894_v58 = vpop.permute.xlu0 %3893 }
 0x98b   :  { %v3896_v14 = vmul.f32 %v3894_v58, %v3885_v49  ;;  %v5740_v58 = vld [vmem:[%s7278_s6] sm:$0xff]  }
 0x98d   :  { %3898 = vrot.lane.b32.xlu1 %v3896_v14, %s6071_s17  ;;  %v5741_v14 = vld [vmem:[%s7278_s6 + $0x8] sm:$0xff]  }
 0x98e   :  { %v3889_v32 = vpop.permute.xlu0 %3888 }
 0x98f   :  { %v3891_v52 = vmul.f32 %v3889_v32, %v3885_v49 }
 0x9ff   :  { %v3899_v21 = vpop.permute.xlu1 %3898 }
 0xa00   :  { %v3901_v26 = vadd.f32 %v3899_v21, %v3891_v52 }
 0xa02   :  { %5886 = vtanh.f32 %v3901_v26 }
 0xa0c   :  { %v5887_v31 = vpop.eup %5886 }
 0xa0d   :  { %3904 = vrot.lane.b32.xlu1 %v5887_v31, %s6070_s7 }
 0xa11   :  { %3909 = vrot.lane.b32.xlu1 %v3901_v26, %s6072_s2 }
 0xa7f   :  { %v3905_v38 = vpop.permute.xlu1 %3904 }
 0xa80   :  { %v3907_v39 = vmul.f32 %v3905_v38, %v3885_v49 }
 0xa82   :  { %3914 = vrot.lane.b32.xlu0 %v3907_v39, %s6071_s17 }
 0xa83   :  { %v3910_v56 = vpop.permute.xlu1 %3909 }
 0xa84   :  { %3912 = vst.msk [vmem:[#allocation7] sm:$0xff] %vm95_vm2, %v3910_v56 }
 0xa8b   :  { %v3989_v59 = vld [vmem:[#allocation7] sm:$0xff] }
 0xa8c   :  { %3991 = vrot.lane.b32.xlu1 %v3989_v59, %s6071_s17 }
 0xaf4   :  { %v3915_v62 = vpop.permute.xlu0 %3914 }
 0xaf5   :  { %3917 = vst.msk [vmem:[#allocation6] sm:$0xff] %vm95_vm2, %v3915_v62 }
 0xafc   :  { %v3919_v9 = vld [vmem:[#allocation6] sm:$0xff] }
 0xafd   :  { %v3920_v30 = vpack.c.bf16 %v3919_v9, %v3919_v9 }
 0xafe   :  { %v3992_v28 = vpop.permute.xlu1 %3991 }
 0xaff   :  { %5402 = vmatmul.mubr.msk.bf16.vlgmr.msra.gmra.mrb[24].mxu1 %vm95_vm2, %v3920_v30 }
 0xb00   :  { %5417 = vmatprep.mubr.msk.bf16.mxu1 %vm6069_vm1, %v7303_v42  ;;  %5414 = vmatpush3.bf16.msra.mxu1 %v5740_v58 }
 0xb01   :  { %5415 = vmatprep.subr.bf16.mxu1 %v7303_v42 }
 0xb04   :  { %5416 = vmatpush3.bf16.msra.mxu1 %v5741_v14 }
 0xb05   :  { %5429 = vmatprep.subr.bf16.mxu1 %v7303_v42 }
 0xbd2   :  { %v3974_v37 = vpop.f32.mrb[24].mxu1 }
 0xbd3   :  { %v5462_v40 = vadd.f32 %v7086_v33, %v3974_v37  ;;  %v5403_v5 = vpop.f32.mrb[25].mxu1 }
 0xbd4   :  { %v3977_v63 = vpop.f32.mrb[26].mxu1 }
 0xbd5   :  { %v5101_v61 = vmul.f32 -1.442695, %v5462_v40  ;;  %v5404_v1 = vpop.f32.mrb[27].mxu1 }
 0xbd7   :  { %5888 = vpow2.f32 %v5101_v61 }
 0xbd8   :  { %5890 = vtanh.f32 %v5462_v40 }
 0xbe1   :  { %v5889_v2 = vpop.eup %5888 }
 0xbe2   :  { %v3985_v7 = vadd.f32 1.0, %v5889_v2  ;;  %v5891_v10 = vpop.eup %5890 }
 0xbe4   :  { %5892 = vrcp.f32 %v3985_v7 }
 0xbee   :  { %v5893_v3 = vpop.eup %5892 }
 0xbef   :  { %v3988_v17 = vsel %vm7091_vm5, %v5891_v10, %v5893_v3 }
 0xbf0   :  { %3996 = vrot.lane.b32.xlu0 %v3988_v17, %s6070_s7  ;;  %v3994_v29 = vmul.f32 %v3992_v28, %v3988_v17 }
 0xc62   :  { %v3997_v22 = vpop.permute.xlu0 %3996 }
 0xc63   :  { %v3999_v24 = vmul.f32 %v3997_v22, %v3988_v17  ;;  %v5742_v22 = vld [vmem:[%s7278_s6] sm:$0xff]  }
 0xc65   :  { %4001 = vrot.lane.b32.xlu0 %v3999_v24, %s6071_s17  ;;  %v5743_v24 = vld [vmem:[%s7278_s6 + $0x8] sm:$0xff]  }
 0xcd7   :  { %v4002_v15 = vpop.permute.xlu0 %4001 }
 0xcd8   :  { %v4004_v18 = vadd.f32 %v4002_v15, %v3994_v29 }
 0xcda   :  { %5894 = vtanh.f32 %v4004_v18 }
 0xce4   :  { %v5895_v45 = vpop.eup %5894 }
 0xce5   :  { %4007 = vrot.lane.b32.xlu1 %v5895_v45, %s6070_s7 }
 0xce9   :  { %4012 = vrot.lane.b32.xlu1 %v4004_v18, %s6072_s2 }
 0xd57   :  { %v4008_v46 = vpop.permute.xlu1 %4007 }
 0xd58   :  { %v4010_v19 = vmul.f32 %v4008_v46, %v3988_v17 }
 0xd5a   :  { %4017 = vrot.lane.b32.xlu0 %v4010_v19, %s6071_s17 }
 0xd5b   :  { %v4013_v60 = vpop.permute.xlu1 %4012 }
 0xd5c   :  { %4015 = vst.msk [vmem:[#allocation7] sm:$0xff] %vm95_vm2, %v4013_v60 }
 0xd63   :  { %v4092_v20 = vld [vmem:[#allocation7] sm:$0xff] }
 0xd64   :  { %4094 = vrot.lane.b32.xlu1 %v4092_v20, %s6071_s17 }
 0xdcc   :  { %v4018_v57 = vpop.permute.xlu0 %4017 }
 0xdcd   :  { %4020 = vst.msk [vmem:[#allocation6] sm:$0xff] %vm95_vm2, %v4018_v57 }
 0xdd4   :  { %v4022_v23 = vld [vmem:[#allocation6] sm:$0xff] }
 0xdd5   :  { %v4023_v27 = vpack.c.bf16 %v4022_v23, %v4022_v23 }
 0xdd6   :  { %v4095_v25 = vpop.permute.xlu1 %4094 }
 0xdd7   :  { %5410 = vmatmul.mubr.msk.bf16.vlgmr.msra.gmra.mrb[32].mxu0 %vm95_vm2, %v4023_v27 }
 0xdd8   :  { %5425 = vmatprep.mubr.msk.bf16.mxu0 %vm6069_vm1, %v7303_v42  ;;  %5422 = vmatpush3.bf16.msra.mxu0 %v5742_v22 }
 0xdd9   :  { %5423 = vmatprep.subr.bf16.mxu0 %v7303_v42 }
 0xddc   :  { %5424 = vmatpush3.bf16.msra.mxu0 %v5743_v24 }
 0xddd   :  { %5437 = vmatprep.subr.bf16.mxu0 %v7303_v42 }
 0xeaa   :  { %v4077_v48 = vpop.f32.mrb[32].mxu0 }
 0xeab   :  { %v5463_v34 = vadd.f32 %v7086_v33, %v4077_v48  ;;  %v5411_v53 = vpop.f32.mrb[33].mxu0 }
 0xeac   :  { %v4080_v6 = vpop.f32.mrb[34].mxu0 }
 0xead   :  { %v5105_v51 = vmul.f32 -1.442695, %v5463_v34  ;;  %v5412_v4 = vpop.f32.mrb[35].mxu0 }
 0xeaf   :  { %5896 = vpow2.f32 %v5105_v51 }
 0xeb0   :  { %5898 = vtanh.f32 %v5463_v34 }
 0xeb9   :  { %v5897_v8 = vpop.eup %5896 }
 0xeba   :  { %v4088_v55 = vadd.f32 1.0, %v5897_v8  ;;  %v5899_v50 = vpop.eup %5898 }
 0xebc   :  { %5900 = vrcp.f32 %v4088_v55 }
 0xec6   :  { %v5901_v54 = vpop.eup %5900 }
 0xec7   :  { %v4091_v0 = vsel %vm7091_vm5, %v5899_v50, %v5901_v54 }
 0xec8   :  { %4099 = vrot.lane.b32.xlu0 %v4091_v0, %s6070_s7  ;;  %v4097_v47 = vmul.f32 %v4095_v25, %v4091_v0 }
 0xf3a   :  { %v4100_v11 = vpop.permute.xlu0 %4099 }
 0xf3b   :  { %v4102_v12 = vmul.f32 %v4100_v11, %v4091_v0  ;;  %v5744_v11 = vld [vmem:[%s7278_s6] sm:$0xff]  }
 0xf3d   :  { %4104 = vrot.lane.b32.xlu0 %v4102_v12, %s6071_s17  ;;  %v5745_v12 = vld [vmem:[%s7278_s6 + $0x8] sm:$0xff]  }
 0xfaf   :  { %v4105_v43 = vpop.permute.xlu0 %4104 }
 0xfb0   :  { %v4107_v49 = vadd.f32 %v4105_v43, %v4097_v47 }
 0xfb2   :  { %5902 = vtanh.f32 %v4107_v49 }
 0xfbc   :  { %v5903_v44 = vpop.eup %5902 }
 0xfbd   :  { %4110 = vrot.lane.b32.xlu1 %v5903_v44, %s6070_s7 }
 0xfc1   :  { %4115 = vrot.lane.b32.xlu1 %v4107_v49, %s6072_s2 }
0x102f   :  { %v4111_v32 = vpop.permute.xlu1 %4110 }
0x1030   :  { %v4113_v52 = vmul.f32 %v4111_v32, %v4091_v0 }
0x1032   :  { %4120 = vrot.lane.b32.xlu0 %v4113_v52, %s6071_s17 }
0x1033   :  { %v4116_v21 = vpop.permute.xlu1 %4115 }
0x1034   :  { %4118 = vst.msk [vmem:[#allocation7] sm:$0xff] %vm95_vm2, %v4116_v21 }
0x103b   :  { %v4195_v26 = vld [vmem:[#allocation7] sm:$0xff] }
0x103c   :  { %4197 = vrot.lane.b32.xlu1 %v4195_v26, %s6071_s17 }
0x10a4   :  { %v4121_v31 = vpop.permute.xlu0 %4120 }
0x10a5   :  { %4123 = vst.msk [vmem:[#allocation6] sm:$0xff] %vm95_vm2, %v4121_v31 }
0x10ac   :  { %v4125_v35 = vld [vmem:[#allocation6] sm:$0xff] }
0x10ad   :  { %v4126_v36 = vpack.c.bf16 %v4125_v35, %v4125_v35 }
0x10ae   :  { %v4198_v2 = vpop.permute.xlu1 %4197 }
0x10af   :  { %5418 = vmatmul.mubr.msk.bf16.vlgmr.msra.gmra.mrb[36].mxu1 %vm95_vm2, %v4126_v36 }
0x10b0   :  { %5433 = vmatprep.mubr.msk.bf16.mxu1 %vm6069_vm1, %v7303_v42  ;;  %5430 = vmatpush3.bf16.msra.mxu1 %v5744_v11 }
0x10b1   :  { %5431 = vmatprep.subr.bf16.mxu1 %v7303_v42 }
0x10b4   :  { %5432 = vmatpush3.bf16.msra.mxu1 %v5745_v12 }
0x10b5   :  { %5445 = vmatprep.subr.bf16.mxu1 %v7303_v42 }
0x1182   :  { %v4180_v38 = vpop.f32.mrb[36].mxu1 }
0x1183   :  { %v5464_v39 = vadd.f32 %v7086_v33, %v4180_v38  ;;  %v5419_v56 = vpop.f32.mrb[37].mxu1 }
0x1184   :  { %v4183_v59 = vpop.f32.mrb[38].mxu1 }
0x1185   :  { %v5109_v62 = vmul.f32 -1.442695, %v5464_v39  ;;  %v5420_v9 = vpop.f32.mrb[39].mxu1 }
0x1187   :  { %5904 = vpow2.f32 %v5109_v62 }
0x1188   :  { %5906 = vtanh.f32 %v5464_v39 }
0x1191   :  { %v5905_v30 = vpop.eup %5904 }
0x1192   :  { %v4191_v37 = vadd.f32 1.0, %v5905_v30  ;;  %v5907_v40 = vpop.eup %5906 }
0x1194   :  { %5908 = vrcp.f32 %v4191_v37 }
0x119e   :  { %v5909_v5 = vpop.eup %5908 }
0x119f   :  { %v4194_v63 = vsel %vm7091_vm5, %v5907_v40, %v5909_v5 }
0x11a0   :  { %4202 = vrot.lane.b32.xlu0 %v4194_v63, %s6070_s7  ;;  %v4200_v7 = vmul.f32 %v4198_v2, %v4194_v63 }
0x1212   :  { %v4203_v61 = vpop.permute.xlu0 %4202 }
0x1213   :  { %v4205_v1 = vmul.f32 %v4203_v61, %v4194_v63  ;;  %v5746_v61 = vld [vmem:[%s7278_s6] sm:$0xff]  }
0x1215   :  { %4207 = vrot.lane.b32.xlu0 %v4205_v1, %s6071_s17  ;;  %v5747_v1 = vld [vmem:[%s7278_s6 + $0x8] sm:$0xff]  }
0x1287   :  { %v4208_v10 = vpop.permute.xlu0 %4207 }
0x1288   :  { %v4210_v3 = vadd.f32 %v4208_v10, %v4200_v7 }
0x128a   :  { %5910 = vtanh.f32 %v4210_v3 }
0x1294   :  { %v5911_v17 = vpop.eup %5910 }
0x1295   :  { %4213 = vrot.lane.b32.xlu1 %v5911_v17, %s6070_s7 }
0x1299   :  { %4218 = vrot.lane.b32.xlu1 %v4210_v3, %s6072_s2 }
0x1307   :  { %v4214_v28 = vpop.permute.xlu1 %4213 }
0x1308   :  { %v4216_v29 = vmul.f32 %v4214_v28, %v4194_v63 }
0x130a   :  { %4223 = vrot.lane.b32.xlu0 %v4216_v29, %s6071_s17 }
0x130b   :  { %v4219_v15 = vpop.permute.xlu1 %4218 }
0x130c   :  { %4221 = vst.msk [vmem:[#allocation7] sm:$0xff] %vm95_vm2, %v4219_v15 }
0x1313   :  { %v4298_v18 = vld [vmem:[#allocation7] sm:$0xff] }
0x1314   :  { %4300 = vrot.lane.b32.xlu1 %v4298_v18, %s6071_s17 }
0x137c   :  { %v4224_v45 = vpop.permute.xlu0 %4223 }
0x137d   :  { %4226 = vst.msk [vmem:[#allocation6] sm:$0xff] %vm95_vm2, %v4224_v45 }
0x1384   :  { %v4228_v16 = vld [vmem:[#allocation6] sm:$0xff] }
0x1385   :  { %v4229_v41 = vpack.c.bf16 %v4228_v16, %v4228_v16 }
0x1386   :  { %v4301_v8 = vpop.permute.xlu1 %4300 }
0x1387   :  { %5426 = vmatmul.mubr.msk.bf16.vlgmr.msra.gmra.mrb[44].mxu0 %vm95_vm2, %v4229_v41 }
0x1388   :  { %5441 = vmatprep.mubr.msk.bf16.mxu0 %vm6069_vm1, %v7303_v42  ;;  %5438 = vmatpush3.bf16.msra.mxu0 %v5746_v61 }
0x1389   :  { %5439 = vmatprep.subr.bf16.mxu0 %v7303_v42 }
0x138c   :  { %5440 = vmatpush3.bf16.msra.mxu0 %v5747_v1 }
0x138d   :  { %5453 = vmatprep.subr.bf16.mxu0 %v7303_v42 }
0x145a   :  { %v4283_v46 = vpop.f32.mrb[44].mxu0 }
0x145b   :  { %v5465_v19 = vadd.f32 %v7086_v33, %v4283_v46  ;;  %v5427_v60 = vpop.f32.mrb[45].mxu0 }
0x145c   :  { %v4286_v20 = vpop.f32.mrb[46].mxu0 }
0x145d   :  { %v5113_v57 = vmul.f32 -1.442695, %v5465_v19  ;;  %v5428_v23 = vpop.f32.mrb[47].mxu0 }
0x145f   :  { %5912 = vpow2.f32 %v5113_v57 }
0x1460   :  { %5914 = vtanh.f32 %v5465_v19 }
0x1469   :  { %v5913_v27 = vpop.eup %5912 }
0x146a   :  { %v4294_v48 = vadd.f32 1.0, %v5913_v27  ;;  %v5915_v34 = vpop.eup %5914 }
0x146c   :  { %5916 = vrcp.f32 %v4294_v48 }
0x1476   :  { %v5917_v53 = vpop.eup %5916 }
0x1477   :  { %v4297_v6 = vsel %vm7091_vm5, %v5915_v34, %v5917_v53 }
0x1478   :  { %4305 = vrot.lane.b32.xlu0 %v4297_v6, %s6070_s7  ;;  %v4303_v55 = vmul.f32 %v4301_v8, %v4297_v6 }
0x14ea   :  { %v4306_v51 = vpop.permute.xlu0 %4305 }
0x14eb   :  { %v4308_v4 = vmul.f32 %v4306_v51, %v4297_v6  ;;  %v5748_v51 = vld [vmem:[%s7278_s6] sm:$0xff]  }
0x14ed   :  { %4310 = vrot.lane.b32.xlu0 %v4308_v4, %s6071_s17  ;;  %v5749_v4 = vld [vmem:[%s7278_s6 + $0x8] sm:$0xff]  }
0x155f   :  { %v4311_v50 = vpop.permute.xlu0 %4310 }
0x1560   :  { %v4313_v54 = vadd.f32 %v4311_v50, %v4303_v55 }
0x1562   :  { %5918 = vtanh.f32 %v4313_v54 }
0x156c   :  { %v5919_v0 = vpop.eup %5918 }
0x156d   :  { %4316 = vrot.lane.b32.xlu1 %v5919_v0, %s6070_s7 }
0x1571   :  { %4321 = vrot.lane.b32.xlu1 %v4313_v54, %s6072_s2 }
0x15df   :  { %v4317_v25 = vpop.permute.xlu1 %4316 }
0x15e0   :  { %v4319_v47 = vmul.f32 %v4317_v25, %v4297_v6 }
0x15e2   :  { %4326 = vrot.lane.b32.xlu0 %v4319_v47, %s6071_s17 }
0x15e3   :  { %v4322_v43 = vpop.permute.xlu1 %4321 }
0x15e4   :  { %4324 = vst.msk [vmem:[#allocation7] sm:$0xff] %vm95_vm2, %v4322_v43 }
0x15eb   :  { %v4401_v49 = vld [vmem:[#allocation7] sm:$0xff] }
0x15ec   :  { %4403 = vrot.lane.b32.xlu1 %v4401_v49, %s6071_s17 }
0x1654   :  { %v4327_v44 = vpop.permute.xlu0 %4326 }
0x1655   :  { %4329 = vst.msk [vmem:[#allocation6] sm:$0xff] %vm95_vm2, %v4327_v44 }
0x165c   :  { %v4331_v58 = vld [vmem:[#allocation6] sm:$0xff] }
0x165d   :  { %v4332_v14 = vpack.c.bf16 %v4331_v58, %v4331_v58 }
0x165e   :  { %v4404_v30 = vpop.permute.xlu1 %4403 }
0x165f   :  { %5434 = vmatmul.mubr.msk.bf16.vlgmr.msra.gmra.mrb[48].mxu1 %vm95_vm2, %v4332_v14 }
0x1660   :  { %5449 = vmatprep.mubr.msk.bf16.mxu1 %vm6069_vm1, %v7303_v42  ;;  %5446 = vmatpush3.bf16.msra.mxu1 %v5748_v51 }
0x1661   :  { %5447 = vmatprep.subr.bf16.mxu1 %v7303_v42 }
0x1664   :  { %5448 = vmatpush3.bf16.msra.mxu1 %v5749_v4 }
0x1732   :  { %v4386_v32 = vpop.f32.mrb[48].mxu1 }
0x1733   :  { %v5466_v52 = vadd.f32 %v7086_v33, %v4386_v32  ;;  %v5435_v21 = vpop.f32.mrb[49].mxu1 }
0x1734   :  { %v4389_v26 = vpop.f32.mrb[50].mxu1 }
0x1735   :  { %v5117_v31 = vmul.f32 -1.442695, %v5466_v52  ;;  %v5436_v35 = vpop.f32.mrb[51].mxu1 }
0x1737   :  { %5920 = vpow2.f32 %v5117_v31 }
0x1738   :  { %5922 = vtanh.f32 %v5466_v52 }
0x1741   :  { %v5921_v36 = vpop.eup %5920 }
0x1742   :  { %v4397_v38 = vadd.f32 1.0, %v5921_v36  ;;  %v5923_v39 = vpop.eup %5922 }
0x1744   :  { %5924 = vrcp.f32 %v4397_v38 }
0x174e   :  { %v5925_v56 = vpop.eup %5924 }
0x174f   :  { %v4400_v59 = vsel %vm7091_vm5, %v5923_v39, %v5925_v56 }
0x1750   :  { %4408 = vrot.lane.b32.xlu0 %v4400_v59, %s6070_s7  ;;  %v4406_v37 = vmul.f32 %v4404_v30, %v4400_v59 }
0x17c2   :  { %v4409_v62 = vpop.permute.xlu0 %4408 }
0x17c3   :  { %v4411_v9 = vmul.f32 %v4409_v62, %v4400_v59 }
0x17c5   :  { %4413 = vrot.lane.b32.xlu0 %v4411_v9, %s6071_s17 }
0x1837   :  { %v4414_v40 = vpop.permute.xlu0 %4413 }
0x1838   :  { %v4416_v5 = vadd.f32 %v4414_v40, %v4406_v37 }
0x183a   :  { %5926 = vtanh.f32 %v4416_v5 }
0x1844   :  { %v5927_v63 = vpop.eup %5926 }
0x1845   :  { %4419 = vrot.lane.b32.xlu1 %v5927_v63, %s6070_s7  ;;  %v5126_v63 = vld [vmem:[%s7281_s9] ss:$0 sm:$0xff] }
0x1849   :  { %4424 = vrot.lane.b32.xlu1 %v4416_v5, %s6072_s2 }
0x18b7   :  { %v4420_v2 = vpop.permute.xlu1 %4419 }
0x18b8   :  { %v4422_v7 = vmul.f32 %v4420_v2, %v4400_v59  ;;  %v5751_v59 = vld [vmem:[%s7280_s8 + $0x8] sm:$0xff]  }
0x18ba   :  { %4429 = vrot.lane.b32.xlu0 %v4422_v7, %s6071_s17 }
0x18bb   :  { %v4425_v10 = vpop.permute.xlu1 %4424 }
0x18bc   :  { %4427 = vst.msk [vmem:[#allocation7] sm:$0xff] %vm95_vm2, %v4425_v10 }
0x18c3   :  { %v4504_v3 = vld [vmem:[#allocation7] sm:$0xff] }
0x18c4   :  { %4506 = vrot.lane.b32.xlu1 %v4504_v3, %s6071_s17 }
0x192c   :  { %v4430_v17 = vpop.permute.xlu0 %4429 }
0x192d   :  { %4432 = vst.msk [vmem:[#allocation6] sm:$0xff] %vm95_vm2, %v4430_v17 }
0x1934   :  { %v4434_v22 = vld [vmem:[#allocation6] sm:$0xff] }
0x1935   :  { %v4435_v24 = vpack.c.bf16 %v4434_v22, %v4434_v22 }
0x1936   :  { %v4507_v27 = vpop.permute.xlu1 %4506 }
0x1937   :  { %5442 = vmatmul.mubr.msk.bf16.vlgmr.msra.gmra.mrb[56].mxu0 %vm95_vm2, %v4435_v24 }
0x1938   :  { %5457 = vmatprep.mubr.msk.bf16.mxu0 %vm6069_vm1, %v7303_v42  ;;  %5454 = vmatpush3.bf16.msra.mxu0 %v5750_v13 }
0x1939   :  { %5455 = vmatprep.subr.bf16.mxu0 %v7303_v42 }
0x193c   :  { %5456 = vmatpush3.bf16.msra.mxu0 %v5751_v59 }
0x1a0a   :  { %v4489_v28 = vpop.f32.mrb[56].mxu0 }
0x1a0b   :  { %v5467_v29 = vadd.f32 %v7086_v33, %v4489_v28  ;;  %v5443_v15 = vpop.f32.mrb[57].mxu0 }
0x1a0c   :  { %v4492_v18 = vpop.f32.mrb[58].mxu0 }
0x1a0d   :  { %v5121_v45 = vmul.f32 -1.442695, %v5467_v29  ;;  %v5444_v16 = vpop.f32.mrb[59].mxu0 }
0x1a0f   :  { %5928 = vpow2.f32 %v5121_v45 }
0x1a10   :  { %5930 = vtanh.f32 %v5467_v29 }
0x1a19   :  { %v5929_v41 = vpop.eup %5928 }
0x1a1a   :  { %v4500_v46 = vadd.f32 1.0, %v5929_v41  ;;  %v5931_v19 = vpop.eup %5930 }
0x1a1c   :  { %5932 = vrcp.f32 %v4500_v46 }
0x1a26   :  { %v5933_v60 = vpop.eup %5932 }
0x1a27   :  { %v4503_v20 = vsel %vm7091_vm5, %v5931_v19, %v5933_v60 }
0x1a28   :  { %4511 = vrot.lane.b32.xlu0 %v4503_v20, %s6070_s7  ;;  %v4509_v48 = vmul.f32 %v4507_v27, %v4503_v20 }
0x1a9a   :  { %v4512_v57 = vpop.permute.xlu0 %4511 }
0x1a9b   :  { %v4514_v23 = vmul.f32 %v4512_v57, %v4503_v20 }
0x1a9d   :  { %4516 = vrot.lane.b32.xlu0 %v4514_v23, %s6071_s17 }
0x1b0f   :  { %v4517_v34 = vpop.permute.xlu0 %4516 }
0x1b10   :  { %v4519_v53 = vadd.f32 %v4517_v34, %v4509_v48 }
0x1b12   :  { %5934 = vtanh.f32 %v4519_v53 }
0x1b1c   :  { %v5935_v6 = vpop.eup %5934 }
0x1b1d   :  { %4522 = vrot.lane.b32.xlu1 %v5935_v6, %s6070_s7 }
0x1b21   :  { %4527 = vrot.lane.b32.xlu1 %v4519_v53, %s6072_s2 }
0x1b8f   :  { %v4523_v8 = vpop.permute.xlu1 %4522 }
0x1b90   :  { %v4525_v55 = vmul.f32 %v4523_v8, %v4503_v20 }
0x1b92   :  { %4532 = vrot.lane.b32.xlu0 %v4525_v55, %s6071_s17 }
0x1b93   :  { %v4528_v50 = vpop.permute.xlu1 %4527 }
0x1b94   :  { %4530 = vst.msk [vmem:[#allocation7] sm:$0xff] %vm95_vm2, %v4528_v50 }
0x1b9b   :  { %v4607_v54 = vld [vmem:[#allocation7] sm:$0xff] }
0x1b9c   :  { %4609 = vrot.lane.b32.xlu1 %v4607_v54, %s6071_s17 }
0x1c04   :  { %v4533_v0 = vpop.permute.xlu0 %4532 }
0x1c05   :  { %4535 = vst.msk [vmem:[#allocation6] sm:$0xff] %vm95_vm2, %v4533_v0 }
0x1c0c   :  { %v4537_v11 = vld [vmem:[#allocation6] sm:$0xff] }
0x1c0d   :  { %v4538_v12 = vpack.c.bf16 %v4537_v11, %v4537_v11 }
0x1c0f   :  { %5450 = vmatmul.mubr.msk.bf16.vlgmr.msra.gmra.mrb[60].mxu1 %vm95_vm2, %v4538_v12 }
0x1ce2   :  { %v4592_v25 = vpop.f32.mrb[60].mxu1 }
0x1ce3   :  { %v5468_v47 = vadd.f32 %v7086_v33, %v4592_v25  ;;  %v5451_v43 = vpop.f32.mrb[61].mxu1  ;;  %v4610_v33 = vpop.permute.xlu1 %4609 }
0x1ce4   :  { %v4595_v49 = vpop.f32.mrb[62].mxu1 }
0x1ce5   :  { %v5125_v44 = vmul.f32 -1.442695, %v5468_v47  ;;  %v5452_v58 = vpop.f32.mrb[63].mxu1 }
0x1ce7   :  { %5936 = vpow2.f32 %v5125_v44 }
0x1ce8   :  { %5938 = vtanh.f32 %v5468_v47 }
0x1cf1   :  { %v5937_v14 = vpop.eup %5936 }
0x1cf2   :  { %v4603_v32 = vadd.f32 1.0, %v5937_v14  ;;  %v5939_v52 = vpop.eup %5938 }
0x1cf4   :  { %5940 = vrcp.f32 %v4603_v32 }
0x1cfe   :  { %v5941_v21 = vpop.eup %5940 }
0x1cff   :  { %v4606_v26 = vsel %vm7091_vm5, %v5939_v52, %v5941_v21 }
0x1d00   :  { %4614 = vrot.lane.b32.xlu0 %v4606_v26, %s6070_s7  ;;  %v4612_v36 = vmul.f32 %v4610_v33, %v4606_v26 }
0x1d72   :  { %v4615_v31 = vpop.permute.xlu0 %4614 }
0x1d73   :  { %v4617_v35 = vmul.f32 %v4615_v31, %v4606_v26 }
0x1d75   :  { %4619 = vrot.lane.b32.xlu0 %v4617_v35, %s6071_s17 }
0x1de7   :  { %v4620_v38 = vpop.permute.xlu0 %4619 }
0x1de8   :  { %v4622_v39 = vadd.f32 %v4620_v38, %v4612_v36 }
0x1dea   :  { %5942 = vtanh.f32 %v4622_v39 }
0x1df4   :  { %v5943_v56 = vpop.eup %5942 }
0x1df5   :  { %4625 = vrot.lane.b32.xlu1 %v5943_v56, %s6070_s7 }
0x1df9   :  { %4630 = vrot.lane.b32.xlu1 %v4622_v39, %s6072_s2 }
0x1e67   :  { %v4626_v62 = vpop.permute.xlu1 %4625 }
0x1e68   :  { %v4628_v9 = vmul.f32 %v4626_v62, %v4606_v26 }
0x1e6a   :  { %4635 = vrot.lane.b32.xlu0 %v4628_v9, %s6071_s17 }
0x1e6b   :  { %v4631_v30 = vpop.permute.xlu1 %4630 }
0x1e6c   :  { %4633 = vst.msk [vmem:[#allocation7] sm:$0xff] %vm95_vm2, %v4631_v30 }
0x1edc   :  { %v4636_v37 = vpop.permute.xlu0 %4635 }
0x1edd   :  { %4638 = vst.msk [vmem:[#allocation6] sm:$0xff] %vm95_vm2, %v4636_v37 }
0x1ee4   :  { %v4642_v40 = vld [vmem:[#allocation6] sm:$0xff] }
0x1ee5   :  { %v4643_v5 = vpack.c.bf16 %v4642_v40, %v4642_v40 }
0x1ee7   :  { %5458 = vmatmul.mubr.msk.bf16.vlgmr.msra.gmra.mrb[64].mxu0 %vm95_vm2, %v4643_v5 }
0x1fba   :  { %v4704_v42 = vpop.f32.mrb[64].mxu0 }
0x1fbb   :  { %v4705_v61 = vadd.f32 %v5126_v63, %v4704_v42  ;;  %v5459_v1 = vpop.f32.mrb[65].mxu0 }
0x1fbc   :  { %v4707_v2 = vpop.f32.mrb[66].mxu0 }
0x1fbd   :  { %4711 = vst.msk [vmem:[%s7282_s10] sm:$0xff] %vm4710_vm6, %v4705_v61  ;;  %v5460_v7 = vpop.f32.mrb[67].mxu0 }
0x1fbe   :  { %4716 = vsyncpa [#allocation9], 1 }
0x1fbf   :  { %4717 = vsyncpa [#allocation11], 1 }
0x1fc0   :  { %4718 = vsyncpa [#allocation14], 1 }

</bundles_post_ra>
